<compile_context>
chip_gen: v7x
topology: tpu7x:2x2x1
jax: 0.10.0
libtpu: 0.0.40
codegen_flags: <defaults>
</compile_context>

<pallas_src>
import numpy as np
import jax
import jax.numpy as jnp
from jax.experimental import pallas as pl
from jax.experimental.pallas import tpu as pltpu

EPS = 1e-5  # nn.BatchNorm2d default eps


def _silu(v):
    return v * jax.nn.sigmoid(v)


# ----------------------------- Pallas kernel ------------------------------- #
def bottleneck_csp_kernel(
    x_ref,                       # (1, H, W, C1)   input image block (bf16)
    w12_ref, s1_ref, b1_ref,     # fused cv1|cv2 weight (C1, 2c_), cv1 folded BN
    wm1_ref, sm1_ref, bm1_ref,   # bottleneck.cv1: 1x1 conv + BN + SiLU
    wm2_ref, sm2_ref, bm2_ref,   # bottleneck.cv2: 3x3 conv as im2col (9c_, c_)
    w3_ref,                      # cv3: plain 1x1 conv
    sbn_ref, bbn_ref,            # bn over concat(y1, y2)  (1, 2c_)
    w4_ref, s4_ref, b4_ref,      # cv4: 1x1 conv (2c_, C2) + folded BN
    o_ref,                       # (1, H, W, C2)   output (f32)
    pad_ref,                     # VMEM scratch (H+2, W+2, c_) bf16, zero border
):
    _, H, W, C1 = x_ref.shape
    Ch = wm1_ref.shape[1]
    C2 = o_ref.shape[3]
    f32 = jnp.float32
    bf16 = jnp.bfloat16

    x = x_ref[0].reshape(H * W, C1)                      # bf16

    # cv1 (1x1 + BN + SiLU) and cv2 (plain 1x1) : one fused MXU dot on x.
    xy = jnp.dot(x, w12_ref[...], preferred_element_type=f32)   # (H*W, 2c_) f32
    a = _silu(xy[:, :Ch] * s1_ref[...] + b1_ref[...])           # cv1 branch
    y2 = xy[:, Ch:]                                             # cv2 branch

    # m = Bottleneck(c_, c_, shortcut=True, e=1.0)
    #   cv1 : 1x1 conv + BN + SiLU
    t = _silu(jnp.dot(a.astype(bf16), wm1_ref[...],
                      preferred_element_type=f32) * sm1_ref[...] + bm1_ref[...])

    #   cv2 : 3x3 conv (pad=1) via bf16 padded scratch + ONE im2col matmul.
    #   Only the 1-element border is zeroed; the interior is overwritten below.
    pad_ref[0:1, :, :] = jnp.zeros((1, W + 2, Ch), bf16)
    pad_ref[H + 1:H + 2, :, :] = jnp.zeros((1, W + 2, Ch), bf16)
    pad_ref[1:H + 1, 0:1, :] = jnp.zeros((H, 1, Ch), bf16)
    pad_ref[1:H + 1, W + 1:W + 2, :] = jnp.zeros((H, 1, Ch), bf16)
    pad_ref[1:H + 1, 1:W + 1, :] = t.reshape(H, W, Ch).astype(bf16)

    wins = []
    for dh in range(3):
        for dw in range(3):
            wins.append(pad_ref[dh:dh + H, dw:dw + W, :])        # (H, W, Ch) bf16
    patch = jnp.concatenate(wins, axis=-1).reshape(H * W, 9 * Ch)  # (H*W, 9c_)
    u = _silu(jnp.dot(patch, wm2_ref[...], preferred_element_type=f32)
              * sm2_ref[...] + bm2_ref[...])
    mb = a + u                                           # residual shortcut (f32)

    # y1 = cv3(m(cv1(x)))
    y1 = jnp.dot(mb.astype(bf16), w3_ref[...], preferred_element_type=f32)

    # BN + LeakyReLU(0.1) over concat(y1, y2), then cv4 as one (2c_, C2) dot.
    y = jnp.concatenate([y1, y2], axis=-1)               # (H*W, 2c_) f32
    z = y * sbn_ref[...] + bbn_ref[...]
    z = jnp.where(z > 0, z, 0.1 * z)
    o = jnp.dot(z.astype(bf16), w4_ref[...], preferred_element_type=f32)
    o = _silu(o * s4_ref[...] + b4_ref[...])

    o_ref[0] = o.reshape(H, W, C2).astype(o_ref.dtype)


# ----------------------------- wrapper ------------------------------------- #
PARAM_ORDER = ["w12", "s1", "b1", "wm1", "sm1", "bm1", "wm2", "sm2", "bm2",
               "w3", "sbn", "bbn", "w4", "s4", "b4"]


def _param_spec(a):
    assert a.ndim == 2
    return pl.BlockSpec(a.shape, lambda b: (0, 0))


def bottleneck_csp_pallas_nhwc(x_nhwc, params):
    """Core NHWC entry point (no HBM layout transposes)."""
    N, H, W, C1 = x_nhwc.shape
    Ch = params["wm1"].shape[1]
    C2 = params["w4"].shape[1]
    x_bf16 = x_nhwc.astype(jnp.bfloat16)          # halves input HBM/VMEM bytes
    param_args = [params[k] for k in PARAM_ORDER]

    # VMEM budget: double-buffered I/O blocks + params + scratch + headroom.
    blk_bytes = H * W * C1 * 2 + H * W * C2 * 4
    par_bytes = sum(int(np.prod(a.shape)) * a.dtype.itemsize for a in param_args)
    scratch_bytes = (H + 2) * (W + 2) * Ch * 2
    est = 2 * blk_bytes + 2 * par_bytes + scratch_bytes
    vmem_limit = int(min(48 * 2**20, max(16 * 2**20, 4 * est)))

    return pl.pallas_call(
        bottleneck_csp_kernel,
        out_shape=jax.ShapeDtypeStruct((N, H, W, C2), jnp.float32),
        grid=(N,),
        in_specs=[pl.BlockSpec((1, H, W, C1), lambda b: (b, 0, 0, 0))]
                 + [_param_spec(a) for a in param_args],
        out_specs=pl.BlockSpec((1, H, W, C2), lambda b: (b, 0, 0, 0)),
        scratch_shapes=[pltpu.VMEM((H + 2, W + 2, Ch), jnp.bfloat16)],
        compiler_params=pltpu.CompilerParams(
            dimension_semantics=("parallel",),
            vmem_limit_bytes=vmem_limit),
    )(x_bf16, *param_args)


def bottleneck_csp_pallas(x_nchw, params):
    # NCHW convenience wrapper (for parity with the PyTorch module).  In a real
    # pipeline keep activations NHWC end-to-end and call the function above to
    # avoid these two full-tensor HBM transposes.
    x_nhwc = jnp.transpose(x_nchw, (0, 2, 3, 1))
    out_nhwc = bottleneck_csp_pallas_nhwc(x_nhwc, params)
    return jnp.transpose(out_nhwc, (0, 3, 1, 2))


# ------------------------ parameter construction --------------------------- #
def init_params(key, c1, c2, e=0.5):
    c_ = int(c2 * e)
    keys = iter(jax.random.split(key, 40))

    def w(shape, fan_in):
        return jax.random.normal(next(keys), shape, jnp.float32) / jnp.sqrt(
            jnp.float32(fan_in))

    def bn(c):
        gamma = 1.0 + 0.1 * jax.random.normal(next(keys), (c,), jnp.float32)
        beta = 0.1 * jax.random.normal(next(keys), (c,), jnp.float32)
        mean = 0.1 * jax.random.normal(next(keys), (c,), jnp.float32)
        var = 1.0 + 0.1 * jax.random.uniform(next(keys), (c,), jnp.float32)
        scale = gamma / jnp.sqrt(var + EPS)
        bias = beta - mean * scale
        return scale, bias

    # torch-layout (OIHW) weights + folded BN scale/bias
    w_cv1 = w((c_, c1, 1, 1), c1);         s1, b1 = bn(c_)
    w_m1 = w((c_, c_, 1, 1), c_);          sm1, bm1 = bn(c_)
    w_m2 = w((c_, c_, 3, 3), 9 * c_);      sm2, bm2 = bn(c_)
    w_cv3 = w((c_, c_, 1, 1), c_)
    w_cv2 = w((c_, c1, 1, 1), c1)
    sbn, bbn = bn(2 * c_)
    w_cv4 = w((c2, 2 * c_, 1, 1), 2 * c_); s4, b4 = bn(c2)

    def w1x1(wt):            # (O, I, 1, 1) -> (I, O)
        return jnp.transpose(wt[:, :, 0, 0], (1, 0))

    bf16 = jnp.bfloat16
    kparams = {
        # cv1 | cv2 fused over output channels: (C1, 2*c_), bf16 for the MXU
        "w12": jnp.concatenate([w1x1(w_cv1), w1x1(w_cv2)], axis=1).astype(bf16),
        "s1": s1[None], "b1": b1[None],
        "wm1": w1x1(w_m1).astype(bf16), "sm1": sm1[None], "bm1": bm1[None],
        # im2col weight layout: (O,I,3,3) -> (dh,dw,I,O) -> (9*I, O)
        "wm2": jnp.transpose(w_m2, (2, 3, 1, 0)).reshape(9 * c_, c_).astype(bf16),
        "sm2": sm2[None], "bm2": bm2[None],
        "w3": w1x1(w_cv3).astype(bf16),
        "sbn": sbn[None], "bbn": bbn[None],
        "w4": w1x1(w_cv4).astype(bf16),
        "s4": s4[None], "b4": b4[None],
    }
    torch_params = dict(w_cv1=w_cv1, s1=s1, b1=b1, w_m1=w_m1, sm1=sm1, bm1=bm1,
                        w_m2=w_m2, sm2=sm2, bm2=bm2, w_cv3=w_cv3, w_cv2=w_cv2,
                        sbn=sbn, bbn=bbn, w_cv4=w_cv4, s4=s4, b4=b4)
    return kparams, torch_params


# --------------------------- pure-JAX reference ---------------------------- #
def _conv_nchw(x, w, pad):
    return jax.lax.conv_general_dilated(
        x, w, (1, 1), [(pad, pad), (pad, pad)],
        dimension_numbers=("NCHW", "OIHW", "NCHW"),
        precision=jax.lax.Precision.HIGHEST)


def ref_forward(x, p):
    def aff(y, s, b):
        return y * s[None, :, None, None] + b[None, :, None, None]

    a = _silu(aff(_conv_nchw(x, p["w_cv1"], 0), p["s1"], p["b1"]))
    t = _silu(aff(_conv_nchw(a, p["w_m1"], 0), p["sm1"], p["bm1"]))
    u = _silu(aff(_conv_nchw(t, p["w_m2"], 1), p["sm2"], p["bm2"]))
    mb = a + u
    y1 = _conv_nchw(mb, p["w_cv3"], 0)
    y2 = _conv_nchw(x, p["w_cv2"], 0)
    cat = jnp.concatenate([y1, y2], axis=1)
    z = aff(cat, p["sbn"], p["bbn"])
    z = jnp.where(z > 0, z, 0.1 * z)
    return _silu(aff(_conv_nchw(z, p["w_cv4"], 0), p["s4"], p["b4"]))


# --------------------------------- main ------------------------------------ #
if __name__ == "__main__":
    key = jax.random.PRNGKey(0)
    kx, kp = jax.random.split(key)

    N, C1, C2, H, W = 2, 16, 16, 16, 16         # c_ = 8
    x = jax.random.normal(kx, (N, C1, H, W), jnp.float32)
    kparams, tparams = init_params(kp, C1, C2)

    out = jax.block_until_ready(bottleneck_csp_pallas(x, kparams))
    ref = jax.block_until_ready(ref_forward(x, tparams))

    assert out.shape == ref.shape == (N, C2, H, W)
    # bf16 matmul inputs (f32 accumulation) -> loosen tolerance vs f32 reference
    np.testing.assert_allclose(np.asarray(out), np.asarray(ref),
                               rtol=5e-2, atol=5e-2)
    print("KERNEL_OK")
</pallas_src>

<mosaic_0001>
module attributes {stable_mosaic.version = 11 : i64} {
  func.func @bottleneck_csp_kernel(%arg0: i32, %arg1: memref<1x16x16x16xbf16, #tpu.memory_space<vmem>>, %arg2: memref<16x16xbf16, #tpu.memory_space<vmem>>, %arg3: memref<1x8xf32, #tpu.memory_space<vmem>>, %arg4: memref<1x8xf32, #tpu.memory_space<vmem>>, %arg5: memref<8x8xbf16, #tpu.memory_space<vmem>>, %arg6: memref<1x8xf32, #tpu.memory_space<vmem>>, %arg7: memref<1x8xf32, #tpu.memory_space<vmem>>, %arg8: memref<72x8xbf16, #tpu.memory_space<vmem>>, %arg9: memref<1x8xf32, #tpu.memory_space<vmem>>, %arg10: memref<1x8xf32, #tpu.memory_space<vmem>>, %arg11: memref<8x8xbf16, #tpu.memory_space<vmem>>, %arg12: memref<1x16xf32, #tpu.memory_space<vmem>>, %arg13: memref<1x16xf32, #tpu.memory_space<vmem>>, %arg14: memref<16x16xbf16, #tpu.memory_space<vmem>>, %arg15: memref<1x16xf32, #tpu.memory_space<vmem>>, %arg16: memref<1x16xf32, #tpu.memory_space<vmem>>, %arg17: memref<1x16x16x16xf32, #tpu.memory_space<vmem>>, %arg18: memref<18x18x8xbf16, #tpu.memory_space<vmem>>) attributes {dimension_semantics = [#tpu.dimension_semantics<parallel>], iteration_bounds = array<i64: 2>, scalar_prefetch = 0 : i64, scratch_operands = 1 : i64, tpu.core_type = #tpu.core_type<tc>, window_params = [{transform_indices = @transform_0, window_bounds = array<i64: 1, 16, 16, 16>}, {pipeline_mode = #tpu.pipeline_mode<synchronous>, transform_indices = @transform_1, window_bounds = array<i64: 16, 16>}, {pipeline_mode = #tpu.pipeline_mode<synchronous>, transform_indices = @transform_2, window_bounds = array<i64: 1, 8>}, {pipeline_mode = #tpu.pipeline_mode<synchronous>, transform_indices = @transform_3, window_bounds = array<i64: 1, 8>}, {pipeline_mode = #tpu.pipeline_mode<synchronous>, transform_indices = @transform_4, window_bounds = array<i64: 8, 8>}, {pipeline_mode = #tpu.pipeline_mode<synchronous>, transform_indices = @transform_5, window_bounds = array<i64: 1, 8>}, {pipeline_mode = #tpu.pipeline_mode<synchronous>, transform_indices = @transform_6, window_bounds = array<i64: 1, 8>}, {pipeline_mode = #tpu.pipeline_mode<synchronous>, transform_indices = @transform_7, window_bounds = array<i64: 72, 8>}, {pipeline_mode = #tpu.pipeline_mode<synchronous>, transform_indices = @transform_8, window_bounds = array<i64: 1, 8>}, {pipeline_mode = #tpu.pipeline_mode<synchronous>, transform_indices = @transform_9, window_bounds = array<i64: 1, 8>}, {pipeline_mode = #tpu.pipeline_mode<synchronous>, transform_indices = @transform_10, window_bounds = array<i64: 8, 8>}, {pipeline_mode = #tpu.pipeline_mode<synchronous>, transform_indices = @transform_11, window_bounds = array<i64: 1, 16>}, {pipeline_mode = #tpu.pipeline_mode<synchronous>, transform_indices = @transform_12, window_bounds = array<i64: 1, 16>}, {pipeline_mode = #tpu.pipeline_mode<synchronous>, transform_indices = @transform_13, window_bounds = array<i64: 16, 16>}, {pipeline_mode = #tpu.pipeline_mode<synchronous>, transform_indices = @transform_14, window_bounds = array<i64: 1, 16>}, {pipeline_mode = #tpu.pipeline_mode<synchronous>, transform_indices = @transform_15, window_bounds = array<i64: 1, 16>}, {transform_indices = @transform_16, window_bounds = array<i64: 1, 16, 16, 16>}]} {
    %c0 = arith.constant 0 : index
    %c0_0 = arith.constant 0 : index
    %c0_1 = arith.constant 0 : index
    %c0_2 = arith.constant 0 : index
    %0 = vector.load %arg1[%c0, %c0_0, %c0_1, %c0_2] : memref<1x16x16x16xbf16, #tpu.memory_space<vmem>>, vector<1x16x16x16xbf16>
    %1 = vector.shape_cast %0 : vector<1x16x16x16xbf16> to vector<16x16x16xbf16>
    %2 = vector.shape_cast %1 : vector<16x16x16xbf16> to vector<256x16xbf16>
    %c0_3 = arith.constant 0 : index
    %c0_4 = arith.constant 0 : index
    %3 = vector.load %arg2[%c0_3, %c0_4] : memref<16x16xbf16, #tpu.memory_space<vmem>>, vector<16x16xbf16>
    %cst = arith.constant dense<0.000000e+00> : vector<256x16xf32>
    %4 = tpu.matmul %2, %3, %cst {dimension_numbers = #tpu.dot_dimension_numbers<[1], [0], [0], [1], [0, 0, 1, 1], [], []>} : vector<256x16xbf16>, vector<16x16xbf16>, vector<256x16xf32> -> vector<256x16xf32>
    %5 = vector.extract_strided_slice %4 {offsets = [0, 0], sizes = [256, 8], strides = [1, 1]} : vector<256x16xf32> to vector<256x8xf32>
    %c0_5 = arith.constant 0 : index
    %c0_6 = arith.constant 0 : index
    %6 = vector.load %arg3[%c0_5, %c0_6] : memref<1x8xf32, #tpu.memory_space<vmem>>, vector<1x8xf32>
    %7 = vector.broadcast %6 : vector<1x8xf32> to vector<256x8xf32>
    %8 = arith.mulf %5, %7 : vector<256x8xf32>
    %c0_7 = arith.constant 0 : index
    %c0_8 = arith.constant 0 : index
    %9 = vector.load %arg4[%c0_7, %c0_8] : memref<1x8xf32, #tpu.memory_space<vmem>>, vector<1x8xf32>
    %10 = vector.broadcast %9 : vector<1x8xf32> to vector<256x8xf32>
    %11 = arith.addf %8, %10 : vector<256x8xf32>
    %12 = arith.negf %11 : vector<256x8xf32>
    %13 = math.exp %12 : vector<256x8xf32>
    %cst_9 = arith.constant 1.000000e+00 : f32
    %14 = vector.broadcast %cst_9 : f32 to vector<256x8xf32>
    %15 = arith.addf %14, %13 : vector<256x8xf32>
    %16 = arith.divf %14, %15 : vector<256x8xf32>
    %17 = arith.mulf %11, %16 : vector<256x8xf32>
    %18 = vector.extract_strided_slice %4 {offsets = [0, 8], sizes = [256, 8], strides = [1, 1]} : vector<256x16xf32> to vector<256x8xf32>
    %19 = arith.truncf %17 : vector<256x8xf32> to vector<256x8xbf16>
    %c0_10 = arith.constant 0 : index
    %c0_11 = arith.constant 0 : index
    %20 = vector.load %arg5[%c0_10, %c0_11] : memref<8x8xbf16, #tpu.memory_space<vmem>>, vector<8x8xbf16>
    %cst_12 = arith.constant dense<0.000000e+00> : vector<256x8xf32>
    %21 = tpu.matmul %19, %20, %cst_12 {dimension_numbers = #tpu.dot_dimension_numbers<[1], [0], [0], [1], [0, 0, 1, 1], [], []>} : vector<256x8xbf16>, vector<8x8xbf16>, vector<256x8xf32> -> vector<256x8xf32>
    %c0_13 = arith.constant 0 : index
    %c0_14 = arith.constant 0 : index
    %22 = vector.load %arg6[%c0_13, %c0_14] : memref<1x8xf32, #tpu.memory_space<vmem>>, vector<1x8xf32>
    %23 = vector.broadcast %22 : vector<1x8xf32> to vector<256x8xf32>
    %24 = arith.mulf %21, %23 : vector<256x8xf32>
    %c0_15 = arith.constant 0 : index
    %c0_16 = arith.constant 0 : index
    %25 = vector.load %arg7[%c0_15, %c0_16] : memref<1x8xf32, #tpu.memory_space<vmem>>, vector<1x8xf32>
    %26 = vector.broadcast %25 : vector<1x8xf32> to vector<256x8xf32>
    %27 = arith.addf %24, %26 : vector<256x8xf32>
    %28 = arith.negf %27 : vector<256x8xf32>
    %29 = math.exp %28 : vector<256x8xf32>
    %cst_17 = arith.constant 1.000000e+00 : f32
    %30 = vector.broadcast %cst_17 : f32 to vector<256x8xf32>
    %31 = arith.addf %30, %29 : vector<256x8xf32>
    %32 = arith.divf %30, %31 : vector<256x8xf32>
    %33 = arith.mulf %27, %32 : vector<256x8xf32>
    %cst_18 = arith.constant 0.000000e+00 : bf16
    %34 = vector.broadcast %cst_18 : bf16 to vector<1x18x8xbf16>
    %c0_19 = arith.constant 0 : index
    %c0_20 = arith.constant 0 : index
    %c0_21 = arith.constant 0 : index
    %35 = vector.load %arg18[%c0_19, %c0_20, %c0_21] : memref<18x18x8xbf16, #tpu.memory_space<vmem>>, vector<1x18x8xbf16>
    tpu.vector_store %arg18[%c0_19, %c0_20, %c0_21], %34 {strides = array<i32>} : memref<18x18x8xbf16, #tpu.memory_space<vmem>>, vector<1x18x8xbf16>,
    %cst_22 = arith.constant 0.000000e+00 : bf16
    %36 = vector.broadcast %cst_22 : bf16 to vector<1x18x8xbf16>
    %c17 = arith.constant 17 : index
    %c0_23 = arith.constant 0 : index
    %c0_24 = arith.constant 0 : index
    %37 = vector.load %arg18[%c17, %c0_23, %c0_24] : memref<18x18x8xbf16, #tpu.memory_space<vmem>>, vector<1x18x8xbf16>
    tpu.vector_store %arg18[%c17, %c0_23, %c0_24], %36 {strides = array<i32>} : memref<18x18x8xbf16, #tpu.memory_space<vmem>>, vector<1x18x8xbf16>,
    %cst_25 = arith.constant 0.000000e+00 : bf16
    %38 = vector.broadcast %cst_25 : bf16 to vector<16x1x8xbf16>
    %c1 = arith.constant 1 : index
    %c0_26 = arith.constant 0 : index
    %c0_27 = arith.constant 0 : index
    %39 = vector.load %arg18[%c1, %c0_26, %c0_27] : memref<18x18x8xbf16, #tpu.memory_space<vmem>>, vector<16x1x8xbf16>
    tpu.vector_store %arg18[%c1, %c0_26, %c0_27], %38 {strides = array<i32>} : memref<18x18x8xbf16, #tpu.memory_space<vmem>>, vector<16x1x8xbf16>,
    %cst_28 = arith.constant 0.000000e+00 : bf16
    %40 = vector.broadcast %cst_28 : bf16 to vector<16x1x8xbf16>
    %c1_29 = arith.constant 1 : index
    %c17_30 = arith.constant 17 : index
    %c0_31 = arith.constant 0 : index
    %41 = vector.load %arg18[%c1_29, %c17_30, %c0_31] : memref<18x18x8xbf16, #tpu.memory_space<vmem>>, vector<16x1x8xbf16>
    tpu.vector_store %arg18[%c1_29, %c17_30, %c0_31], %40 {strides = array<i32>} : memref<18x18x8xbf16, #tpu.memory_space<vmem>>, vector<16x1x8xbf16>,
    %42 = vector.shape_cast %33 : vector<256x8xf32> to vector<16x16x8xf32>
    %43 = arith.truncf %42 : vector<16x16x8xf32> to vector<16x16x8xbf16>
    %c1_32 = arith.constant 1 : index
    %c1_33 = arith.constant 1 : index
    %c0_34 = arith.constant 0 : index
    %44 = vector.load %arg18[%c1_32, %c1_33, %c0_34] : memref<18x18x8xbf16, #tpu.memory_space<vmem>>, vector<16x16x8xbf16>
    tpu.vector_store %arg18[%c1_32, %c1_33, %c0_34], %43 {strides = array<i32>} : memref<18x18x8xbf16, #tpu.memory_space<vmem>>, vector<16x16x8xbf16>,
    %c0_35 = arith.constant 0 : index
    %c0_36 = arith.constant 0 : index
    %c0_37 = arith.constant 0 : index
    %45 = vector.load %arg18[%c0_35, %c0_36, %c0_37] : memref<18x18x8xbf16, #tpu.memory_space<vmem>>, vector<16x16x8xbf16>
    %c0_38 = arith.constant 0 : index
    %c1_39 = arith.constant 1 : index
    %c0_40 = arith.constant 0 : index
    %46 = vector.load %arg18[%c0_38, %c1_39, %c0_40] : memref<18x18x8xbf16, #tpu.memory_space<vmem>>, vector<16x16x8xbf16>
    %c0_41 = arith.constant 0 : index
    %c2 = arith.constant 2 : index
    %c0_42 = arith.constant 0 : index
    %47 = vector.load %arg18[%c0_41, %c2, %c0_42] : memref<18x18x8xbf16, #tpu.memory_space<vmem>>, vector<16x16x8xbf16>
    %c1_43 = arith.constant 1 : index
    %c0_44 = arith.constant 0 : index
    %c0_45 = arith.constant 0 : index
    %48 = vector.load %arg18[%c1_43, %c0_44, %c0_45] : memref<18x18x8xbf16, #tpu.memory_space<vmem>>, vector<16x16x8xbf16>
    %c1_46 = arith.constant 1 : index
    %c1_47 = arith.constant 1 : index
    %c0_48 = arith.constant 0 : index
    %49 = vector.load %arg18[%c1_46, %c1_47, %c0_48] : memref<18x18x8xbf16, #tpu.memory_space<vmem>>, vector<16x16x8xbf16>
    %c1_49 = arith.constant 1 : index
    %c2_50 = arith.constant 2 : index
    %c0_51 = arith.constant 0 : index
    %50 = vector.load %arg18[%c1_49, %c2_50, %c0_51] : memref<18x18x8xbf16, #tpu.memory_space<vmem>>, vector<16x16x8xbf16>
    %c2_52 = arith.constant 2 : index
    %c0_53 = arith.constant 0 : index
    %c0_54 = arith.constant 0 : index
    %51 = vector.load %arg18[%c2_52, %c0_53, %c0_54] : memref<18x18x8xbf16, #tpu.memory_space<vmem>>, vector<16x16x8xbf16>
    %c2_55 = arith.constant 2 : index
    %c1_56 = arith.constant 1 : index
    %c0_57 = arith.constant 0 : index
    %52 = vector.load %arg18[%c2_55, %c1_56, %c0_57] : memref<18x18x8xbf16, #tpu.memory_space<vmem>>, vector<16x16x8xbf16>
    %c2_58 = arith.constant 2 : index
    %c2_59 = arith.constant 2 : index
    %c0_60 = arith.constant 0 : index
    %53 = vector.load %arg18[%c2_58, %c2_59, %c0_60] : memref<18x18x8xbf16, #tpu.memory_space<vmem>>, vector<16x16x8xbf16>
    %54 = tpu.concatenate %45, %46, %47, %48, %49, %50, %51, %52, %53 in 2 : vector<16x16x8xbf16>, vector<16x16x8xbf16>, vector<16x16x8xbf16>, vector<16x16x8xbf16>, vector<16x16x8xbf16>, vector<16x16x8xbf16>, vector<16x16x8xbf16>, vector<16x16x8xbf16>, vector<16x16x8xbf16> -> vector<16x16x72xbf16>
    %55 = vector.shape_cast %54 : vector<16x16x72xbf16> to vector<256x72xbf16>
    %c0_61 = arith.constant 0 : index
    %c0_62 = arith.constant 0 : index
    %56 = vector.load %arg8[%c0_61, %c0_62] : memref<72x8xbf16, #tpu.memory_space<vmem>>, vector<72x8xbf16>
    %cst_63 = arith.constant dense<0.000000e+00> : vector<256x8xf32>
    %57 = tpu.matmul %55, %56, %cst_63 {dimension_numbers = #tpu.dot_dimension_numbers<[1], [0], [0], [1], [0, 0, 1, 1], [], []>} : vector<256x72xbf16>, vector<72x8xbf16>, vector<256x8xf32> -> vector<256x8xf32>
    %c0_64 = arith.constant 0 : index
    %c0_65 = arith.constant 0 : index
    %58 = vector.load %arg9[%c0_64, %c0_65] : memref<1x8xf32, #tpu.memory_space<vmem>>, vector<1x8xf32>
    %59 = vector.broadcast %58 : vector<1x8xf32> to vector<256x8xf32>
    %60 = arith.mulf %57, %59 : vector<256x8xf32>
    %c0_66 = arith.constant 0 : index
    %c0_67 = arith.constant 0 : index
    %61 = vector.load %arg10[%c0_66, %c0_67] : memref<1x8xf32, #tpu.memory_space<vmem>>, vector<1x8xf32>
    %62 = vector.broadcast %61 : vector<1x8xf32> to vector<256x8xf32>
    %63 = arith.addf %60, %62 : vector<256x8xf32>
    %64 = arith.negf %63 : vector<256x8xf32>
    %65 = math.exp %64 : vector<256x8xf32>
    %cst_68 = arith.constant 1.000000e+00 : f32
    %66 = vector.broadcast %cst_68 : f32 to vector<256x8xf32>
    %67 = arith.addf %66, %65 : vector<256x8xf32>
    %68 = arith.divf %66, %67 : vector<256x8xf32>
    %69 = arith.mulf %63, %68 : vector<256x8xf32>
    %70 = arith.addf %17, %69 : vector<256x8xf32>
    %71 = arith.truncf %70 : vector<256x8xf32> to vector<256x8xbf16>
    %c0_69 = arith.constant 0 : index
    %c0_70 = arith.constant 0 : index
    %72 = vector.load %arg11[%c0_69, %c0_70] : memref<8x8xbf16, #tpu.memory_space<vmem>>, vector<8x8xbf16>
    %cst_71 = arith.constant dense<0.000000e+00> : vector<256x8xf32>
    %73 = tpu.matmul %71, %72, %cst_71 {dimension_numbers = #tpu.dot_dimension_numbers<[1], [0], [0], [1], [0, 0, 1, 1], [], []>} : vector<256x8xbf16>, vector<8x8xbf16>, vector<256x8xf32> -> vector<256x8xf32>
    %74 = tpu.concatenate %73, %18 in 1 : vector<256x8xf32>, vector<256x8xf32> -> vector<256x16xf32>
    %c0_72 = arith.constant 0 : index
    %c0_73 = arith.constant 0 : index
    %75 = vector.load %arg12[%c0_72, %c0_73] : memref<1x16xf32, #tpu.memory_space<vmem>>, vector<1x16xf32>
    %76 = vector.broadcast %75 : vector<1x16xf32> to vector<256x16xf32>
    %77 = arith.mulf %74, %76 : vector<256x16xf32>
    %c0_74 = arith.constant 0 : index
    %c0_75 = arith.constant 0 : index
    %78 = vector.load %arg13[%c0_74, %c0_75] : memref<1x16xf32, #tpu.memory_space<vmem>>, vector<1x16xf32>
    %79 = vector.broadcast %78 : vector<1x16xf32> to vector<256x16xf32>
    %80 = arith.addf %77, %79 : vector<256x16xf32>
    %cst_76 = arith.constant 0.000000e+00 : f32
    %81 = vector.broadcast %cst_76 : f32 to vector<256x16xf32>
    %82 = arith.cmpf ogt, %80, %81 : vector<256x16xf32>
    %cst_77 = arith.constant 1.000000e-01 : f32
    %83 = vector.broadcast %cst_77 : f32 to vector<256x16xf32>
    %84 = arith.mulf %83, %80 : vector<256x16xf32>
    %85 = arith.select %82, %80, %84 : vector<256x16xi1>, vector<256x16xf32>
    %86 = arith.truncf %85 : vector<256x16xf32> to vector<256x16xbf16>
    %c0_78 = arith.constant 0 : index
    %c0_79 = arith.constant 0 : index
    %87 = vector.load %arg14[%c0_78, %c0_79] : memref<16x16xbf16, #tpu.memory_space<vmem>>, vector<16x16xbf16>
    %cst_80 = arith.constant dense<0.000000e+00> : vector<256x16xf32>
    %88 = tpu.matmul %86, %87, %cst_80 {dimension_numbers = #tpu.dot_dimension_numbers<[1], [0], [0], [1], [0, 0, 1, 1], [], []>} : vector<256x16xbf16>, vector<16x16xbf16>, vector<256x16xf32> -> vector<256x16xf32>
    %c0_81 = arith.constant 0 : index
    %c0_82 = arith.constant 0 : index
    %89 = vector.load %arg15[%c0_81, %c0_82] : memref<1x16xf32, #tpu.memory_space<vmem>>, vector<1x16xf32>
    %90 = vector.broadcast %89 : vector<1x16xf32> to vector<256x16xf32>
    %91 = arith.mulf %88, %90 : vector<256x16xf32>
    %c0_83 = arith.constant 0 : index
    %c0_84 = arith.constant 0 : index
    %92 = vector.load %arg16[%c0_83, %c0_84] : memref<1x16xf32, #tpu.memory_space<vmem>>, vector<1x16xf32>
    %93 = vector.broadcast %92 : vector<1x16xf32> to vector<256x16xf32>
    %94 = arith.addf %91, %93 : vector<256x16xf32>
    %95 = arith.negf %94 : vector<256x16xf32>
    %96 = math.exp %95 : vector<256x16xf32>
    %cst_85 = arith.constant 1.000000e+00 : f32
    %97 = vector.broadcast %cst_85 : f32 to vector<256x16xf32>
    %98 = arith.addf %97, %96 : vector<256x16xf32>
    %99 = arith.divf %97, %98 : vector<256x16xf32>
    %100 = arith.mulf %94, %99 : vector<256x16xf32>
    %101 = vector.shape_cast %100 : vector<256x16xf32> to vector<16x16x16xf32>
    %c0_86 = arith.constant 0 : index
    %c0_87 = arith.constant 0 : index
    %c0_88 = arith.constant 0 : index
    %c0_89 = arith.constant 0 : index
    %102 = vector.load %arg17[%c0_86, %c0_87, %c0_88, %c0_89] : memref<1x16x16x16xf32, #tpu.memory_space<vmem>>, vector<1x16x16x16xf32>
    %103 = vector.shape_cast %102 : vector<1x16x16x16xf32> to vector<16x16x16xf32>
    %104 = vector.shape_cast %101 : vector<16x16x16xf32> to vector<1x16x16x16xf32>
    tpu.vector_store %arg17[%c0_86, %c0_87, %c0_88, %c0_89], %104 {strides = array<i32>} : memref<1x16x16x16xf32, #tpu.memory_space<vmem>>, vector<1x16x16x16xf32>,
    return
  }
  func.func @transform_0(%arg0: i32) -> (i32, i32, i32, i32) {
    %c0_i32 = arith.constant 0 : i32
    %c0_i32_0 = arith.constant 0 : i32
    %c0_i32_1 = arith.constant 0 : i32
    %c0_i32_2 = arith.constant 0 : i32
    return %arg0, %c0_i32, %c0_i32_0, %c0_i32_1 : i32, i32, i32, i32
  }
  func.func @transform_1(%arg0: i32) -> (i32, i32) {
    %c0_i32 = arith.constant 0 : i32
    %c0_i32_0 = arith.constant 0 : i32
    %c0_i32_1 = arith.constant 0 : i32
    return %c0_i32, %c0_i32_0 : i32, i32
  }
  func.func @transform_2(%arg0: i32) -> (i32, i32) {
    %c0_i32 = arith.constant 0 : i32
    %c0_i32_0 = arith.constant 0 : i32
    %c0_i32_1 = arith.constant 0 : i32
    return %c0_i32, %c0_i32_0 : i32, i32
  }
  func.func @transform_3(%arg0: i32) -> (i32, i32) {
    %c0_i32 = arith.constant 0 : i32
    %c0_i32_0 = arith.constant 0 : i32
    %c0_i32_1 = arith.constant 0 : i32
    return %c0_i32, %c0_i32_0 : i32, i32
  }
  func.func @transform_4(%arg0: i32) -> (i32, i32) {
    %c0_i32 = arith.constant 0 : i32
    %c0_i32_0 = arith.constant 0 : i32
    %c0_i32_1 = arith.constant 0 : i32
    return %c0_i32, %c0_i32_0 : i32, i32
  }
  func.func @transform_5(%arg0: i32) -> (i32, i32) {
    %c0_i32 = arith.constant 0 : i32
    %c0_i32_0 = arith.constant 0 : i32
    %c0_i32_1 = arith.constant 0 : i32
    return %c0_i32, %c0_i32_0 : i32, i32
  }
  func.func @transform_6(%arg0: i32) -> (i32, i32) {
    %c0_i32 = arith.constant 0 : i32
    %c0_i32_0 = arith.constant 0 : i32
    %c0_i32_1 = arith.constant 0 : i32
    return %c0_i32, %c0_i32_0 : i32, i32
  }
  func.func @transform_7(%arg0: i32) -> (i32, i32) {
    %c0_i32 = arith.constant 0 : i32
    %c0_i32_0 = arith.constant 0 : i32
    %c0_i32_1 = arith.constant 0 : i32
    return %c0_i32, %c0_i32_0 : i32, i32
  }
  func.func @transform_8(%arg0: i32) -> (i32, i32) {
    %c0_i32 = arith.constant 0 : i32
    %c0_i32_0 = arith.constant 0 : i32
    %c0_i32_1 = arith.constant 0 : i32
    return %c0_i32, %c0_i32_0 : i32, i32
  }
  func.func @transform_9(%arg0: i32) -> (i32, i32) {
    %c0_i32 = arith.constant 0 : i32
    %c0_i32_0 = arith.constant 0 : i32
    %c0_i32_1 = arith.constant 0 : i32
    return %c0_i32, %c0_i32_0 : i32, i32
  }
  func.func @transform_10(%arg0: i32) -> (i32, i32) {
    %c0_i32 = arith.constant 0 : i32
    %c0_i32_0 = arith.constant 0 : i32
    %c0_i32_1 = arith.constant 0 : i32
    return %c0_i32, %c0_i32_0 : i32, i32
  }
  func.func @transform_11(%arg0: i32) -> (i32, i32) {
    %c0_i32 = arith.constant 0 : i32
    %c0_i32_0 = arith.constant 0 : i32
    %c0_i32_1 = arith.constant 0 : i32
    return %c0_i32, %c0_i32_0 : i32, i32
  }
  func.func @transform_12(%arg0: i32) -> (i32, i32) {
    %c0_i32 = arith.constant 0 : i32
    %c0_i32_0 = arith.constant 0 : i32
    %c0_i32_1 = arith.constant 0 : i32
    return %c0_i32, %c0_i32_0 : i32, i32
  }
  func.func @transform_13(%arg0: i32) -> (i32, i32) {
    %c0_i32 = arith.constant 0 : i32
    %c0_i32_0 = arith.constant 0 : i32
    %c0_i32_1 = arith.constant 0 : i32
    return %c0_i32, %c0_i32_0 : i32, i32
  }
  func.func @transform_14(%arg0: i32) -> (i32, i32) {
    %c0_i32 = arith.constant 0 : i32
    %c0_i32_0 = arith.constant 0 : i32
    %c0_i32_1 = arith.constant 0 : i32
    return %c0_i32, %c0_i32_0 : i32, i32
  }
  func.func @transform_15(%arg0: i32) -> (i32, i32) {
    %c0_i32 = arith.constant 0 : i32
    %c0_i32_0 = arith.constant 0 : i32
    %c0_i32_1 = arith.constant 0 : i32
    return %c0_i32, %c0_i32_0 : i32, i32
  }
  func.func @transform_16(%arg0: i32) -> (i32, i32, i32, i32) {
    %c0_i32 = arith.constant 0 : i32
    %c0_i32_0 = arith.constant 0 : i32
    %c0_i32_1 = arith.constant 0 : i32
    %c0_i32_2 = arith.constant 0 : i32
    return %arg0, %c0_i32, %c0_i32_0, %c0_i32_1 : i32, i32, i32, i32
  }
}

</mosaic_0001>

<bundles_post_ra>
// kernel: tpu_custom_call.1
= control target key start
LH: loop header
LB: loop body
LE: loop exit
PB: predicated region body
PF: predicated region fallthrough
CT: control target
= control target key end

     0   :  { %s10272_s0 = inlined_call_operand.hbm [shape: bf16[2,16,16,16], index: 0, kind: input, shape index: {}]   ;;  %s10273_s1 = inlined_call_operand.vmem [shape: bf16[16,16], index: 1, kind: input, shape index: {}]   ;;  %s10274_s2 = inlined_call_operand.vmem [shape: f32[1,8], index: 2, kind: input, shape index: {}]   ;;  %s10275_s3 = inlined_call_operand.vmem [shape: f32[1,8], index: 3, kind: input, shape index: {}]   ;;  %s10276_s4 = inlined_call_operand.vmem [shape: bf16[8,8], index: 4, kind: input, shape index: {}]   ;;  %s10277_s5 = inlined_call_operand.vmem [shape: f32[1,8], index: 5, kind: input, shape index: {}]   ;;  %s10278_s6 = inlined_call_operand.vmem [shape: f32[1,8], index: 6, kind: input, shape index: {}]   ;;  %s10279_s7 = inlined_call_operand.vmem [shape: bf16[72,8], index: 7, kind: input, shape index: {}]   ;;  %s10280_s8 = inlined_call_operand.vmem [shape: f32[1,8], index: 8, kind: input, shape index: {}]   ;;  %s10281_s9 = inlined_call_operand.vmem [shape: f32[1,8], index: 9, kind: input, shape index: {}]   ;;  %s10282_s10 = inlined_call_operand.vmem [shape: bf16[8,8], index: 10, kind: input, shape index: {}]   ;;  %s10283_s11 = inlined_call_operand.vmem [shape: f32[1,16], index: 11, kind: input, shape index: {}]   ;;  %s10284_s12 = inlined_call_operand.vmem [shape: f32[1,16], index: 12, kind: input, shape index: {}]   ;;  %s10285_s13 = inlined_call_operand.vmem [shape: bf16[16,16], index: 13, kind: input, shape index: {}]   ;;  %s10286_s14 = inlined_call_operand.vmem [shape: f32[1,16], index: 14, kind: input, shape index: {}]   ;;  %s10287_s15 = inlined_call_operand.vmem [shape: f32[1,16], index: 15, kind: input, shape index: {}]   ;;  %s10288_s16 = inlined_call_operand.hbm [shape: f32[2,16,16,16], index: 16, kind: output, shape index: {}]  }
   0x1   :  { %10370 = sst [smem:[#allocation85_spill]] %s10272_s0 }
   0x2   :  { %10371 = sst [smem:[#allocation86_spill]] %s10273_s1 }
   0x3   :  { %10372 = sst [smem:[#allocation87_spill]] %s10287_s15 }
   0x4   :  { %10373 = sst [smem:[#allocation88_spill]] %s10288_s16 }
   0x5   :  { %21 = vsyncpa [#allocation4], 0 }
   0x6   :  { %23 = vsyncpa [#allocation4 + $0x1], 0 }
   0x7   :  { %24 = vsyncpa [#allocation5], 0 }
   0x8   :  { %26 = vsyncpa [#allocation5 + $0x1], 0  ;;  %s7640_s21 = smov 0   ;;  %s7642_s22 = smov 0  }
   0x9   :  { %s7644_s23 = smov 0   ;;  %s7646_s24 = smov 0  }
   0xa LB: > { %10374 = sst [smem:[#allocation9_spill]] %s7527_s21  ;;  %s7661_s25 = sadd.s32 4294967295, %s7539_s24   ;;  %s7539_s24 = sphi %s7646_s24, %s10562_s24   ;;  %s7535_s23 = sphi %s7644_s23, %s10564_s23   ;;  %s7531_s22 = sphi %s7642_s22, %s10566_s22   ;;  %s7527_s21 = sphi %s7640_s21, %s10565_s21  }
   0xb   : > { %10375 = sst [smem:[#allocation10_spill]] %s7535_s23  ;;  %s5966_s26 = sadd.s32 4294967294, %s7539_s24  }
   0xc   : > { %10376 = sst [smem:[#allocation11_spill]] %s7661_s25  ;;  %s7665_s27 = sadd.s32 1, %s7539_s24  }
   0xd   : > { %10377 = sst [smem:[#allocation12_spill]] %s7665_s27  ;;  %s39_s28 = sadd.s32 1, %s7535_s23 }
   0xe   : > { %s36_s29 = ssub.s32 %s7539_s24, %s7665_s27  ;;  %p46_p0 = scmp.ne.s32.totalorder %s7535_s23, %s7531_s22 }
   0xf   : > { %p37_p1 = scmp.eq.s32.totalorder %s36_s29, 0  ;;  %p47_p2 = scmp.eq.s32.totalorder %s7539_s24, 0 }
  0x10   : > { %p52_p3 = scmp.ne.s32.totalorder %s7531_s22, %s7527_s21  ;;  %p53_p4 = scmp.eq.s32.totalorder %s7661_s25, 0 }
  0x11   : > { %s7677_s30 = scalar_select %p37_p1, %s7535_s23, %s39_s28  }
  0x12   : > { %p7679_p5 = por %p47_p2, %p46_p0  ;;  %p7683_p6 = por %p53_p4, %p52_p3 }
  0x13   : > { %10378 = sst [smem:[#allocation13_spill]] %s7677_s30  ;;  %p391_p7 = scmp.eq.s32.totalorder %s7661_s25, 1 }
  0x14   : > { %p397_p8 = scmp.eq.s32.totalorder %s5966_s26, 1  ;;  %p6715_p10 = scmp.lt.s32.totalorder %s7539_s24, 2 }
  0x15   : > { %p7690_p11 = por %p391_p7, %p46_p0  ;;  %s462_s20 = sand.u32 1, %s7535_s23  }
  0x16   : > { %p7694_p12 = por %p397_p8, %p52_p3  ;;  %s6397_s28 = sshll.u32 %s7539_s24, 11 }
  0x17   : > { %s10381_s18 = scalar_select %p7690_p11, 1, 0 }
  0x18   : > { %s10383_s19 = scalar_select %p7694_p12, 1, 0 }
  0x19   : > { %10382 = sst [smem:[#allocation14_spill]] %s10381_s18  ;;  %s5969_s29 = sshll.u32 %s462_s20, 7 }
  0x1a   : > { %s10384_s21 = sld [smem:[#allocation85_spill]]  ;;  %s466_s26 = scalar_lea.vmem [#allocation3], %s5969_s29 }
  0x1b   : > { %s473_s25 = sshll.u32 %s466_s26, 4  ;;  %p7707_p13 = pnand %p6715_p10, %p7679_p5  ;;  %s7711_s25 = int_to_ptr.vmem [resolvable:$true] %s473_s25 }
  0x1c   : > { %s7713_s23 = scalar_lea.sflag [#allocation4], %s462_s20 }
  0x1d   : > { %p7445_p1 = pneg %p7707_p13 }
  0x20   : > { %s10385_s16 = smov %s10384_s21  ;;  %s7703_s15 = scalar_lea.hbm %s10384_s21, %s6397_s28 }
  0x21   : > { %s7443_s27 = scalar_lea.hbm %s7703_s15, 2048  ;;  %s7448_s0 = scalar_lea.hbm %s10385_s16, 4096 }
  0x22   : > { %p7444_p0 = scmp.ne.s32.totalorder %s7703_s15, %s7443_s27  ;;  %p7449_p4 = scmp.lt.u32.totalorder %s7703_s15, %s10385_s16 }
  0x23   : > { %p7450_p5 = scmp.lt.u32.totalorder %s7448_s0, %s7443_s27  ;;  %p7452_p8 = scmp.lt.u32.totalorder %s7443_s27, %s7703_s15 }
  0x24   : > { %p7446_p2 = pnand %p7445_p1, %p7444_p0 }
  0x25   : > { %p7451_p7 = por %p7450_p5, %p7449_p4 }
  0x26   : > { %p7447_p3 = pneg %p7446_p2 }
  0x27   : > { %p7453_p10 = por %p7452_p8, %p7451_p7 }
  0x29   : > { %p7454_p9 = pnand %p7453_p10, %p7447_p3 }
  0x2b   : > { %7457 = shalt.err (!%p7454_p9)
}
  0x2c   : > { %s7458_s20 = scalar_lea.vmem %s7711_s25, 2048  ;;  %s7541_s26 = smov [#allocation3]  }
  0x2d   : > { %p7459_p0 = scmp.ne.s32.totalorder %s7711_s25, %s7458_s20  ;;  %s7463_s21 = sshll.u32 %s7541_s26, 4  ;;  %s7464_s21 = int_to_ptr.vmem [resolvable:$false] %s7463_s21 }
  0x2e   : > { %s7465_s30 = scalar_lea.vmem %s7464_s21, 4096  ;;  %p7466_p11 = scmp.lt.s32.totalorder %s7711_s25, %s7464_s21 }
  0x2f   : > { %p7461_p2 = pnand %p7459_p0, %p7445_p1  ;;  %p7467_p4 = scmp.lt.s32.totalorder %s7465_s30, %s7458_s20 }
  0x31   : > { %p7462_p12 = pneg %p7461_p2  ;;  %p7468_p5 = por %p7467_p4, %p7466_p11 }
  0x33   : > { %p7469_p7 = pnand %p7468_p5, %p7462_p12 }
  0x35   : > { %7472 = shalt.err (!%p7469_p7)
}
  0x36   : > { %s7542_s27 = smov 64   ;;  %s7543_s0 = smov 4  }
  0x37   : > { %6710 = dma.hbm_to_vmem [thread:$0]  (!%p7707_p13), %s7703_s15, 2048, %s7711_s25, %s7713_s23, %s7542_s27, %s7542_s27, %s7543_s0  }
  0x38   : > { %p5972_p9 = scmp.ge.s32.totalorder %s7539_s24, 1  ;;  %p481_p1 = scmp.lt.s32.totalorder %s7539_s24, 3 }
  0x3a   : > { %p482_p3 = pnand %p5972_p9, %p481_p1 }
  0x3c   : > { %485 = sbr.rel (%p482_p3) target bundleno = 1735 (0x6c7), region = 84 }
  0x43   : > { %s7744_s28 = sand.u32 1, %s7531_s22  }
  0x44   : > { %s5973_s29 = sshll.u32 %s7744_s28, 7  ;;  %s488_s20 = scalar_lea.sflag [#allocation4], %s7744_s28 }
  0x45   : > { %s7748_s26 = scalar_lea.vmem [#allocation3], %s5973_s29 }
  0x46   : > { %7518 = dma.done.wait (%p7683_p6), %s488_s20, 2048  }
  0x47   : > { %7520 = vsyncadd (%p7683_p6), %s488_s20, 4294965248  ;;  %s10387_s1 = sld [smem:[#allocation86_spill]]  ;;  %vm661_vm0 = vcmask 130048   ;;  %v6762_v1 = vld [vmem:[%s7748_s26] sm:$0xff]   ;;  %v6763_v2 = vld [vmem:[%s7748_s26 + $0x8] sm:$0xff]   ;;  %vm1239_vm1 = vcmask 1043456  }
  0x48   : > { %6522 = vmatprep.mubr.msk.bf16.mxu0 %vm661_vm0, %v6762_v1  ;;  %v6764_v3 = vld [vmem:[%s7748_s26 + $0x10] sm:$0xff]   ;;  %v6765_v4 = vld [vmem:[%s7748_s26 + $0x18] sm:$0xff]   ;;  %v6766_v5 = vld [vmem:[%s7748_s26 + $0x20] sm:$0xff]   ;;  %vm1190_vm2 = vcmask 64512   ;;  %vm1709_vm3 = vcmask 57344   ;;  %vm1706_vm8 = vcmask 60416  }
  0x49   : > { %v6770_v6 = vld [vmem:[%s7748_s26 + $0x40] sm:$0xff]   ;;  %v6771_v7 = vld [vmem:[%s7748_s26 + $0x48] sm:$0xff]   ;;  %v6772_v8 = vld [vmem:[%s7748_s26 + $0x50] sm:$0xff]   ;;  %vm1717_vm4 = vsmask.f32 256  ;;  %s7545_s0 = smov 48  }
  0x4a   : > { %6538 = vmatprep.mubr.msk.bf16.mxu1 %vm661_vm0, %v6770_v6  ;;  %v6773_v9 = vld [vmem:[%s7748_s26 + $0x58] sm:$0xff]   ;;  %v6767_v10 = vld [vmem:[%s7748_s26 + $0x28] sm:$0xff]   ;;  %v6774_v11 = vld [vmem:[%s7748_s26 + $0x60] sm:$0xff]   ;;  %vm1767_vm6 = vsmask.f32 7938  ;;  %vm2943_vm9 = vcmask 1046528  }
  0x4b   : > { %v6768_v12 = vld [vmem:[%s7748_s26 + $0x30] sm:$0xff]   ;;  %v6775_v13 = vld [vmem:[%s7748_s26 + $0x68] sm:$0xff]   ;;  %v6769_v15 = vld [vmem:[%s7748_s26 + $0x38] sm:$0xff]   ;;  %vm2670_vm10 = vsmask.f32 7424  ;;  %s7546_s29 = smov 16  }
  0x4c   : > { %v6776_v14 = vld [vmem:[%s7748_s26 + $0x70] sm:$0xff]   ;;  %v6777_v16 = vld [vmem:[%s7748_s26 + $0x78] sm:$0xff]   ;;  %v1189_v17 = vld [vmem:[%s10276_s4] sm:$0xf]  ;;  %s10369_s20 = smov 8   ;;  %s7548_s17 = smov 24  }
  0x4d   : > { %v6761_v0 = vld [vmem:[%s10387_s1] sm:$0xff]   ;;  %v1241_v18 = vsel %vm1239_vm1, %v1189_v17, 0  ;;  %vm8212_vm5 = vmand %vm1709_vm3, %vm1717_vm4  ;;  %vm1913_vm11 = vsmask.f32 4368  ;;  %s7549_s18 = smov 40   ;;  %s7550_s21 = smov 64  }
  0x4e   : > { %6520 = vmatprep.subr.bf16.mxu0 %v6761_v0  ;;  %6698 = vmatprep.subr.bf16.mxu1 %v6761_v0  ;;  %v7797_v19 = vld [vmem:[%s10274_s2] ss:$0 sm:$0xff]  ;;  %vm8222_vm7 = vmand %vm1709_vm3, %vm1767_vm6  ;;  %s7551_s30 = smov 32   ;;  %s7552_s27 = smov 56   ;;  %vm4112_vm14 = vcmask 195584   ;;  %vm4145_vm15 = vcmask 261120  }
  0x4f   : > { %6521 = vmatpush3.bf16.msra.mxu0 %v6761_v0  ;;  %6699 = vmatpush3.bf16.msra.mxu1 %v6761_v0  ;;  %v7804_v21 = vld [vmem:[%s10275_s3] ss:$0 sm:$0xff]  ;;  %vm8396_vm12 = vmand %vm1706_vm8, %vm1767_vm6  ;;  %vm4277_vm6 = vcmask 523264   ;;  %s10553_s25 = sld [smem:[#allocation11_spill]]  ;;  %s10554_s15 = sld [smem:[#allocation14_spill]] }
  0x50   : > { %6700 = vmatprep.subr.msk.bf16.mxu1 %vm1239_vm1, %v1189_v17  ;;  %vm8403_vm13 = vmor %vm1717_vm4, %vm1913_vm11  ;;  %vm4211_vm4 = vcmask 392192  }
  0x52   : > { %6523 = vmatmul.mubr.msk.bf16.vlgmr.msra.gmra.mrb[0].mxu0 %vm661_vm0, %v6763_v2  ;;  %6539 = vmatmul.mubr.msk.bf16.vlgmr.msra.gmra.mrb[0].mxu1 %vm661_vm0, %v6771_v7 }
  0x53   : > { %6526 = vmatprep.mubr.msk.bf16.mxu0 %vm661_vm0, %v6764_v3  ;;  %6542 = vmatprep.mubr.msk.bf16.mxu1 %vm661_vm0, %v6772_v8 }
  0x54   : > { %6555 = vmatpush3.bf16.msra.mxu1 %v1241_v18 }
  0x55   : > { %s6430_s26 = sshll.u32 %s10553_s25, 12  ;;  %p10556_p11 = scmp.ne.s32.totalorder %s10554_s15, 0 }
  0x56   : > { %s7553_s25 = smov [#allocation6]  }
  0x5a   : > { %6527 = vmatmul.mubr.msk.bf16.gmra.mrb[4].mxu0 %vm661_vm0, %v6765_v4  ;;  %6543 = vmatmul.mubr.msk.bf16.gmra.mrb[4].mxu1 %vm661_vm0, %v6773_v9 }
  0x5b   : > { %6530 = vmatprep.mubr.msk.bf16.mxu0 %vm661_vm0, %v6766_v5  ;;  %6546 = vmatprep.mubr.msk.bf16.mxu1 %vm661_vm0, %v6774_v11 }
  0x62   : > { %6531 = vmatmul.mubr.msk.bf16.gmra.mrb[8].mxu0 %vm661_vm0, %v6767_v10  ;;  %6547 = vmatmul.mubr.msk.bf16.gmra.mrb[8].mxu1 %vm661_vm0, %v6775_v13 }
  0x63   : > { %6534 = vmatprep.mubr.msk.bf16.mxu0 %vm661_vm0, %v6768_v12  ;;  %6550 = vmatprep.mubr.msk.bf16.mxu1 %vm661_vm0, %v6776_v14 }
  0x6a   : > { %6535 = vmatmul.mubr.msk.bf16.gmra.mrb[12].mxu0 %vm661_vm0, %v6769_v15  ;;  %6551 = vmatmul.mubr.msk.bf16.gmra.mrb[12].mxu1 %vm661_vm0, %v6777_v16 }
 0x125   : > { %v7799_v20 = vpop.f32.mrb[0].mxu0  ;;  %v7834_v35 = vpop.f32.mrb[0].mxu1 }
 0x126   : > { %10388 = vst [vmem:[#allocation15_spill] sm:$0xff] %v7799_v20  ;;  %v880_v22 = vmul.f32 %v7799_v20, %v7797_v19  ;;  %v7808_v23 = vpop.f32.mrb[1].mxu0  ;;  %10392 = vst [vmem:[#allocation19_spill] sm:$0xff] %v7834_v35  ;;  %v896_v37 = vmul.f32 %v7834_v35, %v7797_v19  ;;  %v7839_v38 = vpop.f32.mrb[1].mxu1 }
 0x127   : > { %10389 = vst [vmem:[#allocation16_spill] sm:$0xff] %v7808_v23  ;;  %v878_v24 = vmul.f32 %v7797_v19, %v7808_v23  ;;  %v7812_v25 = vpop.f32.mrb[2].mxu0  ;;  %10393 = vst [vmem:[#allocation20_spill] sm:$0xff] %v7839_v38  ;;  %v894_v41 = vmul.f32 %v7797_v19, %v7839_v38  ;;  %v7846_v42 = vpop.f32.mrb[2].mxu1 }
 0x128   : > { %10390 = vst [vmem:[#allocation17_spill] sm:$0xff] %v7812_v25  ;;  %v7815_v26 = vadd.f32 %v7804_v21, %v880_v22  ;;  %v881_v27 = vmul.f32 %v7812_v25, %v7797_v19  ;;  %v7819_v28 = vpop.f32.mrb[3].mxu0  ;;  %10395 = vst [vmem:[#allocation22_spill] sm:$0xff] %v7846_v42  ;;  %v7853_v45 = vadd.f32 %v7804_v21, %v896_v37  ;;  %v7857_v47 = vpop.f32.mrb[3].mxu1 }
 0x129   : > { %10391 = vst [vmem:[#allocation18_spill] sm:$0xff] %v7819_v28  ;;  %v7822_v29 = vadd.f32 %v7804_v21, %v878_v24  ;;  %v879_v30 = vmul.f32 %v7797_v19, %v7819_v28  ;;  %v897_v46 = vmul.f32 %v7846_v42, %v7797_v19  ;;  %10397 = vst [vmem:[#allocation24_spill] sm:$0xff] %v7857_v47  ;;  %v1802_v28 = vld [vmem:[#allocation2 + $0x98] sm:$0x1] }
 0x12a   : > { %v6012_v31 = vmul.f32 -1.442695, %v7815_v26  ;;  %v7828_v32 = vadd.f32 %v7804_v21, %v881_v27  ;;  %v7864_v50 = vadd.f32 %v7804_v21, %v894_v41  ;;  %v6028_v54 = vmul.f32 -1.442695, %v7853_v45 }
 0x12b   : > { %v6010_v33 = vmul.f32 -1.442695, %v7822_v29  ;;  %v7832_v34 = vadd.f32 %v7804_v21, %v879_v30  ;;  %v7875_v55 = vadd.f32 %v7804_v21, %v897_v46 }
 0x12c   : > { %6928 = vpow2.f32 %v6012_v31  ;;  %v6013_v36 = vmul.f32 -1.442695, %v7828_v32  ;;  %v6026_v58 = vmul.f32 -1.442695, %v7864_v50 }
 0x12d   : > { %6930 = vpow2.f32 %v6010_v33  ;;  %v6011_v39 = vmul.f32 -1.442695, %v7832_v34  ;;  %v7842_v40 = vpop.f32.mrb[4].mxu0  ;;  %v7891_v63 = vpop.f32.mrb[4].mxu1  ;;  %v6029_v1 = vmul.f32 -1.442695, %v7875_v55 }
 0x12e   : > { %10394 = vst [vmem:[#allocation21_spill] sm:$0xff] %v7842_v40  ;;  %6932 = vpow2.f32 %v6013_v36  ;;  %v884_v43 = vmul.f32 %v7842_v40, %v7797_v19  ;;  %v7850_v44 = vpop.f32.mrb[5].mxu0  ;;  %10400 = vst [vmem:[#allocation27_spill] sm:$0xff] %v7891_v63  ;;  %v7895_v2 = vpop.f32.mrb[5].mxu1 }
 0x12f   : > { %10396 = vst [vmem:[#allocation23_spill] sm:$0xff] %v7850_v44  ;;  %6934 = vpow2.f32 %v6011_v39  ;;  %v882_v48 = vmul.f32 %v7797_v19, %v7850_v44  ;;  %v7861_v49 = vpop.f32.mrb[6].mxu0  ;;  %10401 = vst [vmem:[#allocation28_spill] sm:$0xff] %v7895_v2  ;;  %v7900_v5 = vpop.f32.mrb[6].mxu1 }
 0x130   : > { %10398 = vst [vmem:[#allocation25_spill] sm:$0xff] %v7861_v49  ;;  %v7867_v51 = vadd.f32 %v7804_v21, %v884_v43  ;;  %v885_v52 = vmul.f32 %v7861_v49, %v7797_v19  ;;  %v7871_v53 = vpop.f32.mrb[7].mxu0  ;;  %6936 = vpow2.f32 %v6028_v54  ;;  %10403 = vst [vmem:[#allocation30_spill] sm:$0xff] %v7900_v5  ;;  %v7906_v9 = vpop.f32.mrb[7].mxu1  ;;  %v1749_v49 = vld [vmem:[#allocation2 + $0x84] sm:$0x1] }
 0x131   : > { %10399 = vst [vmem:[#allocation26_spill] sm:$0xff] %v7871_v53  ;;  %v7878_v56 = vadd.f32 %v7804_v21, %v882_v48  ;;  %v883_v57 = vmul.f32 %v7797_v19, %v7871_v53  ;;  %6938 = vpow2.f32 %v6026_v58  ;;  %10405 = vst [vmem:[#allocation32_spill] sm:$0xff] %v7906_v9 }
 0x132   : > { %v6016_v59 = vmul.f32 -1.442695, %v7867_v51  ;;  %v7885_v60 = vadd.f32 %v7804_v21, %v885_v52 }
 0x133   : > { %v6014_v61 = vmul.f32 -1.442695, %v7878_v56  ;;  %v7889_v62 = vadd.f32 %v7804_v21, %v883_v57 }
 0x134   : > { %6940 = vpow2.f32 %v6016_v59  ;;  %v6017_v0 = vmul.f32 -1.442695, %v7885_v60 }
 0x135   : > { %6942 = vpow2.f32 %v6014_v61  ;;  %v6015_v3 = vmul.f32 -1.442695, %v7889_v62  ;;  %v7898_v4 = vpop.f32.mrb[8].mxu0  ;;  %v7932_v41 = vpop.f32.mrb[8].mxu1 }
 0x136   : > { %10402 = vst [vmem:[#allocation29_spill] sm:$0xff] %v7898_v4  ;;  %v6929_v6 = vpop.eup %6928  ;;  %6944 = vpow2.f32 %v6017_v0  ;;  %v888_v7 = vmul.f32 %v7898_v4, %v7797_v19  ;;  %v7904_v8 = vpop.f32.mrb[9].mxu0  ;;  %10408 = vst [vmem:[#allocation35_spill] sm:$0xff] %v7932_v41 }
 0x137   : > { %10404 = vst [vmem:[#allocation31_spill] sm:$0xff] %v7904_v8  ;;  %v6931_v10 = vpop.eup %6930  ;;  %v1047_v11 = vadd.f32 1.0, %v6929_v6  ;;  %6946 = vpow2.f32 %v6015_v3  ;;  %v886_v12 = vmul.f32 %v7797_v19, %v7904_v8  ;;  %v7910_v13 = vpop.f32.mrb[10].mxu0 }
 0x138   : > { %10406 = vst [vmem:[#allocation33_spill] sm:$0xff] %v7910_v13  ;;  %v6933_v14 = vpop.eup %6932  ;;  %v1045_v15 = vadd.f32 1.0, %v6931_v10  ;;  %v7913_v16 = vadd.f32 %v7804_v21, %v888_v7  ;;  %v889_v17 = vmul.f32 %v7910_v13, %v7797_v19  ;;  %v7917_v18 = vpop.f32.mrb[11].mxu0  ;;  %6948 = vpow2.f32 %v6029_v1 }
 0x139   : > { %10407 = vst [vmem:[#allocation34_spill] sm:$0xff] %v7917_v18  ;;  %v6935_v22 = vpop.eup %6934  ;;  %6950 = vrcp.f32 %v1047_v11  ;;  %v1048_v24 = vadd.f32 1.0, %v6933_v14  ;;  %v7920_v27 = vadd.f32 %v7804_v21, %v886_v12  ;;  %v887_v30 = vmul.f32 %v7797_v19, %v7917_v18  ;;  %v7935_v48 = vpop.f32.mrb[9].mxu1 }
 0x13a   : > { %6952 = vrcp.f32 %v1045_v15  ;;  %v1046_v31 = vadd.f32 1.0, %v6935_v22  ;;  %v6020_v33 = vmul.f32 -1.442695, %v7913_v16  ;;  %v7926_v36 = vadd.f32 %v7804_v21, %v889_v17  ;;  %v6937_v43 = vpop.eup %6936  ;;  %10409 = vst [vmem:[#allocation36_spill] sm:$0xff] %v7935_v48  ;;  %v7942_v58 = vpop.f32.mrb[10].mxu1 }
 0x13b   : > { %6954 = vrcp.f32 %v1048_v24  ;;  %v6018_v37 = vmul.f32 -1.442695, %v7920_v27  ;;  %v7930_v39 = vadd.f32 %v7804_v21, %v887_v30  ;;  %v7937_v52 = vpop.eup %6938  ;;  %10411 = vst [vmem:[#allocation38_spill] sm:$0xff] %v7942_v58  ;;  %v895_v1 = vmul.f32 %v7797_v19, %v7857_v47  ;;  %v7950_v3 = vpop.f32.mrb[11].mxu1 }
 0x13c   : > { %6956 = vrcp.f32 %v1046_v31  ;;  %v6021_v46 = vmul.f32 -1.442695, %v7926_v36  ;;  %10413 = vst [vmem:[#allocation40_spill] sm:$0xff] %v7950_v3  ;;  %v900_v12 = vmul.f32 %v7891_v63, %v7797_v19 }
 0x13d   : > { %6958 = vpow2.f32 %v6020_v33  ;;  %v6019_v54 = vmul.f32 -1.442695, %v7930_v39  ;;  %v7940_v57 = vpop.f32.mrb[12].mxu0 }
 0x13e   : > { %10410 = vst [vmem:[#allocation37_spill] sm:$0xff] %v7940_v57  ;;  %v6941_v59 = vpop.eup %6940  ;;  %6960 = vpow2.f32 %v6018_v37  ;;  %v892_v61 = vmul.f32 %v7940_v57, %v7797_v19  ;;  %v7946_v0 = vpop.f32.mrb[13].mxu0 }
 0x13f   : > { %10412 = vst [vmem:[#allocation39_spill] sm:$0xff] %v7946_v0  ;;  %v6943_v6 = vpop.eup %6942  ;;  %v1051_v7 = vadd.f32 1.0, %v6941_v59  ;;  %6962 = vpow2.f32 %v6021_v46  ;;  %v890_v10 = vmul.f32 %v7797_v19, %v7946_v0  ;;  %v7954_v11 = vpop.f32.mrb[14].mxu0 }
 0x140   : > { %10414 = vst [vmem:[#allocation41_spill] sm:$0xff] %v7954_v11  ;;  %v6945_v14 = vpop.eup %6944  ;;  %v1049_v15 = vadd.f32 1.0, %v6943_v6  ;;  %6964 = vpow2.f32 %v6019_v54  ;;  %v7959_v17 = vadd.f32 %v7804_v21, %v892_v61  ;;  %v893_v22 = vmul.f32 %v7954_v11, %v7797_v19  ;;  %v7963_v24 = vpop.f32.mrb[15].mxu0 }
 0x141   : > { %10415 = vst [vmem:[#allocation42_spill] sm:$0xff] %v7963_v24  ;;  %v6947_v30 = vpop.eup %6946  ;;  %6966 = vrcp.f32 %v1051_v7  ;;  %v1052_v31 = vadd.f32 1.0, %v6945_v14  ;;  %v7966_v33 = vadd.f32 %v7804_v21, %v890_v10  ;;  %v891_v37 = vmul.f32 %v7797_v19, %v7963_v24  ;;  %v7980_v14 = vpop.f32.mrb[12].mxu1 }
 0x142   : > { %v6949_v46 = vpop.eup %6948  ;;  %6968 = vrcp.f32 %v1049_v15  ;;  %v1050_v54 = vadd.f32 1.0, %v6947_v30  ;;  %v6024_v59 = vmul.f32 -1.442695, %v7959_v17  ;;  %v7972_v61 = vadd.f32 %v7804_v21, %v893_v22  ;;  %10416 = vst [vmem:[#allocation43_spill] sm:$0xff] %v7980_v14  ;;  %v7985_v30 = vpop.f32.mrb[13].mxu1 }
 0x143   : > { %v6951_v6 = vpop.eup %6950  ;;  %6970 = vrcp.f32 %v1052_v31  ;;  %v6022_v63 = vmul.f32 -1.442695, %v7966_v33  ;;  %v7976_v7 = vadd.f32 %v7804_v21, %v891_v37  ;;  %v898_v10 = vmul.f32 %v7797_v19, %v7895_v2  ;;  %10417 = vst [vmem:[#allocation44_spill] sm:$0xff] %v7985_v30  ;;  %v7988_v38 = vpop.f32.mrb[14].mxu1 }
 0x144   : > { %v6953_v47 = vpop.eup %6952  ;;  %6972 = vrcp.f32 %v1050_v54  ;;  %v6025_v15 = vmul.f32 -1.442695, %v7972_v61  ;;  %v901_v22 = vmul.f32 %v7900_v5, %v7797_v19  ;;  %v1063_v37 = vadd.f32 1.0, %v6937_v43  ;;  %10418 = vst [vmem:[#allocation45_spill] sm:$0xff] %v7988_v38  ;;  %v7999_v24 = vpop.f32.mrb[15].mxu1 }
 0x145   : > { %v6955_v31 = vpop.eup %6954  ;;  %6974 = vpow2.f32 %v6024_v59  ;;  %v6023_v42 = vmul.f32 -1.442695, %v7976_v7  ;;  %v7994_v54 = vadd.f32 %v7804_v21, %v895_v1  ;;  %v7997_v5 = vadd.f32 %v7804_v21, %v900_v12  ;;  %10420 = vst [vmem:[#allocation47_spill] sm:$0xff] %v7999_v24 }
 0x146   : > { %v6957_v2 = vpop.eup %6956  ;;  %v7991_v35 = vmul.f32 %v6955_v31, %v7828_v32  ;;  %6976 = vpow2.f32 %v6022_v63  ;;  %v8002_v11 = vmul.f32 %v6953_v47, %v7822_v29  ;;  %v8008_v32 = vadd.f32 %v7804_v21, %v898_v10 }
 0x147   : > { %v6959_v59 = vpop.eup %6958  ;;  %v8005_v43 = vmul.f32 %v6957_v2, %v7832_v34  ;;  %6978 = vpow2.f32 %v6025_v15  ;;  %v8011_v1 = vmul.f32 %v6951_v6, %v7815_v26  ;;  %v8014_v12 = vadd.f32 %v7804_v21, %v901_v22 }
 0x148   : > { %10419 = vst [vmem:[#allocation46_spill] sm:$0xff] %v7991_v35  ;;  %10421 = vst [vmem:[#allocation48_spill] sm:$0xff] %v8002_v11  ;;  %v6961_v63 = vpop.eup %6960  ;;  %v1055_v31 = vadd.f32 1.0, %v6959_v59  ;;  %6980 = vpow2.f32 %v6023_v42  ;;  %v899_v34 = vmul.f32 %v7797_v19, %v7906_v9  ;;  %v1061_v42 = vadd.f32 1.0, %v7937_v52 }
 0x149   : > { %10422 = vst [vmem:[#allocation49_spill] sm:$0xff] %v8005_v43  ;;  %10423 = vst [vmem:[#allocation50_spill] sm:$0xff] %v8011_v1  ;;  %v6963_v0 = vpop.eup %6962  ;;  %v1053_v57 = vadd.f32 1.0, %v6961_v63  ;;  %v1173_v29 = vpack.c.bf16 %v8005_v43, %v8002_v11  ;;  %6982 = vrcp.f32 %v1063_v37  ;;  %v1174_v2 = vpack.c.bf16 %v7991_v35, %v8011_v1 }
 0x14a   : > { %v6965_v47 = vpop.eup %6964  ;;  %6984 = vrcp.f32 %v1055_v31  ;;  %v1056_v26 = vadd.f32 1.0, %v6963_v0  ;;  %v1064_v15 = vadd.f32 1.0, %v6949_v46  ;;  %v6027_v37 = vmul.f32 -1.442695, %v7994_v54 }
 0x14b   : > { %v6967_v6 = vpop.eup %6966  ;;  %6986 = vrcp.f32 %v1053_v57  ;;  %v1054_v10 = vadd.f32 1.0, %v6965_v47  ;;  %6556 = vmatprep.mubr.msk.bf16.mxu1 %vm1190_vm2, %v1173_v29  ;;  %v6032_v59 = vmul.f32 -1.442695, %v7997_v5  ;;  %v6030_v0 = vmul.f32 -1.442695, %v8008_v32 }
 0x14c   : > { %v6969_v22 = vpop.eup %6968  ;;  %6988 = vrcp.f32 %v1056_v26  ;;  %6557 = vmatmul.mubr.msk.bf16.vlgmr.msra.gmra.mrb[16].mxu1 %vm1190_vm2, %v1174_v2  ;;  %v6033_v52 = vmul.f32 -1.442695, %v8014_v12  ;;  %v904_v57 = vmul.f32 %v7932_v41, %v7797_v19  ;;  %v8035_v29 = vadd.f32 %v7804_v21, %v899_v34 }
 0x14d   : > { %v6971_v63 = vpop.eup %6970  ;;  %6990 = vrcp.f32 %v1054_v10  ;;  %v902_v47 = vmul.f32 %v7797_v19, %v7935_v48  ;;  %v8040_v26 = vmul.f32 %v6969_v22, %v7878_v56  ;;  %v905_v41 = vmul.f32 %v7942_v58, %v7797_v19 }
 0x14e   : > { %v6973_v31 = vpop.eup %6972  ;;  %v8032_v46 = vmul.f32 %v6971_v63, %v7885_v60  ;;  %6992 = vrcp.f32 %v1061_v42  ;;  %v8048_v42 = vmul.f32 %v6967_v6, %v7867_v51  ;;  %v903_v63 = vmul.f32 %v7797_v19, %v7950_v3 }
 0x14f   : > { %v6975_v2 = vpop.eup %6974  ;;  %10425 = vst [vmem:[#allocation52_spill] sm:$0xff] %v8040_v26  ;;  %v8043_v10 = vmul.f32 %v6973_v31, %v7889_v62  ;;  %6994 = vrcp.f32 %v1064_v15  ;;  %v8055_v62 = vadd.f32 %v7804_v21, %v904_v57  ;;  %v8060_v6 = vadd.f32 %v7804_v21, %v902_v47 }
 0x150   : > { %10424 = vst [vmem:[#allocation51_spill] sm:$0xff] %v8032_v46  ;;  %v6977_v60 = vpop.eup %6976  ;;  %10427 = vst [vmem:[#allocation54_spill] sm:$0xff] %v8048_v42  ;;  %v1059_v34 = vadd.f32 1.0, %v6975_v2  ;;  %6996 = vpow2.f32 %v6027_v37  ;;  %v1176_v51 = vpack.c.bf16 %v8032_v46, %v8048_v42  ;;  %v908_v57 = vmul.f32 %v7980_v14, %v7797_v19 }
 0x151   : > { %10426 = vst [vmem:[#allocation53_spill] sm:$0xff] %v8043_v10  ;;  %v6979_v48 = vpop.eup %6978  ;;  %v1057_v9 = vadd.f32 1.0, %v6977_v60  ;;  %v1175_v56 = vpack.c.bf16 %v8043_v10, %v8040_v26  ;;  %6998 = vpow2.f32 %v6032_v59  ;;  %v8066_v59 = vadd.f32 %v7804_v21, %v905_v41 }
 0x152   : > { %v6981_v15 = vpop.eup %6980  ;;  %7000 = vrcp.f32 %v1059_v34  ;;  %v1060_v22 = vadd.f32 1.0, %v6979_v48  ;;  %v6031_v48 = vmul.f32 -1.442695, %v8035_v29  ;;  %v8073_v47 = vadd.f32 %v7804_v21, %v903_v63 }
 0x153   : > { %v8062_v37 = vpop.eup %6982  ;;  %7002 = vrcp.f32 %v1057_v9  ;;  %v1058_v31 = vadd.f32 1.0, %v6981_v15  ;;  %6560 = vmatprep.mubr.msk.bf16.mxu1 %vm1190_vm2, %v1175_v56  ;;  %v906_v9 = vmul.f32 %v7797_v19, %v7985_v30  ;;  %v6036_v41 = vmul.f32 -1.442695, %v8055_v62 }
 0x154   : > { %v6985_v2 = vpop.eup %6984  ;;  %7004 = vrcp.f32 %v1060_v22  ;;  %6561 = vmatmul.mubr.msk.bf16.gmra.mrb[20].mxu1 %vm1190_vm2, %v1176_v51  ;;  %v909_v56 = vmul.f32 %v7988_v38, %v7797_v19  ;;  %v6034_v63 = vmul.f32 -1.442695, %v8060_v6  ;;  %v907_v51 = vmul.f32 %v7797_v19, %v7999_v24 }
 0x155   : > { %v6987_v60 = vpop.eup %6986  ;;  %v8078_v34 = vmul.f32 %v6985_v2, %v7913_v16  ;;  %7006 = vrcp.f32 %v1058_v31  ;;  %v6037_v31 = vmul.f32 -1.442695, %v8066_v59  ;;  %v8094_v2 = vadd.f32 %v7804_v21, %v908_v57 }
 0x156   : > { %v6989_v15 = vpop.eup %6988  ;;  %v8084_v22 = vmul.f32 %v6987_v60, %v7920_v27  ;;  %7008 = vpow2.f32 %v6030_v0  ;;  %v6035_v0 = vmul.f32 -1.442695, %v8073_v47  ;;  %v8101_v60 = vadd.f32 %v7804_v21, %v906_v9 }
 0x157   : > { %10428 = vst [vmem:[#allocation55_spill] sm:$0xff] %v8078_v34  ;;  %v6991_v30 = vpop.eup %6990  ;;  %v8090_v16 = vmul.f32 %v6989_v15, %v7926_v36  ;;  %7010 = vpow2.f32 %v6033_v52  ;;  %v8106_v52 = vadd.f32 %v7804_v21, %v909_v56  ;;  %v6040_v9 = vmul.f32 -1.442695, %v8094_v2 }
 0x158   : > { %10429 = vst [vmem:[#allocation56_spill] sm:$0xff] %v8084_v22  ;;  %v6993_v38 = vpop.eup %6992  ;;  %v8097_v27 = vmul.f32 %v6991_v30, %v7930_v39  ;;  %7012 = vpow2.f32 %v6031_v48  ;;  %v8111_v39 = vadd.f32 %v7804_v21, %v907_v51  ;;  %v6038_v56 = vmul.f32 -1.442695, %v8101_v60 }
 0x159   : > { %10430 = vst [vmem:[#allocation57_spill] sm:$0xff] %v8090_v16  ;;  %v6995_v19 = vpop.eup %6994  ;;  %v1178_v36 = vpack.c.bf16 %v8090_v16, %v8078_v34  ;;  %7014 = vpow2.f32 %v6036_v41  ;;  %v6041_v21 = vmul.f32 -1.442695, %v8106_v52 }
 0x15a   : > { %10431 = vst [vmem:[#allocation58_spill] sm:$0xff] %v8097_v27  ;;  %v6997_v57 = vpop.eup %6996  ;;  %v1177_v15 = vpack.c.bf16 %v8097_v27, %v8084_v22  ;;  %7016 = vpow2.f32 %v6034_v63 }
 0x15b   : > { %v6999_v30 = vpop.eup %6998  ;;  %v1062_v48 = vadd.f32 1.0, %v6997_v57  ;;  %7018 = vpow2.f32 %v6037_v31  ;;  %v6039_v31 = vmul.f32 -1.442695, %v8111_v39 }
 0x15c   : > { %v7001_v24 = vpop.eup %7000  ;;  %6564 = vmatprep.mubr.msk.bf16.mxu1 %vm1190_vm2, %v1177_v15  ;;  %v1067_v41 = vadd.f32 1.0, %v6999_v30  ;;  %7020 = vpow2.f32 %v6035_v0 }
 0x15d   : > { %v7003_v14 = vpop.eup %7002  ;;  %v8117_v3 = vmul.f32 %v7001_v24, %v7959_v17  ;;  %6565 = vmatmul.mubr.msk.bf16.gmra.mrb[24].mxu1 %vm1190_vm2, %v1178_v36  ;;  %7022 = vrcp.f32 %v1062_v48 }
 0x15e   : > { %v7005_v63 = vpop.eup %7004  ;;  %v8122_v51 = vmul.f32 %v7003_v14, %v7966_v33  ;;  %7024 = vrcp.f32 %v1067_v41 }
 0x15f   : > { %10432 = vst [vmem:[#allocation59_spill] sm:$0xff] %v8117_v3  ;;  %v7007_v57 = vpop.eup %7006  ;;  %v8126_v0 = vmul.f32 %v7005_v63, %v7972_v61  ;;  %7026 = vpow2.f32 %v6040_v9  ;;  %v8138_v63 = vmul.f32 %v8062_v37, %v7853_v45 }
 0x160   : > { %10433 = vst [vmem:[#allocation60_spill] sm:$0xff] %v8122_v51  ;;  %v7009_v15 = vpop.eup %7008  ;;  %v8129_v17 = vmul.f32 %v7007_v57, %v7976_v7  ;;  %7028 = vpow2.f32 %v6038_v56 }
 0x161   : > { %10434 = vst [vmem:[#allocation61_spill] sm:$0xff] %v8126_v0  ;;  %v7011_v24 = vpop.eup %7010  ;;  %v1180_v36 = vpack.c.bf16 %v8126_v0, %v8117_v3  ;;  %v1065_v30 = vadd.f32 1.0, %v7009_v15  ;;  %7030 = vpow2.f32 %v6041_v21  ;;  %10436 = vst [vmem:[#allocation63_spill] sm:$0xff] %v8138_v63  ;;  %v8141_v21 = vmul.f32 %v6995_v19, %v7875_v55 }
 0x162   : > { %10435 = vst [vmem:[#allocation62_spill] sm:$0xff] %v8129_v17  ;;  %v7013_v33 = vpop.eup %7012  ;;  %v1179_v14 = vpack.c.bf16 %v8129_v17, %v8122_v51  ;;  %v1068_v48 = vadd.f32 1.0, %v7011_v24  ;;  %7032 = vpow2.f32 %v6039_v31  ;;  %v8145_v15 = vmul.f32 %v6993_v38, %v7864_v50 }
 0x163   : > { %v7015_v61 = vpop.eup %7014  ;;  %7034 = vrcp.f32 %v1065_v30  ;;  %v1066_v9 = vadd.f32 1.0, %v7013_v33  ;;  %10437 = vst [vmem:[#allocation64_spill] sm:$0xff] %v8141_v21  ;;  %v1182_v37 = vpack.c.bf16 %v8141_v21, %v8138_v63 }
 0x164   : > { %v7017_v41 = vpop.eup %7016  ;;  %6568 = vmatprep.mubr.msk.bf16.mxu1 %vm1190_vm2, %v1179_v14  ;;  %7036 = vrcp.f32 %v1068_v48  ;;  %v1071_v7 = vadd.f32 1.0, %v7015_v61  ;;  %10438 = vst [vmem:[#allocation65_spill] sm:$0xff] %v8145_v15 }
 0x165   : > { %v7019_v56 = vpop.eup %7018  ;;  %6569 = vmatmul.mubr.msk.bf16.gmra.mrb[28].mxu1 %vm1190_vm2, %v1180_v36  ;;  %7038 = vrcp.f32 %v1066_v9  ;;  %v1069_v31 = vadd.f32 1.0, %v7017_v41 }
 0x166   : > { %v7021_v57 = vpop.eup %7020  ;;  %7040 = vrcp.f32 %v1071_v7  ;;  %v1072_v24 = vadd.f32 1.0, %v7019_v56 }
 0x167   : > { %v7023_v30 = vpop.eup %7022  ;;  %7042 = vrcp.f32 %v1069_v31  ;;  %v1070_v33 = vadd.f32 1.0, %v7021_v57 }
 0x168   : > { %v7025_v14 = vpop.eup %7024  ;;  %v8148_v45 = vmul.f32 %v7023_v30, %v7994_v54  ;;  %7044 = vrcp.f32 %v1072_v24 }
 0x169   : > { %v7027_v55 = vpop.eup %7026  ;;  %7046 = vrcp.f32 %v1070_v33  ;;  %v8156_v54 = vmul.f32 %v7025_v14, %v7997_v5 }
 0x16a   : > { %10439 = vst [vmem:[#allocation66_spill] sm:$0xff] %v8148_v45  ;;  %v7029_v19 = vpop.eup %7028  ;;  %v1181_v38 = vpack.c.bf16 %v8148_v45, %v8145_v15  ;;  %v1075_v50 = vadd.f32 1.0, %v7027_v55 }
 0x16b   : > { %v7031_v36 = vpop.eup %7030  ;;  %v1073_v48 = vadd.f32 1.0, %v7029_v19  ;;  %10440 = vst [vmem:[#allocation67_spill] sm:$0xff] %v8156_v54 }
 0x16c   : > { %v7033_v61 = vpop.eup %7032  ;;  %6572 = vmatprep.mubr.msk.bf16.mxu1 %vm1190_vm2, %v1181_v38  ;;  %v1076_v9 = vadd.f32 1.0, %v7031_v36 }
 0x16d   : > { %v7035_v41 = vpop.eup %7034  ;;  %6573 = vmatmul.mubr.msk.bf16.gmra.mrb[32].mxu1 %vm1190_vm2, %v1182_v37  ;;  %7048 = vrcp.f32 %v1073_v48  ;;  %v1074_v7 = vadd.f32 1.0, %v7033_v61 }
 0x16e   : > { %v7037_v56 = vpop.eup %7036  ;;  %v8160_v31 = vmul.f32 %v7035_v41, %v8008_v32  ;;  %7050 = vrcp.f32 %v1075_v50 }
 0x16f   : > { %v7039_v57 = vpop.eup %7038  ;;  %v8163_v24 = vmul.f32 %v7037_v56, %v8014_v12  ;;  %7052 = vrcp.f32 %v1074_v7  ;;  %v1719_v56 = vld [vmem:[#allocation2 + $0xc] sm:$0x1] }
 0x170   : > { %10441 = vst [vmem:[#allocation68_spill] sm:$0xff] %v8160_v31  ;;  %v7041_v30 = vpop.eup %7040  ;;  %v8166_v33 = vmul.f32 %v7039_v57, %v8035_v29  ;;  %7054 = vrcp.f32 %v1076_v9  ;;  %v1720_v57 = vsel %vm8212_vm5, 0, %v1719_v56 }
 0x171   : > { %10442 = vst [vmem:[#allocation69_spill] sm:$0xff] %v8163_v24  ;;  %v7043_v5 = vpop.eup %7042  ;;  %v1184_v14 = vpack.c.bf16 %v8163_v24, %v8156_v54  ;;  %v8180_v29 = vmul.f32 %v7041_v30, %v8055_v62  ;;  %1721 = vst [vmem:[#allocation2 + $0xc] sm:$0x1] %v1720_v57  ;;  %v7544_v57 = vmov 0  }
 0x172   : > { %10443 = vst [vmem:[#allocation70_spill] sm:$0xff] %v8166_v33  ;;  %v7045_v55 = vpop.eup %7044  ;;  %v8171_v37 = vmul.f32 %v7043_v5, %v8060_v6  ;;  %v1183_v32 = vpack.c.bf16 %v8166_v33, %v8160_v31  ;;  %v1772_v5 = vld [vmem:[#allocation2 + $0x20] sm:$0x1]  ;;  %1712 = vst.msk [vmem:[#allocation2 + $0xcc] sm:$0xf] %vm1706_vm8, %v7544_v57 }
 0x173   : > { %v7047_v19 = vpop.eup %7046  ;;  %10446 = vst [vmem:[#allocation73_spill] sm:$0xff] %v8180_v29  ;;  %v8183_v38 = vmul.f32 %v7045_v55, %v8066_v59  ;;  %v1769_v55 = vld [vmem:[#allocation2 + $0x14] sm:$0x1]  ;;  %1713 = vst.msk [vmem:[#allocation2 + $0xd0] sm:$0xf] %vm1706_vm8, %v7544_v57 }
 0x174   : > { %10444 = vst [vmem:[#allocation71_spill] sm:$0xff] %v8171_v37  ;;  %v8176_v12 = vmul.f32 %v7047_v19, %v8073_v47  ;;  %6576 = vmatprep.mubr.msk.bf16.mxu1 %vm1190_vm2, %v1183_v32  ;;  %v1770_v32 = vsel %vm8222_vm7, 0, %v1769_v55  ;;  %v1728_v19 = vld [vmem:[#allocation2 + $0x30] sm:$0x1]  ;;  %1707 = vst.msk [vmem:[#allocation2] sm:$0xf] %vm1706_vm8, %v7544_v57 }
 0x175   : > { %10447 = vst [vmem:[#allocation74_spill] sm:$0xff] %v8183_v38  ;;  %6577 = vmatmul.mubr.msk.bf16.gmra.mrb[36].mxu1 %vm1190_vm2, %v1184_v14  ;;  %v1186_v62 = vpack.c.bf16 %v8183_v38, %v8180_v29  ;;  %v1773_v14 = vsel %vm8222_vm7, 0, %v1772_v5  ;;  %1771 = vst [vmem:[#allocation2 + $0x14] sm:$0x1] %v1770_v32  ;;  %v1784_v5 = vld [vmem:[#allocation2 + $0x50] sm:$0x1] }
 0x176   : > { %10445 = vst [vmem:[#allocation72_spill] sm:$0xff] %v8176_v12  ;;  %v1185_v6 = vpack.c.bf16 %v8176_v12, %v8171_v37  ;;  %1774 = vst [vmem:[#allocation2 + $0x20] sm:$0x1] %v1773_v14  ;;  %v1785_v14 = vsel %vm8222_vm7, 0, %v1784_v5  ;;  %v1781_v55 = vld [vmem:[#allocation2 + $0x44] sm:$0x1] }
 0x177   : > { %v7049_v50 = vpop.eup %7048  ;;  %1708 = vst.msk [vmem:[#allocation2 + $0x4] sm:$0xf] %vm1706_vm8, %v7544_v57  ;;  %1786 = vst [vmem:[#allocation2 + $0x50] sm:$0x1] %v1785_v14 }
 0x178   : > { %v7051_v36 = vpop.eup %7050  ;;  %v8189_v48 = vmul.f32 %v7049_v50, %v8101_v60  ;;  %6580 = vmatprep.mubr.msk.bf16.mxu1 %vm1190_vm2, %v1185_v6  ;;  %v1729_v6 = vsel %vm8212_vm5, 0, %v1728_v19  ;;  %v1725_v50 = vld [vmem:[#allocation2 + $0x24] sm:$0x1]  ;;  %1710 = vst.msk [vmem:[#allocation2 + $0x8] sm:$0x1] %vm1709_vm3, %v7544_v57  ;;  %v1782_v19 = vsel %vm8222_vm7, 0, %v1781_v55 }
 0x179   : > { %v7053_v47 = vpop.eup %7052  ;;  %v8200_v41 = vmul.f32 %v7051_v36, %v8094_v2  ;;  %1730 = vst [vmem:[#allocation2 + $0x30] sm:$0x1] %v1729_v6  ;;  %v1726_v36 = vsel %vm8212_vm5, 0, %v1725_v50  ;;  %1714 = vst.msk [vmem:[#allocation2 + $0xd4] sm:$0x1] %vm1709_vm3, %v7544_v57  ;;  %vm4178_vm3 = vcmask 326656  }
 0x17a   : > { %10448 = vst [vmem:[#allocation75_spill] sm:$0xff] %v8189_v48  ;;  %v7055_v61 = vpop.eup %7054  ;;  %v8195_v59 = vmul.f32 %v7053_v47, %v8111_v39  ;;  %v1722_v39 = vld [vmem:[#allocation2 + $0x18] sm:$0x1]  ;;  %1727 = vst [vmem:[#allocation2 + $0x24] sm:$0x1] %v1726_v36 }
 0x17b   : > { %10450 = vst [vmem:[#allocation77_spill] sm:$0xff] %v8200_v41  ;;  %v8203_v7 = vmul.f32 %v7055_v61, %v8106_v52  ;;  %v1723_v52 = vsel %vm8212_vm5, 0, %v1722_v39  ;;  %v1778_v47 = vld [vmem:[#allocation2 + $0x38] sm:$0x1]  ;;  %v1775_v61 = vld [vmem:[#allocation2 + $0x2c] sm:$0x1] }
 0x17c   : > { %10449 = vst [vmem:[#allocation76_spill] sm:$0xff] %v8195_v59  ;;  %v1187_v9 = vpack.c.bf16 %v8195_v59, %v8189_v48  ;;  %1724 = vst [vmem:[#allocation2 + $0x18] sm:$0x1] %v1723_v52  ;;  %v1731_v52 = vld [vmem:[#allocation2 + $0x3c] sm:$0x1] }
 0x17d   : > { %10451 = vst [vmem:[#allocation78_spill] sm:$0xff] %v8203_v7  ;;  %6581 = vmatmul.mubr.msk.bf16.gmra.mrb[40].mxu1 %vm1190_vm2, %v1186_v62  ;;  %v1188_v60 = vpack.c.bf16 %v8203_v7, %v8200_v41  ;;  %v1779_v62 = vsel %vm8222_vm7, 0, %v1778_v47  ;;  %v1732_v56 = vsel %vm8212_vm5, 0, %v1731_v52  ;;  %v2349_v6 = vld [vmem:[#allocation2] sm:$0xf] }
 0x17e   : > { %6584 = vmatprep.mubr.msk.bf16.mxu1 %vm1190_vm2, %v1187_v9  ;;  %1780 = vst [vmem:[#allocation2 + $0x38] sm:$0x1] %v1779_v62  ;;  %v1776_v9 = vsel %vm8222_vm7, 0, %v1775_v61  ;;  %1733 = vst [vmem:[#allocation2 + $0x3c] sm:$0x1] %v1732_v56 }
 0x17f   : > { %1777 = vst [vmem:[#allocation2 + $0x2c] sm:$0x1] %v1776_v9  ;;  %v2350_v32 = vld [vmem:[#allocation2 + $0x4] sm:$0xf]  ;;  %1783 = vst [vmem:[#allocation2 + $0x44] sm:$0x1] %v1782_v19 }
 0x180   : > { %v8252_v50 = vcombine.low %v2349_v6, %v2350_v32  ;;  %v2508_v36 = vld [vmem:[#allocation2 + $0xcc] sm:$0xf]  ;;  %v2509_v47 = vld [vmem:[#allocation2 + $0xd0] sm:$0xf]  ;;  %v2397_v61 = vld [vmem:[#allocation2] sm:$0xe] }
 0x181   : > { %v8254_v62 = vcombine.low %v2508_v36, %v2509_v47  ;;  %v6780_v9 = vld [vmem:[#allocation2 + $0x8] ss:$0 sps:$4 sm:$0x11]   ;;  %v1740_v36 = vld [vmem:[#allocation2 + $0x60] sm:$0x1] }
 0x182   : > { %v2672_v52 = vshrl.u32 %v8252_v50, 16  ;;  %v2679_v57 = vshll.u32 %v6780_v9, 16  ;;  %v2945_v14 = vrot.slane %v6780_v9, 1  ;;  %v1737_v47 = vld [vmem:[#allocation2 + $0x54] sm:$0x1] }
 0x183   : > { %10456 = vst [vmem:[#allocation79_spill] sm:$0xff] %v8254_v62  ;;  %3646 = vrot.lane.b32.xlu1 %v8254_v62, %s7545_s0  ;;  %v1790_v9 = vld [vmem:[#allocation2 + $0x68] sm:$0x1]  ;;  %v2237_v15 = vld [vmem:[#allocation2 + $0xc] sm:$0xf] }
 0x184   : > { %v2681_v19 = vrot.slane %v2679_v57, 1  ;;  %v1746_v57 = vld [vmem:[#allocation2 + $0x78] sm:$0x1] }
 0x185   : > { %6585 = vmatmul.mubr.msk.bf16.gmra.mrb[44].mxu1 %vm1190_vm2, %v1188_v60  ;;  %v1734_v60 = vld [vmem:[#allocation2 + $0x48] sm:$0x1] }
 0x186   : > { %v1735_v39 = vsel %vm8212_vm5, 0, %v1734_v60  ;;  %v2674_v60 = vshll.u32 %v8252_v50, 16 }
 0x187   : > { %1736 = vst [vmem:[#allocation2 + $0x48] sm:$0x1] %v1735_v39  ;;  %v6156_v39 = vcombine.low %v2397_v61, %v2350_v32  ;;  %v1741_v61 = vsel %vm8212_vm5, 0, %v1740_v36  ;;  %v1793_v36 = vld [vmem:[#allocation2 + $0x74] sm:$0x1] }
 0x188   : > { %v2676_v56 = vrot.slane %v2674_v60, 1  ;;  %v1738_v60 = vsel %vm8212_vm5, 0, %v1737_v47  ;;  %1742 = vst [vmem:[#allocation2 + $0x60] sm:$0x1] %v1741_v61  ;;  %v1794_v47 = vsel %vm8222_vm7, 0, %v1793_v36 }
 0x189   : > { %v2944_v5 = vrot.slane %v6156_v39, 1  ;;  %1739 = vst [vmem:[#allocation2 + $0x54] sm:$0x1] %v1738_v60  ;;  %v1791_v39 = vsel %vm8222_vm7, 0, %v1790_v9  ;;  %1795 = vst [vmem:[#allocation2 + $0x74] sm:$0x1] %v1794_v47 }
 0x18a   : > { %v2677_v55 = vor.u32 %v2676_v56, %v2672_v52  ;;  %1792 = vst [vmem:[#allocation2 + $0x68] sm:$0x1] %v1791_v39  ;;  %v1787_v52 = vld [vmem:[#allocation2 + $0x5c] sm:$0x1]  ;;  %v8288_v60 = vld [vmem:[%s10278_s6] ss:$0 sm:$0xff] }
 0x18b   : > { %v2946_v6 = vsel %vm2943_vm9, %v2944_v5, %v2945_v14  ;;  %v1788_v56 = vsel %vm8222_vm7, 0, %v1787_v52  ;;  %v1747_v5 = vsel %vm8212_vm5, 0, %v1746_v57  ;;  %v1743_v14 = vld [vmem:[#allocation2 + $0x6c] sm:$0x1] }
 0x18c   : > { %2992 = vrot.lane.b32.xlu1 %v2946_v6, %s7546_s29  ;;  %v2682_v32 = vsel %vm2670_vm10, %v2677_v55, %v2681_v19  ;;  %1789 = vst [vmem:[#allocation2 + $0x5c] sm:$0x1] %v1788_v56  ;;  %1748 = vst [vmem:[#allocation2 + $0x78] sm:$0x1] %v1747_v5  ;;  %v1744_v55 = vsel %vm8212_vm5, 0, %v1743_v14 }
 0x18d   : > { %2863 = vrot.lane.b32.xlu0 %v2682_v32, %s10369_s20  ;;  %1745 = vst [vmem:[#allocation2 + $0x6c] sm:$0x1] %v1744_v55  ;;  %v1796_v19 = vld [vmem:[#allocation2 + $0x80] sm:$0x1] }
 0x18e   : > { %v1797_v6 = vsel %vm8222_vm7, 0, %v1796_v19  ;;  %v8283_v32 = vld [vmem:[%s10277_s5] ss:$0 sm:$0xff] }
 0x18f   : > { %1798 = vst [vmem:[#allocation2 + $0x80] sm:$0x1] %v1797_v6 }
 0x21f   : > { %v6558_v61 = vpop.f32.mrb[16].mxu1 }
 0x220   : > { %v1413_v9 = vmul.f32 %v6558_v61, %v8283_v32  ;;  %v1277_v39 = vpop.f32.mrb[17].mxu1 }
 0x221   : > { %v1411_v52 = vmul.f32 %v8283_v32, %v1277_v39  ;;  %v6559_v56 = vpop.f32.mrb[18].mxu1  ;;  %v1752_v39 = vld [vmem:[#allocation2 + $0x90] sm:$0x1] }
 0x222   : > { %v8293_v57 = vadd.f32 %v8288_v60, %v1413_v9  ;;  %v1414_v5 = vmul.f32 %v6559_v56, %v8283_v32  ;;  %v1280_v14 = vpop.f32.mrb[19].mxu1 }
 0x223   : > { %v8297_v55 = vadd.f32 %v8288_v60, %v1411_v52  ;;  %v1412_v19 = vmul.f32 %v8283_v32, %v1280_v14  ;;  %v1753_v14 = vsel %vm8212_vm5, 0, %v1752_v39 }
 0x224   : > { %v6062_v6 = vmul.f32 -1.442695, %v8293_v57  ;;  %v8302_v36 = vadd.f32 %v8288_v60, %v1414_v5  ;;  %1754 = vst [vmem:[#allocation2 + $0x90] sm:$0x1] %v1753_v14 }
 0x225   : > { %v6060_v47 = vmul.f32 -1.442695, %v8297_v55  ;;  %v8306_v61 = vadd.f32 %v8288_v60, %v1412_v19 }
 0x226   : > { %7056 = vpow2.f32 %v6062_v6  ;;  %v6063_v9 = vmul.f32 -1.442695, %v8302_v36 }
 0x227   : > { %7058 = vpow2.f32 %v6060_v47  ;;  %v6061_v52 = vmul.f32 -1.442695, %v8306_v61  ;;  %v6562_v56 = vpop.f32.mrb[20].mxu1 }
 0x228   : > { %7060 = vpow2.f32 %v6063_v9  ;;  %v1417_v5 = vmul.f32 %v6562_v56, %v8283_v32  ;;  %v1293_v58 = vpop.f32.mrb[21].mxu1 }
 0x229   : > { %7062 = vpow2.f32 %v6061_v52  ;;  %v1415_v19 = vmul.f32 %v8283_v32, %v1293_v58  ;;  %v6563_v18 = vpop.f32.mrb[22].mxu1 }
 0x22a   : > { %v8315_v6 = vadd.f32 %v8288_v60, %v1417_v5  ;;  %v1418_v47 = vmul.f32 %v6563_v18, %v8283_v32  ;;  %v1296_v13 = vpop.f32.mrb[23].mxu1 }
 0x22b   : > { %v8319_v8 = vadd.f32 %v8288_v60, %v1415_v19  ;;  %v1416_v39 = vmul.f32 %v8283_v32, %v1296_v13 }
 0x22c   : > { %v6066_v9 = vmul.f32 -1.442695, %v8315_v6  ;;  %v8324_v56 = vadd.f32 %v8288_v60, %v1418_v47 }
 0x22d   : > { %v6064_v52 = vmul.f32 -1.442695, %v8319_v8  ;;  %v8328_v58 = vadd.f32 %v8288_v60, %v1416_v39 }
 0x22e   : > { %7064 = vpow2.f32 %v6066_v9  ;;  %v6067_v14 = vmul.f32 -1.442695, %v8324_v56 }
 0x22f   : > { %7066 = vpow2.f32 %v6064_v52  ;;  %v6065_v18 = vmul.f32 -1.442695, %v8328_v58  ;;  %v1750_v52 = vsel %vm8212_vm5, 0, %v1749_v49 }
 0x230   : > { %v7057_v5 = vpop.eup %7056  ;;  %7068 = vpow2.f32 %v6067_v14  ;;  %v6566_v19 = vpop.f32.mrb[24].mxu1  ;;  %1751 = vst [vmem:[#allocation2 + $0x84] sm:$0x1] %v1750_v52 }
 0x231   : > { %v7059_v13 = vpop.eup %7058  ;;  %v1580_v4 = vadd.f32 1.0, %v7057_v5  ;;  %7070 = vpow2.f32 %v6065_v18  ;;  %v1421_v47 = vmul.f32 %v6566_v19, %v8283_v32  ;;  %v1309_v53 = vpop.f32.mrb[25].mxu1  ;;  %v1799_v19 = vld [vmem:[#allocation2 + $0x8c] sm:$0x1] }
 0x232   : > { %v7061_v44 = vpop.eup %7060  ;;  %v1578_v40 = vadd.f32 1.0, %v7059_v13  ;;  %v1419_v39 = vmul.f32 %v8283_v32, %v1309_v53  ;;  %v6567_v9 = vpop.f32.mrb[26].mxu1 }
 0x233   : > { %v7063_v25 = vpop.eup %7062  ;;  %7072 = vrcp.f32 %v1580_v4  ;;  %v1581_v14 = vadd.f32 1.0, %v7061_v44  ;;  %v8337_v23 = vadd.f32 %v8288_v60, %v1421_v47  ;;  %v1422_v18 = vmul.f32 %v6567_v9, %v8283_v32  ;;  %v1312_v5 = vpop.f32.mrb[27].mxu1 }
 0x234   : > { %7074 = vrcp.f32 %v1578_v40  ;;  %v1579_v13 = vadd.f32 1.0, %v7063_v25  ;;  %v8341_v53 = vadd.f32 %v8288_v60, %v1419_v39  ;;  %v1420_v20 = vmul.f32 %v8283_v32, %v1312_v5 }
 0x235   : > { %7076 = vrcp.f32 %v1581_v14  ;;  %v6070_v49 = vmul.f32 -1.442695, %v8337_v23  ;;  %v8346_v44 = vadd.f32 %v8288_v60, %v1422_v18  ;;  %v1803_v4 = vsel %vm8222_vm7, 0, %v1802_v28 }
 0x236   : > { %7078 = vrcp.f32 %v1579_v13  ;;  %v6068_v47 = vmul.f32 -1.442695, %v8341_v53  ;;  %v8352_v40 = vadd.f32 %v8288_v60, %v1420_v20  ;;  %1804 = vst [vmem:[#allocation2 + $0x98] sm:$0x1] %v1803_v4  ;;  %v1800_v25 = vsel %vm8222_vm7, 0, %v1799_v19 }
 0x237   : > { %7080 = vpow2.f32 %v6070_v49  ;;  %v6071_v39 = vmul.f32 -1.442695, %v8346_v44  ;;  %1801 = vst [vmem:[#allocation2 + $0x8c] sm:$0x1] %v1800_v25 }
 0x238   : > { %v7065_v9 = vpop.eup %7064  ;;  %7082 = vpow2.f32 %v6068_v47  ;;  %v6069_v52 = vmul.f32 -1.442695, %v8352_v40  ;;  %v6570_v14 = vpop.f32.mrb[28].mxu1 }
 0x239   : > { %v7067_v28 = vpop.eup %7066  ;;  %v1584_v18 = vadd.f32 1.0, %v7065_v9  ;;  %7084 = vpow2.f32 %v6071_v39  ;;  %v1425_v5 = vmul.f32 %v6570_v14, %v8283_v32  ;;  %v1325_v20 = vpop.f32.mrb[29].mxu1 }
 0x23a   : > { %v7069_v13 = vpop.eup %7068  ;;  %v1582_v4 = vadd.f32 1.0, %v7067_v28  ;;  %7086 = vpow2.f32 %v6069_v52  ;;  %v1423_v19 = vmul.f32 %v8283_v32, %v1325_v20  ;;  %v6571_v49 = vpop.f32.mrb[30].mxu1 }
 0x23b   : > { %v7071_v59 = vpop.eup %7070  ;;  %7088 = vrcp.f32 %v1584_v18  ;;  %v1585_v25 = vadd.f32 1.0, %v7069_v13  ;;  %v8361_v47 = vadd.f32 %v8288_v60, %v1425_v5  ;;  %v1426_v48 = vmul.f32 %v6571_v49, %v8283_v32  ;;  %v1328_v7 = vpop.f32.mrb[31].mxu1 }
 0x23c   : > { %7090 = vrcp.f32 %v1582_v4  ;;  %v1583_v39 = vadd.f32 1.0, %v7071_v59  ;;  %v8365_v9 = vadd.f32 %v8288_v60, %v1423_v19  ;;  %v1424_v14 = vmul.f32 %v8283_v32, %v1328_v7 }
 0x23d   : > { %v7073_v52 = vpop.eup %7072  ;;  %7092 = vrcp.f32 %v1585_v25  ;;  %v6074_v28 = vmul.f32 -1.442695, %v8361_v47  ;;  %v8370_v18 = vadd.f32 %v8288_v60, %v1426_v48 }
 0x23e   : > { %v7075_v20 = vpop.eup %7074  ;;  %v1676_v5 = vmul.f32 %v7073_v52, %v8293_v57  ;;  %7094 = vrcp.f32 %v1583_v39  ;;  %v6072_v13 = vmul.f32 -1.442695, %v8365_v9  ;;  %v8375_v59 = vadd.f32 %v8288_v60, %v1424_v14 }
 0x23f   : > { %v7077_v4 = vpop.eup %7076  ;;  %v1674_v19 = vmul.f32 %v7075_v20, %v8297_v55  ;;  %7096 = vpow2.f32 %v6074_v28  ;;  %v6075_v7 = vmul.f32 -1.442695, %v8370_v18 }
 0x240   : > { %v7079_v49 = vpop.eup %7078  ;;  %v6400_v25 = vpack.c.bf16 %v1676_v5, %v1676_v5  ;;  %v1677_v48 = vmul.f32 %v7077_v4, %v8302_v36  ;;  %7098 = vpow2.f32 %v6072_v13  ;;  %v8380_v41 = vpop.f32.mrb[32].mxu1  ;;  %v8384_v14 = vmul.f32 -1.442695, %v8375_v59 }
 0x241   : > { %v7081_v57 = vpop.eup %7080  ;;  %v6398_v39 = vpack.c.bf16 %v1674_v19, %v1674_v19  ;;  %v1675_v52 = vmul.f32 %v7079_v49, %v8306_v61  ;;  %7100 = vpow2.f32 %v6075_v7  ;;  %v8386_v55 = vpop.f32.mrb[33].mxu1 }
 0x242   : > { %v7083_v28 = vpop.eup %7082  ;;  %v1933_v20 = vshrl.u32 %v6400_v25, 16  ;;  %v1936_v12 = vshll.u32 %v6400_v25, 16  ;;  %v6401_v5 = vpack.c.bf16 %v1677_v48, %v1677_v48  ;;  %v1588_v37 = vadd.f32 1.0, %v7081_v57  ;;  %v8388_v36 = vpop.f32.mrb[34].mxu1  ;;  %v2244_v48 = vld [vmem:[#allocation2 + $0x18] sm:$0xf] }
 0x243   : > { %v8390_v13 = vpop.eup %7084  ;;  %v1916_v4 = vshrl.u32 %v6398_v39, 16  ;;  %v1919_v38 = vshll.u32 %v6398_v39, 16  ;;  %v6399_v19 = vpack.c.bf16 %v1675_v52, %v1675_v52  ;;  %v1586_v29 = vadd.f32 1.0, %v7083_v28  ;;  %v8392_v61 = vpop.f32.mrb[35].mxu1 }
 0x244   : > { %v7087_v7 = vpop.eup %7086  ;;  %v1935_v49 = vrot.slane %v1933_v20, 7  ;;  %v1941_v33 = vshrl.u32 %v6401_v5, 16  ;;  %v1944_v31 = vshll.u32 %v6401_v5, 16  ;;  %7102 = vrcp.f32 %v1588_v37 }
 0x245   : > { %v7089_v24 = vpop.eup %7088  ;;  %v1918_v57 = vrot.slane %v1916_v4, 7  ;;  %v1924_v54 = vshrl.u32 %v6399_v19, 16  ;;  %v1927_v39 = vshll.u32 %v6399_v19, 16  ;;  %7104 = vrcp.f32 %v1586_v29  ;;  %v2248_v4 = vld [vmem:[#allocation2 + $0x20] sm:$0x1] }
 0x246   : > { %v7091_v52 = vpop.eup %7090  ;;  %v1938_v28 = vor.u32 %v1936_v12, %v1935_v49  ;;  %v1939_v45 = vrot.slane %v1935_v49, 4  ;;  %v1943_v20 = vrot.slane %v1941_v33, 7  ;;  %v1680_v5 = vmul.f32 %v7089_v24, %v8315_v6  ;;  %v2241_v24 = vld [vmem:[#allocation2 + $0x14] sm:$0x1] }
 0x247   : > { %v7093_v37 = vpop.eup %7092  ;;  %v1921_v21 = vor.u32 %v1919_v38, %v1918_v57  ;;  %v1922_v63 = vrot.slane %v1918_v57, 4  ;;  %v1926_v51 = vrot.slane %v1924_v54, 7  ;;  %v1678_v29 = vmul.f32 %v7091_v52, %v8319_v8 }
 0x248   : > { %v7095_v19 = vpop.eup %7094  ;;  %v2245_v12 = vsel %vm8396_vm12, %v1938_v28, %v2244_v48  ;;  %v1946_v33 = vor.u32 %v1944_v31, %v1943_v20  ;;  %v1948_v49 = vrot.slane %v1943_v20, 4  ;;  %v6404_v6 = vpack.c.bf16 %v1680_v5, %v1680_v5  ;;  %v8410_v38 = vpop.f32.mrb[36].mxu1 }
 0x249   : > { %v7097_v57 = vpop.eup %7096  ;;  %2246 = vst [vmem:[#allocation2 + $0x18] sm:$0xf] %v2245_v12  ;;  %v2238_v0 = vsel %vm8396_vm12, %v1921_v21, %v2237_v15  ;;  %v1929_v3 = vor.u32 %v1927_v39, %v1926_v51  ;;  %v1931_v27 = vrot.slane %v1926_v51, 4  ;;  %v6402_v54 = vpack.c.bf16 %v1678_v29, %v1678_v29  ;;  %v8414_v22 = vpop.f32.mrb[37].mxu1  ;;  %v2258_v12 = vld [vmem:[#allocation2 + $0x30] sm:$0xf] }
 0x24a   : > { %v7099_v8 = vpop.eup %7098  ;;  %2239 = vst [vmem:[#allocation2 + $0xc] sm:$0xf] %v2238_v0  ;;  %v1947_v31 = vsel %vm8403_vm13, %v1939_v45, %v1946_v33  ;;  %v2249_v48 = vsel %vm8212_vm5, %v1948_v49, %v2248_v4  ;;  %v1967_v52 = vshrl.u32 %v6404_v6, 16  ;;  %v8422_v28 = vmul.f32 %v8380_v41, %v8283_v32  ;;  %v8424_v20 = vpop.f32.mrb[38].mxu1 }
 0x24b   : > { %v7101_v21 = vpop.eup %7100  ;;  %2247 = vst.msk [vmem:[#allocation2 + $0x1c] sm:$0xf] %vm1706_vm8, %v1947_v31  ;;  %2250 = vst [vmem:[#allocation2 + $0x20] sm:$0x1] %v2249_v48  ;;  %v1930_v51 = vsel %vm8403_vm13, %v1922_v63, %v1929_v3  ;;  %v2242_v0 = vsel %vm8212_vm5, %v1931_v27, %v2241_v24  ;;  %v1970_v15 = vshll.u32 %v6404_v6, 16  ;;  %v1950_v45 = vshrl.u32 %v6402_v54, 16 }
 0x24c   : > { %v8431_v39 = vpop.f32.mrb[39].mxu1  ;;  %2240 = vst.msk [vmem:[#allocation2 + $0x10] sm:$0xf] %vm1706_vm8, %v1930_v51  ;;  %2243 = vst [vmem:[#allocation2 + $0x14] sm:$0x1] %v2242_v0  ;;  %v1969_v41 = vrot.slane %v1967_v52, 7  ;;  %v1681_v5 = vmul.f32 %v7093_v37, %v8324_v56  ;;  %v1679_v4 = vmul.f32 %v7095_v19, %v8328_v58 }
 0x24d   : > { %v1589_v29 = vadd.f32 1.0, %v8390_v13  ;;  %v1952_v33 = vrot.slane %v1950_v45, 7  ;;  %v1953_v3 = vshll.u32 %v6402_v54, 16  ;;  %v1587_v63 = vadd.f32 1.0, %v7087_v7  ;;  %v2251_v6 = vld [vmem:[#allocation2 + $0x24] sm:$0xf] }
 0x24e   : > { %v1592_v49 = vadd.f32 1.0, %v7097_v57  ;;  %v7103_v27 = vpop.eup %7102  ;;  %v1972_v24 = vor.u32 %v1970_v15, %v1969_v41  ;;  %v6405_v31 = vpack.c.bf16 %v1681_v5, %v1681_v5  ;;  %v6403_v48 = vpack.c.bf16 %v1679_v4, %v1679_v4 }
 0x24f   : > { %v1590_v16 = vadd.f32 1.0, %v7099_v8  ;;  %v7105_v51 = vpop.eup %7104  ;;  %v1973_v0 = vrot.slane %v1969_v41, 4  ;;  %v1955_v52 = vor.u32 %v1953_v3, %v1952_v33  ;;  %v1684_v56 = vmul.f32 %v7103_v27, %v8337_v23 }
 0x250   : > { %7106 = vrcp.f32 %v1589_v29  ;;  %v2259_v58 = vsel %vm8396_vm12, %v1972_v24, %v2258_v12  ;;  %v1956_v13 = vrot.slane %v1952_v33, 4  ;;  %v1975_v37 = vshrl.u32 %v6405_v31, 16  ;;  %v8440_v7 = vpop.f32.mrb[40].mxu1  ;;  %v2262_v29 = vld [vmem:[#allocation2 + $0x38] sm:$0x1] }
 0x251   : > { %v1958_v19 = vshrl.u32 %v6403_v48, 16  ;;  %2260 = vst [vmem:[#allocation2 + $0x30] sm:$0xf] %v2259_v58  ;;  %v2252_v57 = vsel %vm8396_vm12, %v1955_v52, %v2251_v6  ;;  %v1978_v54 = vshll.u32 %v6405_v31, 16  ;;  %v6408_v8 = vpack.c.bf16 %v1684_v56, %v1684_v56  ;;  %v8445_v45 = vpop.f32.mrb[41].mxu1 }
 0x252   : > { %v1682_v15 = vmul.f32 %v7105_v51, %v8341_v53  ;;  %2253 = vst [vmem:[#allocation2 + $0x24] sm:$0xf] %v2252_v57  ;;  %v1977_v23 = vrot.slane %v1975_v37, 7  ;;  %v1961_v5 = vshll.u32 %v6403_v48, 16  ;;  %7108 = vrcp.f32 %v1587_v63  ;;  %v8447_v4 = vpop.f32.mrb[42].mxu1 }
 0x253   : > { %v1960_v41 = vrot.slane %v1958_v19, 7  ;;  %v2255_v12 = vld [vmem:[#allocation2 + $0x2c] sm:$0x1]  ;;  %v2001_v33 = vshrl.u32 %v6408_v8, 16  ;;  %7110 = vrcp.f32 %v1592_v49  ;;  %v1593_v27 = vadd.f32 1.0, %v7101_v21 }
 0x254   : > { %v6406_v3 = vpack.c.bf16 %v1682_v15, %v1682_v15  ;;  %v1980_v24 = vor.u32 %v1978_v54, %v1977_v23  ;;  %v1982_v6 = vrot.slane %v1977_v23, 4  ;;  %v2272_v53 = vld [vmem:[#allocation2 + $0x48] sm:$0xf]  ;;  %v8449_v51 = vld [vmem:[#allocation2 + $0x1c] sm:$0xf]  ;;  %v2004_v58 = vshll.u32 %v6408_v8, 16 }
 0x255   : > { %v1963_v31 = vor.u32 %v1961_v5, %v1960_v41  ;;  %v1965_v52 = vrot.slane %v1960_v41, 4  ;;  %v8451_v56 = vrot.slane %v2001_v33, 7  ;;  %7112 = vrcp.f32 %v1590_v16  ;;  %v2478_v63 = vld [vmem:[#allocation2 + $0x18] sm:$0xf]  ;;  %v2416_v19 = vld [vmem:[#allocation2 + $0x1c] sm:$0xf] }
 0x256   : > { %v1984_v48 = vshrl.u32 %v6406_v3, 16  ;;  %v2415_v37 = vld [vmem:[#allocation2 + $0x18] sm:$0xf]  ;;  %v1981_v57 = vsel %vm8403_vm13, %v1973_v0, %v1980_v24  ;;  %v2263_v21 = vsel %vm8212_vm5, %v1982_v6, %v2262_v29  ;;  %v2265_v15 = vld [vmem:[#allocation2 + $0x3c] sm:$0xf]  ;;  %v1987_v41 = vshll.u32 %v6406_v3, 16 }
 0x257   : > { %v1964_v49 = vsel %vm8403_vm13, %v1956_v13, %v1963_v31  ;;  %v2256_v54 = vsel %vm8212_vm5, %v1965_v52, %v2255_v12  ;;  %v8461_v23 = vld [vmem:[#allocation2 + $0x18] sm:$0xe]  ;;  %v8463_v8 = vld [vmem:[#allocation2 + $0x20] ss:$0 sps:$4 sm:$0x11]   ;;  %v2006_v16 = vor.u32 %v2004_v58, %v8451_v56  ;;  %7114 = vrcp.f32 %v1593_v27  ;;  %v8470_v5 = vpop.f32.mrb[43].mxu1 }
 0x258   : > { %2261 = vst.msk [vmem:[#allocation2 + $0x34] sm:$0xf] %vm1706_vm8, %v1981_v57  ;;  %2264 = vst [vmem:[#allocation2 + $0x38] sm:$0x1] %v2263_v21  ;;  %v8468_v0 = vrot.slane %v1984_v48, 7  ;;  %v2007_v29 = vrot.slane %v8451_v56, 4  ;;  %7116 = vpow2.f32 %v8384_v14  ;;  %v8475_v12 = vcombine.low %v2478_v63, %v8449_v51 }
 0x259   : > { %2254 = vst.msk [vmem:[#allocation2 + $0x28] sm:$0xf] %vm1706_vm8, %v1964_v49  ;;  %2257 = vst [vmem:[#allocation2 + $0x2c] sm:$0x1] %v2256_v54  ;;  %v2462_v13 = vld [vmem:[#allocation2 + $0x18] sm:$0xe]  ;;  %v8477_v33 = vcombine.low %v2415_v37, %v2416_v19  ;;  %v2273_v31 = vsel %vm8396_vm12, %v2006_v16, %v2272_v53 }
 0x25a   : > { %v8479_v24 = vld [vmem:[#allocation2 + $0x10] sm:$0xf]  ;;  %v7107_v6 = vpop.eup %7106  ;;  %v1989_v3 = vor.u32 %v1987_v41, %v8468_v0  ;;  %v6205_v52 = vcombine.low %v2462_v13, %v2416_v19  ;;  %2274 = vst [vmem:[#allocation2 + $0x48] sm:$0xf] %v2273_v31  ;;  %3616 = vrot.lane.b32.xlu0 %v8475_v12, %s7545_s0  ;;  %v3460_v53 = vrot.slane %v8463_v8, 1  ;;  %v8494_v37 = vpop.f32.mrb[44].mxu1  ;;  %v8506_v41 = vadd.f32 %v8288_v60, %v8422_v28 }
 0x25b   : > { %v1685_v58 = vmul.f32 %v7107_v6, %v8346_v44  ;;  %3106 = vrot.lane.b32.xlu1 %v8477_v33, %s7548_s17  ;;  %v2413_v63 = vld [vmem:[#allocation2 + $0xc] sm:$0xf]  ;;  %v1427_v13 = vmul.f32 %v8283_v32, %v8386_v55 }
 0x25c   : > { %v2266_v19 = vsel %vm8396_vm12, %v1989_v3, %v2265_v15  ;;  %v3459_v44 = vrot.slane %v6205_v52, 1  ;;  %v8500_v21 = vcombine.low %v2413_v63, %v8479_v24  ;;  %v7109_v49 = vpop.eup %7108  ;;  %v8502_v16 = vld [vmem:[#allocation2 + $0xc] sm:$0xe]  ;;  %v1430_v15 = vmul.f32 %v8388_v36, %v8283_v32 }
 0x25d   : > { %2267 = vst [vmem:[#allocation2 + $0x3c] sm:$0xf] %v2266_v19  ;;  %v6409_v54 = vpack.c.bf16 %v1685_v58, %v1685_v58  ;;  %v7111_v6 = vpop.eup %7110  ;;  %v1683_v31 = vmul.f32 %v7109_v49, %v8352_v40  ;;  %v1428_v58 = vmul.f32 %v8283_v32, %v8392_v61  ;;  %v6078_v40 = vmul.f32 -1.442695, %v8506_v41  ;;  %v2276_v61 = vld [vmem:[#allocation2 + $0x50] sm:$0x1] }
 0x25e   : > { %v3461_v3 = vsel %vm2943_vm9, %v3459_v44, %v3460_v53  ;;  %v1688_v19 = vmul.f32 %v7111_v6, %v8361_v47  ;;  %3104 = vrot.lane.b32.xlu0 %v8500_v21, %s7548_s17  ;;  %v8524_v53 = vadd.f32 %v8288_v60, %v1427_v13  ;;  %v8527_v44 = vadd.f32 %v8288_v60, %v1430_v15 }
 0x25f   : > { %v2009_v63 = vshrl.u32 %v6409_v54, 16  ;;  %v2012_v28 = vshll.u32 %v6409_v54, 16  ;;  %3506 = vrot.lane.b32.xlu1 %v3461_v3, %s7549_s18  ;;  %v7113_v55 = vpop.eup %7112  ;;  %v6407_v36 = vpack.c.bf16 %v1683_v31, %v1683_v31  ;;  %v8530_v32 = vadd.f32 %v8288_v60, %v1428_v58 }
 0x260   : > { %v6412_v49 = vpack.c.bf16 %v1688_v19, %v1688_v19  ;;  %v1686_v54 = vmul.f32 %v7113_v55, %v8365_v9  ;;  %7118 = vpow2.f32 %v6078_v40  ;;  %v6076_v31 = vmul.f32 -1.442695, %v8524_v53  ;;  %v2269_v55 = vld [vmem:[#allocation2 + $0x44] sm:$0x1] }
 0x261   : > { %v2011_v47 = vrot.slane %v2009_v63, 7  ;;  %v7115_v6 = vpop.eup %7114  ;;  %v1992_v3 = vshrl.u32 %v6407_v36, 16  ;;  %v1995_v48 = vshll.u32 %v6407_v36, 16  ;;  %v6079_v13 = vmul.f32 -1.442695, %v8527_v44 }
 0x262   : > { %v7117_v52 = vpop.eup %7116  ;;  %v2035_v27 = vshrl.u32 %v6412_v49, 16  ;;  %v2038_v14 = vshll.u32 %v6412_v49, 16  ;;  %v6410_v58 = vpack.c.bf16 %v1686_v54, %v1686_v54  ;;  %v1689_v63 = vmul.f32 %v7115_v6, %v8370_v18  ;;  %v8545_v54 = vld [vmem:[#allocation2 + $0x20] ss:$0 sps:$4 sm:$0x11]  }
 0x263   : > { %v2014_v57 = vor.u32 %v2012_v28, %v2011_v47  ;;  %v2016_v15 = vrot.slane %v2011_v47, 4  ;;  %v1994_v60 = vrot.slane %v1992_v3, 7  ;;  %v1591_v19 = vadd.f32 1.0, %v7117_v52  ;;  %v2286_v28 = vld [vmem:[#allocation2 + $0x60] sm:$0xf] }
 0x264   : > { %v8542_v36 = vrot.slane %v2035_v27, 7  ;;  %7120 = vpow2.f32 %v6076_v31  ;;  %v2018_v18 = vshrl.u32 %v6410_v58, 16  ;;  %v2021_v52 = vshll.u32 %v6410_v58, 16  ;;  %v2352_v27 = vld [vmem:[#allocation2 + $0x10] sm:$0xf] }
 0x265   : > { %v2015_v9 = vsel %vm8403_vm13, %v2007_v29, %v2014_v57  ;;  %v2277_v40 = vsel %vm8212_vm5, %v2016_v15, %v2276_v61  ;;  %v1997_v47 = vor.u32 %v1995_v48, %v1994_v60  ;;  %v1999_v49 = vrot.slane %v1994_v60, 4  ;;  %v2279_v29 = vld [vmem:[#allocation2 + $0x54] sm:$0xf]  ;;  %v2403_v11 = vld [vmem:[#allocation2 + $0x48] sm:$0xe] }
 0x266   : > { %2275 = vst.msk [vmem:[#allocation2 + $0x4c] sm:$0xf] %vm1706_vm8, %v2015_v9  ;;  %2278 = vst [vmem:[#allocation2 + $0x50] sm:$0x1] %v2277_v40  ;;  %v2040_v56 = vor.u32 %v2038_v14, %v8542_v36  ;;  %v6413_v57 = vpack.c.bf16 %v1689_v63, %v1689_v63  ;;  %7122 = vrcp.f32 %v1591_v19  ;;  %v10461_v3 = vrot.slane %v8468_v0, 4 }
 0x267   : > { %v8549_v6 = vld [vmem:[#allocation2 + $0x14] ss:$0 sps:$4 sm:$0x11]   ;;  %v2270_v31 = vsel %vm8212_vm5, %v1999_v49, %v2269_v55  ;;  %v8557_v15 = vrot.slane %v2018_v18, 7  ;;  %7124 = vpow2.f32 %v6079_v13  ;;  %v2398_v14 = vld [vmem:[#allocation2 + $0xc] sm:$0xe]  ;;  %v10462_v13 = vcombine.low %v8461_v23, %v8449_v51 }
 0x268   : > { %v1998_v48 = vsel %vm8403_vm13, %v10461_v3, %v1997_v47  ;;  %2271 = vst [vmem:[#allocation2 + $0x44] sm:$0x1] %v2270_v31  ;;  %v2287_v60 = vsel %vm8396_vm12, %v2040_v56, %v2286_v28  ;;  %v2043_v58 = vshrl.u32 %v6413_v57, 16  ;;  %v2046_v63 = vshll.u32 %v6413_v57, 16  ;;  %v2354_v19 = vld [vmem:[#allocation2 + $0x1c] sm:$0xf] }
 0x269   : > { %2268 = vst.msk [vmem:[#allocation2 + $0x40] sm:$0xf] %vm1706_vm8, %v1998_v48  ;;  %v6077_v0 = vmul.f32 -1.442695, %v8530_v32  ;;  %v2041_v9 = vrot.slane %v8542_v36, 4  ;;  %v2023_v40 = vor.u32 %v2021_v52, %v8557_v15  ;;  %v3968_v47 = vrot.slane %v10462_v13, 1 }
 0x26a   : > { %2288 = vst [vmem:[#allocation2 + $0x60] sm:$0xf] %v2287_v60  ;;  %v2290_v55 = vld [vmem:[#allocation2 + $0x68] sm:$0x1]  ;;  %v3969_v49 = vrot.slane %v8545_v54, 1  ;;  %v7119_v3 = vpop.eup %7118  ;;  %v2045_v28 = vrot.slane %v2043_v58, 7  ;;  %v6157_v57 = vcombine.low %v2398_v14, %v2352_v27 }
 0x26b   : > { %v6795_v18 = vld [vmem:[#allocation2 + $0x20] ss:$0 sps:$4 sm:$0x11]   ;;  %7126 = vpow2.f32 %v6077_v0  ;;  %v2351_v56 = vld [vmem:[#allocation2 + $0xc] sm:$0xf]  ;;  %v2948_v48 = vrot.slane %v8549_v6, 1  ;;  %v2280_v36 = vsel %vm8396_vm12, %v2023_v40, %v2279_v29 }
 0x26c   : > { %v2353_v31 = vld [vmem:[#allocation2 + $0x18] sm:$0xf]  ;;  %v1596_v52 = vadd.f32 1.0, %v7119_v3  ;;  %v3970_v60 = vsel %vm2943_vm9, %v3968_v47, %v3969_v49  ;;  %v8573_v61 = vcombine.low %v2351_v56, %v2352_v27  ;;  %2281 = vst [vmem:[#allocation2 + $0x54] sm:$0xf] %v2280_v36  ;;  %v2048_v23 = vor.u32 %v2046_v63, %v2045_v28 }
 0x26d   : > { %v2399_v51 = vld [vmem:[#allocation2 + $0x18] sm:$0xe]  ;;  %v2050_v13 = vrot.slane %v2045_v28, 4  ;;  %4016 = vrot.lane.b32.xlu0 %v3970_v60, %s7550_s21  ;;  %v2947_v58 = vrot.slane %v6157_v57, 1  ;;  %v8576_v14 = vcombine.low %v2353_v31, %v2354_v19  ;;  %v2951_v29 = vrot.slane %v6795_v18, 1 }
 0x26e   : > { %v8578_v0 = vld [vmem:[#allocation2 + $0x14] ss:$0 sps:$4 sm:$0x11]   ;;  %7128 = vrcp.f32 %v1596_v52  ;;  %v6158_v34 = vcombine.low %v2399_v51, %v2354_v19  ;;  %v3197_v40 = vshrl.u32 %v8477_v33, 16  ;;  %v7121_v47 = vpop.eup %7120  ;;  %v2049_v27 = vsel %vm8403_vm13, %v2041_v9, %v2048_v23 }
 0x26f   : > { %v2291_v63 = vsel %vm8212_vm5, %v2050_v13, %v2290_v55  ;;  %v2949_v49 = vsel %vm2943_vm9, %v2947_v58, %v2948_v48  ;;  %v10463_v3 = vshll.u32 %v8477_v33, 16  ;;  %2289 = vst.msk [vmem:[#allocation2 + $0x64] sm:$0xf] %vm1706_vm8, %v2049_v27  ;;  %v1594_v56 = vadd.f32 1.0, %v7121_v47 }
 0x270   : > { %2292 = vst [vmem:[#allocation2 + $0x68] sm:$0x1] %v2291_v63  ;;  %2994 = vrot.lane.b32.xlu1 %v2949_v49, %s7546_s29  ;;  %v2950_v19 = vrot.slane %v6158_v34, 1  ;;  %v3204_v57 = vshll.u32 %v8463_v8, 16  ;;  %v10464_v9 = vcombine.low %v8502_v16, %v8479_v24  ;;  %v7123_v36 = vpop.eup %7122  ;;  %v3457_v48 = vrot.slane %v8578_v0, 1 }
 0x271   : > { %v3201_v28 = vrot.slane %v10463_v3, 1  ;;  %v2696_v33 = vshrl.u32 %v8576_v14, 16  ;;  %v2698_v52 = vshll.u32 %v8576_v14, 16  ;;  %v7125_v60 = vpop.eup %7124  ;;  %v1687_v51 = vmul.f32 %v7123_v36, %v8375_v59  ;;  %v8605_v59 = vld [vmem:[#allocation2 + $0x34] sm:$0xf] }
 0x272   : > { %v3456_v31 = vrot.slane %v10464_v9, 1  ;;  %7130 = vrcp.f32 %v1594_v56  ;;  %v2952_v34 = vsel %vm2943_vm9, %v2950_v19, %v2951_v29  ;;  %v3206_v23 = vrot.slane %v3204_v57, 1  ;;  %v2283_v36 = vld [vmem:[#allocation2 + $0x5c] sm:$0x1]  ;;  %v2360_v46 = vld [vmem:[#allocation2 + $0x40] sm:$0xf] }
 0x273   : > { %v3202_v55 = vor.u32 %v3201_v28, %v3197_v40  ;;  %v1597_v8 = vadd.f32 1.0, %v7125_v60  ;;  %2996 = vrot.lane.b32.xlu0 %v2952_v34, %s7546_s29  ;;  %v2700_v16 = vrot.slane %v2698_v52, 1  ;;  %v2703_v13 = vshll.u32 %v6795_v18, 16  ;;  %v2419_v18 = vld [vmem:[#allocation2 + $0x30] sm:$0xf] }
 0x274   : > { %v3458_v24 = vsel %vm2943_vm9, %v3456_v31, %v3457_v48  ;;  %v6411_v58 = vpack.c.bf16 %v1687_v51, %v1687_v51  ;;  %v3697_v47 = vshrl.u32 %v8475_v12, 16  ;;  %v10465_v27 = vshll.u32 %v8475_v12, 16  ;;  %v8609_v31 = vpop.f32.mrb[45].mxu1  ;;  %v2464_v52 = vld [vmem:[#allocation2 + $0x30] sm:$0xe] }
 0x275   : > { %v3207_v40 = vsel %vm2670_vm10, %v3202_v55, %v3206_v23  ;;  %v7127_v49 = vpop.eup %7126  ;;  %7132 = vrcp.f32 %v1597_v8  ;;  %v2701_v29 = vor.u32 %v2700_v16, %v2696_v33  ;;  %v2705_v3 = vrot.slane %v2703_v13, 1  ;;  %v8621_v8 = vld [vmem:[#allocation2 + $0x24] sm:$0xe] }
 0x276   : > { %v3701_v63 = vrot.slane %v10465_v27, 1  ;;  %3378 = vrot.lane.b32.xlu1 %v3207_v40, %s7551_s30  ;;  %v3704_v28 = vshll.u32 %v8545_v54, 16  ;;  %v2026_v56 = vshrl.u32 %v6411_v58, 16  ;;  %v2029_v19 = vshll.u32 %v6411_v58, 16  ;;  %v8617_v54 = vld [vmem:[#allocation2 + $0x28] sm:$0xf] }
 0x277   : > { %v1595_v57 = vadd.f32 1.0, %v7127_v49  ;;  %v2024_v12 = vrot.slane %v8557_v15, 4  ;;  %3504 = vrot.lane.b32.xlu0 %v3458_v24, %s7549_s18  ;;  %v2706_v55 = vsel %vm2670_vm10, %v2701_v29, %v2705_v3  ;;  %v8615_v33 = vcombine.low %v2419_v18, %v8605_v59  ;;  %v2480_v15 = vld [vmem:[#allocation2 + $0x24] sm:$0xf]  ;;  %v8623_v24 = vpop.f32.mrb[46].mxu1 }
 0x278   : > { %v3702_v9 = vor.u32 %v3701_v63, %v3697_v47  ;;  %v3706_v48 = vrot.slane %v3704_v28, 1  ;;  %v7129_v60 = vpop.eup %7128  ;;  %v2028_v51 = vrot.slane %v2026_v56, 7  ;;  %v6207_v34 = vcombine.low %v2464_v52, %v8605_v59  ;;  %v8630_v47 = vld [vmem:[#allocation2 + $0x38] ss:$0 sps:$4 sm:$0x11]  }
 0x279   : > { %7134 = vrcp.f32 %v1595_v57  ;;  %v2686_v23 = vshll.u32 %v8573_v61, 16  ;;  %v1692_v16 = vmul.f32 %v7129_v60, %v8506_v41  ;;  %v2684_v58 = vshrl.u32 %v8573_v61, 16 }
 0x27a   : > { %2867 = vrot.lane.b32.xlu1 %v2706_v55, %s10369_s20  ;;  %v3707_v13 = vsel %vm2670_vm10, %v3702_v9, %v3706_v48  ;;  %v2691_v40 = vshll.u32 %v8549_v6, 16  ;;  %v2031_v27 = vor.u32 %v2029_v19, %v2028_v51  ;;  %v2033_v63 = vrot.slane %v2028_v51, 4  ;;  %v8644_v9 = vld [vmem:[#allocation2 + $0x34] sm:$0xf]  ;;  %v2482_v51 = vld [vmem:[#allocation2 + $0x30] sm:$0xf] }
 0x27b   : > { %v3223_v59 = vshll.u32 %v8615_v33, 16  ;;  %v2688_v49 = vrot.slane %v2686_v23, 1  ;;  %v6416_v29 = vpack.c.bf16 %v1692_v16, %v1692_v16  ;;  %3888 = vrot.lane.b32.xlu0 %v3707_v13, %s7552_s27  ;;  %v8635_v3 = vcombine.low %v2480_v15, %v8617_v54  ;;  %v8652_v23 = vpop.f32.mrb[47].mxu1  ;;  %v2300_v15 = vld [vmem:[#allocation2 + $0x78] sm:$0xf] }
 0x27c   : > { %v2693_v41 = vrot.slane %v2691_v40, 1  ;;  %v7131_v18 = vpop.eup %7130  ;;  %v2032_v6 = vsel %vm8403_vm13, %v2024_v12, %v2031_v27  ;;  %v2284_v56 = vsel %vm8212_vm5, %v2033_v63, %v2283_v36  ;;  %v3185_v57 = vshrl.u32 %v8500_v21, 16  ;;  %v2356_v36 = vld [vmem:[#allocation2 + $0x28] sm:$0xf] }
 0x27d   : > { %v2689_v19 = vor.u32 %v2688_v49, %v2684_v58  ;;  %2282 = vst.msk [vmem:[#allocation2 + $0x58] sm:$0xf] %vm1706_vm8, %v2032_v6  ;;  %2285 = vst [vmem:[#allocation2 + $0x5c] sm:$0x1] %v2284_v56  ;;  %v2069_v55 = vshrl.u32 %v6416_v29, 16  ;;  %v2072_v48 = vshll.u32 %v6416_v29, 16  ;;  %v1690_v52 = vmul.f32 %v7131_v18, %v8524_v53 }
 0x27e   : > { %3110 = vrot.lane.b32.xlu1 %v8615_v33, %s7548_s17  ;;  %v10466_v12 = vshll.u32 %v8500_v21, 16  ;;  %v3192_v13 = vshll.u32 %v8578_v0, 16  ;;  %v3465_v58 = vrot.slane %v6207_v34, 1  ;;  %v3466_v40 = vrot.slane %v8630_v47, 1  ;;  %v6869_v53 = vld [vmem:[%s10279_s7] sm:$0xff]  }
 0x27f   : > { %v2694_v16 = vsel %vm2670_vm10, %v2689_v19, %v2693_v41  ;;  %v7133_v27 = vpop.eup %7132  ;;  %v8660_v63 = vrot.slane %v2069_v55, 7  ;;  %v6414_v21 = vpack.c.bf16 %v1690_v52, %v1690_v52  ;;  %v3711_v49 = vshll.u32 %v8635_v3, 16  ;;  %v8664_v18 = vld [vmem:[#allocation2 + $0x2c] ss:$0 sps:$4 sm:$0x11]   ;;  %6588 = vmatprep.subr.bf16.mxu0 %v6869_v53 }
 0x280   : > { %v3189_v60 = vrot.slane %v10466_v12, 1  ;;  %2865 = vrot.lane.b32.xlu0 %v2694_v16, %s10369_s20  ;;  %v1693_v0 = vmul.f32 %v7133_v27, %v8527_v44  ;;  %v3194_v34 = vrot.slane %v3192_v13, 1  ;;  %v3467_v41 = vsel %vm2943_vm9, %v3465_v58, %v3466_v40  ;;  %v8668_v6 = vld [vmem:[#allocation2 + $0x30] sm:$0xe]  ;;  %v2400_v44 = vld [vmem:[#allocation2 + $0x24] sm:$0xe]  ;;  %6589 = vmatpush3.bf16.msra.mxu0 %v6869_v53 }
 0x281   : > { %v8671_v56 = vcombine.low %v2482_v51, %v8644_v9  ;;  %v2074_v19 = vor.u32 %v2072_v48, %v8660_v63  ;;  %v2052_v55 = vshrl.u32 %v6414_v21, 16  ;;  %v2055_v52 = vshll.u32 %v6414_v21, 16  ;;  %v2293_v16 = vld [vmem:[#allocation2 + $0x6c] sm:$0xf]  ;;  %v2355_v53 = vld [vmem:[#allocation2 + $0x24] sm:$0xf] }
 0x282   : > { %v3190_v29 = vor.u32 %v3189_v60, %v3185_v57  ;;  %3618 = vrot.lane.b32.xlu1 %v8635_v3, %s7545_s0  ;;  %v6254_v57 = vcombine.low %v8668_v6, %v8644_v9  ;;  %v2075_v60 = vrot.slane %v8660_v63, 4  ;;  %v6417_v13 = vpack.c.bf16 %v1693_v0, %v1693_v0  ;;  %v6870_v48 = vld [vmem:[%s10279_s7 + $0x8] sm:$0xff]  }
 0x283   : > { %v7135_v12 = vpop.eup %7134  ;;  %v6159_v58 = vcombine.low %v2400_v44, %v2356_v36  ;;  %v2301_v40 = vsel %vm8396_vm12, %v2074_v19, %v2300_v15  ;;  %v8685_v27 = vrot.slane %v2052_v55, 7  ;;  %v2954_v63 = vrot.slane %v8664_v18, 1  ;;  %v8690_v0 = vld [vmem:[#allocation2 + $0x28] sm:$0xf]  ;;  %6590 = vmatprep.subr.bf16.mxu0 %v6870_v48 }
 0x284   : > { %v3195_v51 = vsel %vm2670_vm10, %v3190_v29, %v3194_v34  ;;  %v1691_v21 = vmul.f32 %v7135_v12, %v8530_v32  ;;  %2302 = vst [vmem:[#allocation2 + $0x78] sm:$0xf] %v2301_v40  ;;  %v2077_v29 = vshrl.u32 %v6417_v13, 16  ;;  %v2080_v34 = vshll.u32 %v6417_v13, 16  ;;  %v2417_v12 = vld [vmem:[#allocation2 + $0x24] sm:$0xf]  ;;  %6591 = vmatpush3.bf16.msra.mxu0 %v6870_v48 }
 0x285   : > { %3376 = vrot.lane.b32.xlu0 %v3195_v51, %s7551_s30  ;;  %v2953_v28 = vrot.slane %v6159_v58, 1  ;;  %v2057_v15 = vor.u32 %v2055_v52, %v8685_v27  ;;  %v2058_v19 = vrot.slane %v8685_v27, 4  ;;  %v8696_v32 = vcombine.low %v2355_v53, %v2356_v36  ;;  %v8698_v51 = vld [vmem:[#allocation2 + $0x24] sm:$0xe]  ;;  %v2304_v27 = vld [vmem:[#allocation2 + $0x80] sm:$0x1] }
 0x286   : > { %v6415_v55 = vpack.c.bf16 %v1691_v21, %v1691_v21  ;;  %3510 = vrot.lane.b32.xlu1 %v3467_v41, %s7549_s18  ;;  %v2079_v40 = vrot.slane %v2077_v29, 7  ;;  %v8702_v44 = vcombine.low %v2417_v12, %v8690_v0  ;;  %v3221_v48 = vshrl.u32 %v8615_v33, 16  ;;  %v2423_v52 = vld [vmem:[#allocation2 + $0x48] sm:$0xf] }
 0x287   : > { %v2955_v13 = vsel %vm2943_vm9, %v2953_v28, %v2954_v63  ;;  %v2294_v58 = vsel %vm8396_vm12, %v2057_v15, %v2293_v16  ;;  %v6874_v28 = vld [vmem:[%s10279_s7 + $0x10] sm:$0xff]   ;;  %v3225_v63 = vrot.slane %v3223_v59, 1  ;;  %v3228_v16 = vshll.u32 %v8630_v47, 16 }
 0x288   : > { %v2060_v41 = vshrl.u32 %v6415_v55, 16  ;;  %v2063_v36 = vshll.u32 %v6415_v55, 16  ;;  %2295 = vst [vmem:[#allocation2 + $0x6c] sm:$0xf] %v2294_v58  ;;  %v2082_v21 = vor.u32 %v2080_v34, %v2079_v40  ;;  %v2084_v53 = vrot.slane %v2079_v40, 4  ;;  %6592 = vmatprep.subr.bf16.mxu0 %v6874_v28 }
 0x289   : > { %3620 = vrot.lane.b32.xlu0 %v8671_v56, %s7545_s0  ;;  %v2297_v15 = vld [vmem:[#allocation2 + $0x74] sm:$0x1]  ;;  %v8721_v55 = vld [vmem:[%s10277_s5] ss:$0 sm:$0xff]  ;;  %v3226_v40 = vor.u32 %v3225_v63, %v3221_v48  ;;  %6593 = vmatpush3.bf16.msra.mxu0 %v6874_v28  ;;  %v3974_v63 = vrot.slane %v6254_v57, 1 }
 0x28a   : > { %v2062_v29 = vrot.slane %v2060_v41, 7  ;;  %2998 = vrot.lane.b32.xlu1 %v2955_v13, %s7546_s29  ;;  %v1433_v12 = vmul.f32 %v8721_v55, %v8410_v38  ;;  %v1431_v34 = vmul.f32 %v8721_v55, %v8414_v22  ;;  %v1434_v33 = vmul.f32 %v8721_v55, %v8424_v20  ;;  %v8733_v58 = vld [vmem:[#allocation2 + $0x38] ss:$0 sps:$4 sm:$0x11]   ;;  %v2358_v41 = vld [vmem:[#allocation2 + $0x34] sm:$0xf] }
 0x28b   : > { %v2083_v47 = vsel %vm8403_vm13, %v2075_v60, %v2082_v21  ;;  %v2305_v59 = vsel %vm8212_vm5, %v2084_v53, %v2304_v27  ;;  %v3230_v13 = vrot.slane %v3228_v16, 1  ;;  %v8741_v20 = vld [vmem:[%s10278_s6] ss:$0 sm:$0xff]  ;;  %v6812_v48 = vld [vmem:[#allocation2 + $0x38] ss:$0 sps:$4 sm:$0x11]   ;;  %v1432_v53 = vmul.f32 %v8721_v55, %v8431_v39 }
 0x28c   : > { %2303 = vst.msk [vmem:[#allocation2 + $0x7c] sm:$0xf] %vm1706_vm8, %v2083_v47  ;;  %2306 = vst [vmem:[#allocation2 + $0x80] sm:$0x1] %v2305_v59  ;;  %v2065_v22 = vor.u32 %v2063_v36, %v2062_v29  ;;  %v2067_v38 = vrot.slane %v2062_v29, 4  ;;  %v8744_v60 = vadd.f32 %v8741_v20, %v1433_v12  ;;  %v8747_v27 = vadd.f32 %v8741_v20, %v1431_v34  ;;  %v6877_v36 = vld [vmem:[%s10279_s7 + $0x18] sm:$0xff]  }
 0x28d   : > { %3108 = vrot.lane.b32.xlu0 %v8702_v44, %s7548_s17  ;;  %v3231_v28 = vsel %vm2670_vm10, %v3226_v40, %v3230_v13  ;;  %v8754_v21 = vadd.f32 %v8741_v20, %v1434_v33  ;;  %v2357_v16 = vld [vmem:[#allocation2 + $0x30] sm:$0xf]  ;;  %6594 = vmatprep.subr.bf16.mxu0 %v6877_v36  ;;  %v8771_v9 = vadd.f32 %v8741_v20, %v1432_v53  ;;  %v3975_v6 = vrot.slane %v8733_v58, 1 }
 0x28e   : > { %v2401_v29 = vld [vmem:[#allocation2 + $0x30] sm:$0xe]  ;;  %v2066_v12 = vsel %vm8403_vm13, %v2058_v19, %v2065_v22  ;;  %v2298_v34 = vsel %vm8212_vm5, %v2067_v38, %v2297_v15  ;;  %3382 = vrot.lane.b32.xlu1 %v3231_v28, %s7551_s30  ;;  %v6082_v33 = vmul.f32 -1.442695, %v8744_v60  ;;  %v6080_v47 = vmul.f32 -1.442695, %v8747_v27  ;;  %6595 = vmatpush3.bf16.msra.mxu0 %v6877_v36 }
 0x28f   : > { %2296 = vst.msk [vmem:[#allocation2 + $0x70] sm:$0xf] %vm1706_vm8, %v2066_v12  ;;  %2299 = vst [vmem:[#allocation2 + $0x74] sm:$0x1] %v2298_v34  ;;  %v6083_v39 = vmul.f32 -1.442695, %v8754_v21  ;;  %v8774_v57 = vcombine.low %v2357_v16, %v2358_v41  ;;  %v6160_v40 = vcombine.low %v2401_v29, %v2358_v41  ;;  %v3976_v22 = vsel %vm2943_vm9, %v3974_v63, %v3975_v6 }
 0x290   : > { %v6814_v19 = vld [vmem:[#allocation2 + $0x2c] ss:$0 sps:$4 sm:$0x11]   ;;  %v3211_v15 = vshll.u32 %v8702_v44, 16  ;;  %7136 = vpow2.f32 %v6082_v33  ;;  %v2727_v59 = vshll.u32 %v6812_v48, 16  ;;  %v2957_v38 = vrot.slane %v6812_v48, 1 }
 0x291   : > { %7138 = vpow2.f32 %v6080_v47  ;;  %v6081_v13 = vmul.f32 -1.442695, %v8771_v9  ;;  %4020 = vrot.lane.b32.xlu0 %v3976_v22, %s7550_s21  ;;  %v2720_v28 = vshrl.u32 %v8774_v57, 16  ;;  %v2722_v53 = vshll.u32 %v8774_v57, 16 }
 0x292   : > { %7140 = vpow2.f32 %v6083_v39  ;;  %v2956_v16 = vrot.slane %v6160_v40, 1  ;;  %v3709_v36 = vshrl.u32 %v8635_v3, 16  ;;  %v3713_v41 = vrot.slane %v3711_v49, 1  ;;  %v8785_v12 = vld [vmem:[#allocation2 + $0x2c] ss:$0 sps:$4 sm:$0x11]  }
 0x293   : > { %7142 = vpow2.f32 %v6081_v13  ;;  %v3716_v29 = vshll.u32 %v6814_v19, 16  ;;  %v2724_v34 = vrot.slane %v2722_v53, 1  ;;  %v2729_v63 = vrot.slane %v2727_v59, 1  ;;  %v2424_v39 = vld [vmem:[#allocation2 + $0x4c] sm:$0xf] }
 0x294   : > { %v10467_v48 = vcombine.low %v8621_v8, %v8617_v54  ;;  %v3972_v47 = vrot.slane %v6814_v19, 1  ;;  %v2958_v6 = vsel %vm2943_vm9, %v2956_v16, %v2957_v38  ;;  %v3714_v40 = vor.u32 %v3713_v41, %v3709_v36  ;;  %v2466_v19 = vld [vmem:[#allocation2 + $0x48] sm:$0xe]  ;;  %v8802_v41 = vld [vmem:[#allocation2 + $0x40] sm:$0xf] }
 0x295   : > { %v3718_v13 = vrot.slane %v3716_v29, 1  ;;  %v2710_v22 = vshll.u32 %v8696_v32, 16  ;;  %v2725_v3 = vor.u32 %v2724_v34, %v2720_v28  ;;  %3000 = vrot.lane.b32.xlu0 %v2958_v6, %s7546_s29  ;;  %v2708_v49 = vshrl.u32 %v8696_v32, 16  ;;  %v8811_v6 = vld [vmem:[#allocation2 + $0x3c] sm:$0xe] }
 0x296   : > { %v3971_v33 = vrot.slane %v10467_v48, 1  ;;  %v2715_v59 = vshll.u32 %v8664_v18, 16  ;;  %v10468_v54 = vcombine.low %v8698_v51, %v8690_v0  ;;  %v3463_v16 = vrot.slane %v8785_v12, 1  ;;  %v2484_v48 = vld [vmem:[#allocation2 + $0x3c] sm:$0xf] }
 0x297   : > { %v2712_v38 = vrot.slane %v2710_v22, 1  ;;  %v8800_v36 = vcombine.low %v2423_v52, %v2424_v39  ;;  %v2730_v28 = vsel %vm2670_vm10, %v2725_v3, %v2729_v63  ;;  %v3719_v29 = vsel %vm2670_vm10, %v3714_v40, %v3718_v13  ;;  %v8813_v22 = vld [vmem:[#allocation2 + $0x50] ss:$0 sps:$4 sm:$0x11]  }
 0x298   : > { %v3462_v8 = vrot.slane %v10468_v54, 1  ;;  %v3973_v53 = vsel %vm2943_vm9, %v3971_v33, %v3972_v47  ;;  %v2717_v34 = vrot.slane %v2715_v59, 1  ;;  %v6209_v18 = vcombine.low %v2466_v19, %v2424_v39  ;;  %2871 = vrot.lane.b32.xlu1 %v2730_v28, %s10369_s20 }
 0x299   : > { %v2713_v0 = vor.u32 %v2712_v38, %v2708_v49  ;;  %v3721_v33 = vshrl.u32 %v8671_v56, 16  ;;  %v10469_v47 = vshll.u32 %v8671_v56, 16  ;;  %4018 = vrot.lane.b32.xlu0 %v3973_v53, %s7550_s21  ;;  %v3247_v39 = vshll.u32 %v8800_v36, 16  ;;  %v8823_v49 = vld [vmem:[#allocation2 + $0x4c] sm:$0xf] }
 0x29a   : > { %v3464_v51 = vsel %vm2943_vm9, %v3462_v8, %v3463_v16  ;;  %v7137_v63 = vpop.eup %7136  ;;  %v3728_v40 = vshll.u32 %v8733_v58, 16  ;;  %v8819_v13 = vcombine.low %v2484_v48, %v8802_v41  ;;  %v8825_v56 = vld [vmem:[#allocation2 + $0x44] ss:$0 sps:$4 sm:$0x11]   ;;  %v3209_v19 = vshrl.u32 %v8702_v44, 16 }
 0x29b   : > { %v3725_v52 = vrot.slane %v10469_v47, 1  ;;  %v7139_v59 = vpop.eup %7138  ;;  %v1600_v54 = vadd.f32 1.0, %v7137_v63  ;;  %v3213_v53 = vrot.slane %v3211_v15, 1  ;;  %v2718_v58 = vsel %vm2670_vm10, %v2713_v0, %v2717_v34  ;;  %v2486_v34 = vld [vmem:[#allocation2 + $0x48] sm:$0xf] }
 0x29c   : > { %v7141_v38 = vpop.eup %7140  ;;  %v1598_v16 = vadd.f32 1.0, %v7139_v59  ;;  %v3730_v28 = vrot.slane %v3728_v40, 1  ;;  %v3216_v48 = vshll.u32 %v8785_v12, 16  ;;  %3890 = vrot.lane.b32.xlu1 %v3719_v29, %s7552_s27  ;;  %v3471_v26 = vrot.slane %v6209_v18, 1  ;;  %v2530_v0 = vld [vmem:[#allocation2 + $0x48] sm:$0xe] }
 0x29d   : > { %v3726_v8 = vor.u32 %v3725_v52, %v3721_v33  ;;  %v7143_v47 = vpop.eup %7142  ;;  %7144 = vrcp.f32 %v1600_v54  ;;  %v1601_v3 = vadd.f32 1.0, %v7141_v38  ;;  %v3214_v10 = vor.u32 %v3213_v53, %v3209_v19  ;;  %3508 = vrot.lane.b32.xlu0 %v3464_v51, %s7549_s18  ;;  %v1758_v52 = vld [vmem:[#allocation2 + $0xa8] sm:$0x1]  ;;  %v2402_v18 = vld [vmem:[#allocation2 + $0x3c] sm:$0xe] }
 0x29e   : > { %7146 = vrcp.f32 %v1598_v16  ;;  %v1599_v33 = vadd.f32 1.0, %v7143_v47  ;;  %v3218_v12 = vrot.slane %v3216_v48, 1  ;;  %v3472_v63 = vrot.slane %v8813_v22, 1  ;;  %v8838_v40 = vld [vmem:[#allocation2 + $0x40] sm:$0xf] }
 0x29f   : > { %v3731_v44 = vsel %vm2670_vm10, %v3726_v8, %v3730_v28  ;;  %7148 = vrcp.f32 %v1601_v3  ;;  %v8836_v29 = vcombine.low %v2486_v34, %v8823_v49  ;;  %v1755_v59 = vld [vmem:[#allocation2 + $0x9c] sm:$0x1]  ;;  %v6256_v51 = vcombine.low %v2530_v0, %v8823_v49  ;;  %v1808_v53 = vld [vmem:[#allocation2 + $0xb0] sm:$0x1]  ;;  %v8850_v47 = vld [vmem:[#allocation2 + $0x3c] sm:$0xe] }
 0x2a0   : > { %7150 = vrcp.f32 %v1599_v33  ;;  %v2359_v54 = vld [vmem:[#allocation2 + $0x3c] sm:$0xf]  ;;  %v6161_v8 = vcombine.low %v2402_v18, %v2360_v46  ;;  %v2960_v19 = vrot.slane %v8825_v56, 1  ;;  %2869 = vrot.lane.b32.xlu1 %v2718_v58, %s10369_s20  ;;  %v3219_v3 = vsel %vm2670_vm10, %v3214_v10, %v3218_v12  ;;  %v1805_v49 = vld [vmem:[#allocation2 + $0xa4] sm:$0x1] }
 0x2a1   : > { %v8845_v38 = vsel %vm2943_vm9, %v3471_v26, %v3472_v63  ;;  %v8848_v28 = vcombine.low %v2359_v54, %v2360_v46  ;;  %v2421_v48 = vld [vmem:[#allocation2 + $0x3c] sm:$0xf]  ;;  %3892 = vrot.lane.b32.xlu0 %v3731_v44, %s7552_s27  ;;  %v3245_v58 = vshrl.u32 %v8800_v36, 16  ;;  %v3249_v10 = vrot.slane %v3247_v39, 1 }
 0x2a2   : > { %v2959_v33 = vrot.slane %v6161_v8, 1  ;;  %v8854_v34 = vcombine.low %v2421_v48, %v8838_v40  ;;  %v3252_v0 = vshll.u32 %v8813_v22, 16  ;;  %v1437_v46 = vmul.f32 %v8721_v55, %v8440_v7  ;;  %v8864_v63 = vld [vmem:[#allocation2 + $0x50] ss:$0 sps:$4 sm:$0x11]  }
 0x2a3   : > { %v1759_v12 = vsel %vm8212_vm5, 0, %v1758_v52  ;;  %v3250_v18 = vor.u32 %v3249_v10, %v3245_v58  ;;  %v1435_v39 = vmul.f32 %v8721_v55, %v8445_v45  ;;  %v1756_v54 = vsel %vm8212_vm5, 0, %v1755_v59  ;;  %v2361_v10 = vld [vmem:[#allocation2 + $0x48] sm:$0xf] }
 0x2a4   : > { %v8867_v44 = vsel %vm2943_vm9, %v2959_v33, %v2960_v19  ;;  %1760 = vst [vmem:[#allocation2 + $0xa8] sm:$0x1] %v1759_v12  ;;  %3114 = vrot.lane.b32.xlu1 %v8800_v36, %s7548_s17  ;;  %v3254_v7 = vrot.slane %v3252_v0, 1  ;;  %v8876_v22 = vadd.f32 %v8741_v20, %v1437_v46  ;;  %1757 = vst [vmem:[#allocation2 + $0x9c] sm:$0x1] %v1756_v54  ;;  %v1809_v8 = vsel %vm8222_vm7, 0, %v1808_v53 }
 0x2a5   : > { %v1438_v52 = vmul.f32 %v8721_v55, %v8447_v4  ;;  %v8882_v19 = vld [vmem:[#allocation2 + $0x4c] sm:$0xf]  ;;  %3380 = vrot.lane.b32.xlu0 %v3219_v3, %s7551_s30  ;;  %v8886_v45 = vadd.f32 %v8741_v20, %v1435_v39  ;;  %1810 = vst [vmem:[#allocation2 + $0xb0] sm:$0x1] %v1809_v8  ;;  %v1436_v36 = vmul.f32 %v8721_v55, %v8470_v5  ;;  %v1806_v59 = vsel %vm8222_vm7, 0, %v1805_v49 }
 0x2a6   : > { %v3980_v48 = vrot.slane %v6256_v51, 1  ;;  %v8893_v4 = vsel %vm2670_vm10, %v3250_v18, %v3254_v7  ;;  %v6086_v53 = vmul.f32 -1.442695, %v8876_v22  ;;  %1807 = vst [vmem:[#allocation2 + $0xa4] sm:$0x1] %v1806_v59  ;;  %v3981_v3 = vrot.slane %v8864_v63, 1 }
 0x2a7   : > { %v7145_v33 = vpop.eup %7144  ;;  %v8897_v58 = vadd.f32 %v8741_v20, %v1438_v52  ;;  %v6084_v46 = vmul.f32 -1.442695, %v8886_v45  ;;  %v8903_v51 = vadd.f32 %v8741_v20, %v1436_v36  ;;  %v8906_v49 = vcombine.low %v2361_v10, %v8882_v19 }
 0x2a8   : > { %v7147_v0 = vpop.eup %7146  ;;  %v1696_v5 = vmul.f32 %v7145_v33, %v8744_v60  ;;  %3622 = vrot.lane.b32.xlu1 %v8819_v13, %s7545_s0  ;;  %7152 = vpow2.f32 %v6086_v53  ;;  %v3982_v54 = vsel %vm2943_vm9, %v3980_v48, %v3981_v3  ;;  %v8913_v60 = vld [vmem:[#allocation2 + $0x50] ss:$0 sps:$4 sm:$0x11]  }
 0x2a9   : > { %10470 = vst [vmem:[#allocation80_spill] sm:$0xff] %v8906_v49  ;;  %v7149_v12 = vpop.eup %7148  ;;  %v1694_v18 = vmul.f32 %v7147_v0, %v8747_v27  ;;  %v6087_v39 = vmul.f32 -1.442695, %v8897_v58  ;;  %3624 = vrot.lane.b32.xlu0 %v8836_v29, %s7545_s0  ;;  %7154 = vpow2.f32 %v6084_v46  ;;  %v6085_v27 = vmul.f32 -1.442695, %v8903_v51 }
 0x2aa   : > { %v7151_v7 = vpop.eup %7150  ;;  %v6420_v52 = vpack.c.bf16 %v1696_v5, %v1696_v5  ;;  %v1697_v8 = vmul.f32 %v7149_v12, %v8754_v21  ;;  %v2744_v33 = vshrl.u32 %v8906_v49, 16  ;;  %v2746_v21 = vshll.u32 %v8906_v49, 16  ;;  %v2314_v12 = vld [vmem:[#allocation2 + $0x90] sm:$0xf] }
 0x2ab   : > { %v6418_v36 = vpack.c.bf16 %v1694_v18, %v1694_v18  ;;  %v1695_v59 = vmul.f32 %v7151_v7, %v8771_v9  ;;  %7156 = vpow2.f32 %v6087_v39  ;;  %v2751_v9 = vshll.u32 %v8913_v60, 16  ;;  %v2307_v7 = vld [vmem:[#allocation2 + $0x84] sm:$0xf] }
 0x2ac   : > { %v2103_v53 = vshrl.u32 %v6420_v52, 16  ;;  %v2106_v48 = vshll.u32 %v6420_v52, 16  ;;  %v6421_v3 = vpack.c.bf16 %v1697_v8, %v1697_v8  ;;  %7158 = vpow2.f32 %v6085_v27  ;;  %3514 = vrot.lane.b32.xlu1 %v8845_v38, %s7549_s18 }
 0x2ad   : > { %v2086_v10 = vshrl.u32 %v6418_v36, 16  ;;  %v2089_v0 = vshll.u32 %v6418_v36, 16  ;;  %v6419_v5 = vpack.c.bf16 %v1695_v59, %v1695_v59  ;;  %3112 = vrot.lane.b32.xlu0 %v8854_v34, %s7548_s17  ;;  %v2748_v27 = vrot.slane %v2746_v21, 1 }
 0x2ae   : > { %v2105_v46 = vrot.slane %v2103_v53, 7  ;;  %v2111_v18 = vshrl.u32 %v6421_v3, 16  ;;  %v2114_v16 = vshll.u32 %v6421_v3, 16  ;;  %v2753_v38 = vrot.slane %v2751_v9, 1  ;;  %v2318_v53 = vld [vmem:[#allocation2 + $0x98] sm:$0x1] }
 0x2af   : > { %v2088_v39 = vrot.slane %v2086_v10, 7  ;;  %v2094_v52 = vshrl.u32 %v6419_v5, 16  ;;  %v2097_v8 = vshll.u32 %v6419_v5, 16  ;;  %v2749_v3 = vor.u32 %v2748_v27, %v2744_v33  ;;  %v2311_v5 = vld [vmem:[#allocation2 + $0x8c] sm:$0x1] }
 0x2b0   : > { %v2108_v36 = vor.u32 %v2106_v48, %v2105_v46  ;;  %v2109_v59 = vrot.slane %v2105_v46, 4  ;;  %v2113_v26 = vrot.slane %v2111_v18, 7  ;;  %3002 = vrot.lane.b32.xlu1 %v8867_v44, %s7546_s29  ;;  %v6162_v48 = vcombine.low %v2403_v11, %v8882_v19  ;;  %v6832_v33 = vld [vmem:[#allocation2 + $0x44] ss:$0 sps:$4 sm:$0x11]  }
 0x2b1   : > { %v2091_v15 = vor.u32 %v2089_v0, %v2088_v39  ;;  %v2092_v42 = vrot.slane %v2088_v39, 4  ;;  %v2096_v43 = vrot.slane %v2094_v52, 7  ;;  %4024 = vrot.lane.b32.xlu0 %v3982_v54, %s7550_s21  ;;  %v2754_v44 = vsel %vm2670_vm10, %v2749_v3, %v2753_v38  ;;  %v2427_v3 = vld [vmem:[#allocation2 + $0x60] sm:$0xf] }
 0x2b2   : > { %v2315_v10 = vsel %vm8396_vm12, %v2108_v36, %v2314_v12  ;;  %v2116_v35 = vor.u32 %v2114_v16, %v2113_v26  ;;  %v2118_v1 = vrot.slane %v2113_v26, 4  ;;  %v7153_v21 = vpop.eup %7152  ;;  %v2962_v11 = vrot.slane %v6162_v48, 1 }
 0x2b3   : > { %2316 = vst [vmem:[#allocation2 + $0x90] sm:$0xf] %v2315_v10  ;;  %v2308_v0 = vsel %vm8396_vm12, %v2091_v15, %v2307_v7  ;;  %v2099_v46 = vor.u32 %v2097_v8, %v2096_v43  ;;  %v2101_v18 = vrot.slane %v2096_v43, 4  ;;  %v7155_v9 = vpop.eup %7154  ;;  %v1604_v54 = vadd.f32 1.0, %v7153_v21  ;;  %v2428_v10 = vld [vmem:[#allocation2 + $0x64] sm:$0xf] }
 0x2b4   : > { %2309 = vst [vmem:[#allocation2 + $0x84] sm:$0xf] %v2308_v0  ;;  %v2117_v16 = vsel %vm8403_vm13, %v2109_v59, %v2116_v35  ;;  %v2319_v26 = vsel %vm8212_vm5, %v2118_v1, %v2318_v53  ;;  %3386 = vrot.lane.b32.xlu1 %v8893_v4, %s7551_s30  ;;  %v1602_v12 = vadd.f32 1.0, %v7155_v9  ;;  %v2963_v35 = vrot.slane %v8913_v60, 1  ;;  %v8951_v1 = vld [vmem:[%s10279_s7 + $0x20] ss:$0 sps:$4 sm:$0xff]  }
 0x2b5   : > { %v7157_v19 = vpop.eup %7156  ;;  %2317 = vst.msk [vmem:[#allocation2 + $0x94] sm:$0xf] %vm1706_vm8, %v2117_v16  ;;  %2320 = vst [vmem:[#allocation2 + $0x98] sm:$0x1] %v2319_v26  ;;  %v2100_v43 = vsel %vm8403_vm13, %v2092_v42, %v2099_v46  ;;  %v2312_v15 = vsel %vm8212_vm5, %v2101_v18, %v2311_v5  ;;  %7160 = vrcp.f32 %v1604_v54  ;;  %v3733_v7 = vshrl.u32 %v8819_v13, 16  ;;  %6701 = vmatprep.subr.msk.bf16.mxu0 %vm1239_vm1, %v8951_v1 }
 0x2b6   : > { %v7159_v39 = vpop.eup %7158  ;;  %2310 = vst.msk [vmem:[#allocation2 + $0x88] sm:$0xf] %vm1706_vm8, %v2100_v43  ;;  %2313 = vst [vmem:[#allocation2 + $0x8c] sm:$0x1] %v2312_v15  ;;  %v1605_v42 = vadd.f32 1.0, %v7157_v19  ;;  %v10471_v52 = vshll.u32 %v8819_v13, 16  ;;  %7162 = vrcp.f32 %v1602_v12  ;;  %v2964_v27 = vsel %vm2943_vm9, %v2962_v11, %v2963_v35 }
 0x2b7   : > { %v8957_v4 = vld [vmem:[#allocation2 + $0x44] ss:$0 sps:$4 sm:$0x11]   ;;  %v1603_v60 = vadd.f32 1.0, %v7159_v39  ;;  %v3740_v36 = vshll.u32 %v6832_v33, 16  ;;  %3004 = vrot.lane.b32.xlu0 %v2964_v27, %s7546_s29  ;;  %v10472_v38 = vcombine.low %v8811_v6, %v8802_v41  ;;  %v3978_v13 = vrot.slane %v6832_v33, 1 }
 0x2b8   : > { %v3737_v8 = vrot.slane %v10471_v52, 1  ;;  %7164 = vrcp.f32 %v1605_v42  ;;  %v3235_v5 = vshll.u32 %v8854_v34, 16  ;;  %2875 = vrot.lane.b32.xlu1 %v2754_v44, %s10369_s20  ;;  %v2734_v48 = vshll.u32 %v8848_v28, 16  ;;  %v2468_v21 = vld [vmem:[#allocation2 + $0x60] sm:$0xe] }
 0x2b9   : > { %v3977_v53 = vrot.slane %v10472_v38, 1  ;;  %7166 = vrcp.f32 %v1603_v60  ;;  %v2488_v0 = vld [vmem:[#allocation2 + $0x54] sm:$0xf]  ;;  %v3742_v46 = vrot.slane %v3740_v36, 1  ;;  %v2739_v18 = vshll.u32 %v8825_v56, 16 }
 0x2ba   : > { %v3738_v59 = vor.u32 %v3737_v8, %v3733_v7  ;;  %v10473_v9 = vcombine.low %v8850_v47, %v8838_v40  ;;  %v3469_v6 = vrot.slane %v8957_v4, 1  ;;  %v8974_v33 = vld [vmem:[#allocation2 + $0x58] sm:$0xf]  ;;  %v2732_v26 = vshrl.u32 %v8848_v28, 16  ;;  %v8980_v11 = vld [vmem:[#allocation2 + $0x54] sm:$0xe] }
 0x2bb   : > { %v3979_v16 = vsel %vm2943_vm9, %v3977_v53, %v3978_v13  ;;  %v2736_v44 = vrot.slane %v2734_v48, 1  ;;  %v8978_v54 = vcombine.low %v2427_v3, %v2428_v10  ;;  %v6211_v56 = vcombine.low %v2468_v21, %v2428_v10  ;;  %v8987_v15 = vld [vmem:[#allocation2 + $0x68] ss:$0 sps:$4 sm:$0x11]   ;;  %v2490_v42 = vld [vmem:[#allocation2 + $0x60] sm:$0xf] }
 0x2bc   : > { %v3468_v41 = vrot.slane %v10473_v9, 1  ;;  %v3743_v19 = vsel %vm2670_vm10, %v3738_v59, %v3742_v46  ;;  %4022 = vrot.lane.b32.xlu0 %v3979_v16, %s7550_s21  ;;  %v3745_v40 = vshrl.u32 %v8836_v29, 16  ;;  %v10474_v47 = vshll.u32 %v8836_v29, 16  ;;  %v8994_v7 = vld [vmem:[#allocation2 + $0x64] sm:$0xf] }
 0x2bd   : > { %3894 = vrot.lane.b32.xlu1 %v3743_v19, %s7552_s27  ;;  %v2737_v12 = vor.u32 %v2736_v44, %v2732_v26  ;;  %v3752_v35 = vshll.u32 %v8864_v63, 16  ;;  %v8992_v39 = vcombine.low %v2488_v0, %v8974_v33  ;;  %v2741_v52 = vrot.slane %v2739_v18, 1  ;;  %v8997_v29 = vld [vmem:[#allocation2 + $0x60] sm:$0xe]  ;;  %v2404_v53 = vld [vmem:[#allocation2 + $0x54] sm:$0xe] }
 0x2be   : > { %v3749_v43 = vrot.slane %v10474_v47, 1  ;;  %v3470_v8 = vsel %vm2943_vm9, %v3468_v41, %v3469_v6  ;;  %v3237_v27 = vrot.slane %v3235_v5, 1  ;;  %v3271_v36 = vshll.u32 %v8978_v54, 16  ;;  %v9007_v21 = vld [vmem:[#allocation2 + $0x5c] ss:$0 sps:$4 sm:$0x11]  }
 0x2bf   : > { %v6257_v59 = vcombine.low %v8980_v11, %v8974_v33  ;;  %v3233_v63 = vshrl.u32 %v8854_v34, 16  ;;  %v3240_v38 = vshll.u32 %v8957_v4, 16  ;;  %v7161_v13 = vpop.eup %7160  ;;  %v2742_v3 = vsel %vm2670_vm10, %v2737_v12, %v2741_v52  ;;  %v2364_v9 = vld [vmem:[#allocation2 + $0x58] sm:$0xf]  ;;  %v2425_v52 = vld [vmem:[#allocation2 + $0x54] sm:$0xf] }
 0x2c0   : > { %v3750_v60 = vor.u32 %v3749_v43, %v3745_v40  ;;  %3512 = vrot.lane.b32.xlu0 %v3470_v8, %s7549_s18  ;;  %v3754_v10 = vrot.slane %v3752_v35, 1  ;;  %v3477_v48 = vrot.slane %v6211_v56, 1  ;;  %v3478_v5 = vrot.slane %v8987_v15, 1  ;;  %v7163_v0 = vpop.eup %7162  ;;  %v2363_v43 = vld [vmem:[#allocation2 + $0x54] sm:$0xf] }
 0x2c1   : > { %v1700_v46 = vmul.f32 %v7161_v13, %v8876_v22  ;;  %2873 = vrot.lane.b32.xlu1 %v2742_v3, %s10369_s20  ;;  %v3759_v34 = vshll.u32 %v8992_v39, 16  ;;  %v3238_v4 = vor.u32 %v3237_v27, %v3233_v63  ;;  %v9013_v18 = vcombine.low %v2490_v42, %v8994_v7  ;;  %v9024_v8 = vld [vmem:[#allocation2 + $0x58] sm:$0xf] }
 0x2c2   : > { %v7165_v41 = vpop.eup %7164  ;;  %v1698_v6 = vmul.f32 %v7163_v0, %v8886_v45  ;;  %v3755_v16 = vsel %vm2670_vm10, %v3750_v60, %v3754_v10  ;;  %v3242_v26 = vrot.slane %v3240_v38, 1  ;;  %v6163_v44 = vcombine.low %v2404_v53, %v2364_v9  ;;  %v2328_v38 = vld [vmem:[#allocation2 + $0xa8] sm:$0xf] }
 0x2c3   : > { %v7167_v19 = vpop.eup %7166  ;;  %v6424_v56 = vpack.c.bf16 %v1700_v46, %v1700_v46  ;;  %v1701_v22 = vmul.f32 %v7165_v41, %v8897_v58  ;;  %v3479_v40 = vsel %vm2943_vm9, %v3477_v48, %v3478_v5  ;;  %v6258_v47 = vcombine.low %v8997_v29, %v8994_v7  ;;  %v2321_v48 = vld [vmem:[#allocation2 + $0x9c] sm:$0xf]  ;;  %v2467_v29 = vld [vmem:[#allocation2 + $0x54] sm:$0xe] }
 0x2c4   : > { %v6422_v12 = vpack.c.bf16 %v1698_v6, %v1698_v6  ;;  %v1699_v35 = vmul.f32 %v7167_v19, %v8903_v51  ;;  %3896 = vrot.lane.b32.xlu0 %v3755_v16, %s7552_s27  ;;  %v2965_v45 = vrot.slane %v6163_v44, 1  ;;  %v2966_v42 = vrot.slane %v9007_v21, 1  ;;  %v6850_v7 = vld [vmem:[#allocation2 + $0x5c] ss:$0 sps:$4 sm:$0x11]  }
 0x2c5   : > { %v2137_v60 = vshrl.u32 %v6424_v56, 16  ;;  %v2140_v27 = vshll.u32 %v6424_v56, 16  ;;  %v6425_v58 = vpack.c.bf16 %v1701_v22, %v1701_v22  ;;  %3118 = vrot.lane.b32.xlu1 %v8978_v54, %s7548_s17  ;;  %v3243_v63 = vsel %vm2670_vm10, %v3238_v4, %v3242_v26  ;;  %v2332_v56 = vld [vmem:[#allocation2 + $0xb0] sm:$0x1]  ;;  %v1764_v22 = vld [vmem:[#allocation2 + $0xc0] sm:$0x1] }
 0x2c6   : > { %v2120_v53 = vshrl.u32 %v6422_v12, 16  ;;  %v2123_v13 = vshll.u32 %v6422_v12, 16  ;;  %v6423_v51 = vpack.c.bf16 %v1699_v35, %v1699_v35  ;;  %v9029_v3 = vcombine.low %v2363_v43, %v2364_v9 }
 0x2c7   : > { %v2139_v10 = vrot.slane %v2137_v60, 7  ;;  %v2145_v5 = vshrl.u32 %v6425_v58, 16  ;;  %v2148_v0 = vshll.u32 %v6425_v58, 16  ;;  %v9032_v46 = vcombine.low %v2425_v52, %v9024_v8  ;;  %v2325_v52 = vld [vmem:[#allocation2 + $0xa4] sm:$0x1] }
 0x2c8   : > { %10475 = vst [vmem:[#allocation81_spill] sm:$0xff] %v9029_v3  ;;  %v2122_v41 = vrot.slane %v2120_v53, 7  ;;  %v2128_v6 = vshrl.u32 %v6423_v51, 16  ;;  %v2131_v16 = vshll.u32 %v6423_v51, 16  ;;  %3384 = vrot.lane.b32.xlu0 %v3243_v63, %s7551_s30  ;;  %v2967_v4 = vsel %vm2943_vm9, %v2965_v45, %v2966_v42  ;;  %v9044_v63 = vpop.permute.xlu1 %3646 }
 0x2c9   : > { %v2142_v26 = vor.u32 %v2140_v27, %v2139_v10  ;;  %v2143_v44 = vrot.slane %v2139_v10, 4  ;;  %v2147_v19 = vrot.slane %v2145_v5, 7  ;;  %3626 = vrot.lane.b32.xlu1 %v8992_v39, %s7545_s0  ;;  %v3269_v9 = vshrl.u32 %v8978_v54, 16  ;;  %10476 = vst [vmem:[#allocation82_spill] sm:$0xff] %v9044_v63  ;;  %v1814_v10 = vld [vmem:[#allocation2 + $0xc8] sm:$0x1] }
 0x2ca   : > { %v2125_v43 = vor.u32 %v2123_v13, %v2122_v41  ;;  %v2126_v12 = vrot.slane %v2122_v41, 4  ;;  %v2130_v35 = vrot.slane %v2128_v6, 7  ;;  %v3273_v60 = vrot.slane %v3271_v36, 1  ;;  %v1761_v36 = vld [vmem:[#allocation2 + $0xb4] sm:$0x1] }
 0x2cb   : > { %v2329_v45 = vsel %vm8396_vm12, %v2142_v26, %v2328_v38  ;;  %v2150_v42 = vor.u32 %v2148_v0, %v2147_v19  ;;  %v2152_v27 = vrot.slane %v2147_v19, 4  ;;  %v3276_v58 = vshll.u32 %v8987_v15, 16  ;;  %v1811_v0 = vld [vmem:[#allocation2 + $0xbc] sm:$0x1] }
 0x2cc   : > { %2330 = vst [vmem:[#allocation2 + $0xa8] sm:$0xf] %v2329_v45  ;;  %v2322_v53 = vsel %vm8396_vm12, %v2125_v43, %v2321_v48  ;;  %v2133_v13 = vor.u32 %v2131_v16, %v2130_v35  ;;  %v2135_v51 = vrot.slane %v2130_v35, 4  ;;  %3628 = vrot.lane.b32.xlu0 %v9013_v18, %s7545_s0  ;;  %v3274_v54 = vor.u32 %v3273_v60, %v3269_v9  ;;  %v9057_v41 = vld [vmem:[#allocation2 + $0x68] ss:$0 sps:$4 sm:$0x11]  }
 0x2cd   : > { %2323 = vst [vmem:[#allocation2 + $0x9c] sm:$0xf] %v2322_v53  ;;  %v2151_v38 = vsel %vm8403_vm13, %v2143_v44, %v2150_v42  ;;  %v2333_v15 = vsel %vm8212_vm5, %v2152_v27, %v2332_v56  ;;  %3518 = vrot.lane.b32.xlu1 %v3479_v40, %s7549_s18  ;;  %v3278_v5 = vrot.slane %v3276_v58, 1  ;;  %v1441_v48 = vmul.f32 %v8721_v55, %v8494_v37  ;;  %v6848_v44 = vld [vmem:[#allocation2 + $0x68] ss:$0 sps:$4 sm:$0x11]   ;;  %v9068_v37 = vpop.permute.xlu0 %2863 }
 0x2ce   : > { %2331 = vst.msk [vmem:[#allocation2 + $0xac] sm:$0xf] %vm1706_vm8, %v2151_v38  ;;  %2334 = vst [vmem:[#allocation2 + $0xb0] sm:$0x1] %v2333_v15  ;;  %v2134_v6 = vsel %vm8403_vm13, %v2126_v12, %v2133_v13  ;;  %v2326_v16 = vsel %vm8212_vm5, %v2135_v51, %v2325_v52  ;;  %v1765_v26 = vsel %vm8212_vm5, 0, %v1764_v22  ;;  %v1439_v40 = vmul.f32 %v8721_v55, %v8609_v31 }
 0x2cf   : > { %2324 = vst.msk [vmem:[#allocation2 + $0xa0] sm:$0xf] %vm1706_vm8, %v2134_v6  ;;  %2327 = vst [vmem:[#allocation2 + $0xa4] sm:$0x1] %v2326_v16  ;;  %v3279_v19 = vsel %vm2670_vm10, %v3274_v54, %v3278_v5  ;;  %v9073_v56 = vadd.f32 %v8741_v20, %v1441_v48  ;;  %v1762_v9 = vsel %vm8212_vm5, 0, %v1761_v36  ;;  %v1442_v22 = vmul.f32 %v8721_v55, %v8623_v24 }
 0x2d0   : > { %1766 = vst [vmem:[#allocation2 + $0xc0] sm:$0x1] %v1765_v26  ;;  %v2365_v43 = vld [vmem:[#allocation2 + $0x60] sm:$0xf]  ;;  %v2366_v31 = vld [vmem:[#allocation2 + $0x64] sm:$0xf]  ;;  %3116 = vrot.lane.b32.xlu0 %v9032_v46, %s7548_s17  ;;  %v9082_v12 = vadd.f32 %v8741_v20, %v1439_v40  ;;  %v1440_v52 = vmul.f32 %v8721_v55, %v8652_v23  ;;  %v9099_v23 = vpop.permute.xlu1 %2992  ;;  %v6210_v16 = vcombine.low %v2467_v29, %v9024_v8 }
 0x2d1   : > { %1763 = vst [vmem:[#allocation2 + $0xb4] sm:$0x1] %v1762_v9  ;;  %v1815_v35 = vsel %vm8222_vm7, 0, %v1814_v10  ;;  %v1812_v60 = vsel %vm8222_vm7, 0, %v1811_v0  ;;  %v2405_v45 = vld [vmem:[#allocation2 + $0x60] sm:$0xe]  ;;  %3006 = vrot.lane.b32.xlu1 %v2967_v4, %s7546_s29  ;;  %v9093_v42 = vadd.f32 %v8741_v20, %v1442_v22  ;;  %v9105_v4 = vcombine.low %v2365_v43, %v2366_v31  ;;  %v9113_v10 = vpop.permute.xlu0 %3616 }
 0x2d2   : > { %v6090_v24 = vmul.f32 -1.442695, %v9073_v56  ;;  %1816 = vst [vmem:[#allocation2 + $0xc8] sm:$0x1] %v1815_v35  ;;  %1813 = vst [vmem:[#allocation2 + $0xbc] sm:$0x1] %v1812_v60  ;;  %v9103_v55 = vadd.f32 %v8741_v20, %v1440_v52  ;;  %v6164_v54 = vcombine.low %v2405_v45, %v2366_v31 }
 0x2d3   : > { %v3986_v27 = vrot.slane %v6258_v47, 1  ;;  %v3987_v58 = vrot.slane %v9057_v41, 1  ;;  %v6088_v30 = vmul.f32 -1.442695, %v9082_v12  ;;  %10477 = vst [vmem:[#allocation83_spill] sm:$0xff] %v9105_v4  ;;  %v2775_v53 = vshll.u32 %v6848_v44, 16 }
 0x2d4   : > { %7168 = vpow2.f32 %v6090_v24  ;;  %v6091_v13 = vmul.f32 -1.442695, %v9093_v42  ;;  %v6089_v47 = vmul.f32 -1.442695, %v9103_v55  ;;  %v2768_v36 = vshrl.u32 %v9105_v4, 16  ;;  %v9124_v9 = vpop.permute.xlu1 %3106 }
 0x2d5   : > { %v3988_v51 = vsel %vm2943_vm9, %v3986_v27, %v3987_v58  ;;  %7170 = vpow2.f32 %v6088_v30  ;;  %v2770_v20 = vshll.u32 %v9105_v4, 16  ;;  %3390 = vrot.lane.b32.xlu1 %v3279_v19, %s7551_s30  ;;  %v2777_v38 = vrot.slane %v2775_v53, 1  ;;  %v9126_v22 = vld [vmem:[#allocation2 + $0x5c] ss:$0 sps:$4 sm:$0x11]   ;;  %v9136_v60 = vpop.permute.xlu0 %3104 }
 0x2d6   : > { %4028 = vrot.lane.b32.xlu0 %v3988_v51, %s7550_s21  ;;  %7172 = vpow2.f32 %v6091_v13  ;;  %v2968_v15 = vrot.slane %v6164_v54, 1  ;;  %v2969_v5 = vrot.slane %v6848_v44, 1  ;;  %v3757_v0 = vshrl.u32 %v8992_v39, 16  ;;  %v2431_v35 = vld [vmem:[#allocation2 + $0x78] sm:$0xf] }
 0x2d7   : > { %7174 = vpow2.f32 %v6089_v47  ;;  %v2772_v48 = vrot.slane %v2770_v20, 1  ;;  %v3761_v6 = vrot.slane %v3759_v34, 1  ;;  %v3764_v40 = vshll.u32 %v6850_v7, 16 }
 0x2d8   : > { %v2970_v26 = vsel %vm2943_vm9, %v2968_v15, %v2969_v5  ;;  %v3983_v19 = vrot.slane %v6257_v59, 1  ;;  %v3984_v43 = vrot.slane %v6850_v7, 1  ;;  %v3771_v39 = vshll.u32 %v9013_v18, 16  ;;  %v9134_v59 = vld [vmem:[#allocation2 + $0x7c] sm:$0xf]  ;;  %v9147_v54 = vpop.permute.xlu1 %3506 }
 0x2d9   : > { %v2773_v44 = vor.u32 %v2772_v48, %v2768_v36  ;;  %v3762_v34 = vor.u32 %v3761_v6, %v3757_v0  ;;  %v3766_v31 = vrot.slane %v3764_v40, 1  ;;  %v2758_v8 = vshll.u32 %v9029_v3, 16  ;;  %v2335_v4 = vld [vmem:[#allocation2 + $0xb4] sm:$0xf]  ;;  %v2346_v62 = vld [vmem:[#allocation2 + $0xc8] sm:$0x1] }
 0x2da   : > { %3008 = vrot.lane.b32.xlu0 %v2970_v26, %s7546_s29  ;;  %v2756_v33 = vshrl.u32 %v9029_v3, 16  ;;  %v2763_v11 = vshll.u32 %v9007_v21, 16  ;;  %v3985_v45 = vsel %vm2943_vm9, %v3983_v19, %v3984_v43  ;;  %v3474_v27 = vrot.slane %v6210_v16, 1  ;;  %v2470_v21 = vld [vmem:[#allocation2 + $0x78] sm:$0xe] }
 0x2db   : > { %v2778_v52 = vsel %vm2670_vm10, %v2773_v44, %v2777_v38  ;;  %v2760_v24 = vrot.slane %v2758_v8, 1  ;;  %v3475_v58 = vrot.slane %v9126_v22, 1  ;;  %v3259_v30 = vshll.u32 %v9032_v46, 16  ;;  %v2492_v44 = vld [vmem:[#allocation2 + $0x6c] sm:$0xf] }
 0x2dc   : > { %2879 = vrot.lane.b32.xlu1 %v2778_v52, %s10369_s20  ;;  %v3767_v13 = vsel %vm2670_vm10, %v3762_v34, %v3766_v31  ;;  %v9145_v51 = vcombine.low %v2431_v35, %v9134_v59  ;;  %v3769_v7 = vshrl.u32 %v9013_v18, 16  ;;  %v3773_v29 = vrot.slane %v3771_v39, 1  ;;  %v9156_v43 = vld [vmem:[#allocation2 + $0x70] sm:$0xf]  ;;  %v2534_v34 = vld [vmem:[#allocation2 + $0x78] sm:$0xe] }
 0x2dd   : > { %v2761_v20 = vor.u32 %v2760_v24, %v2756_v33  ;;  %v2765_v38 = vrot.slane %v2763_v11, 1  ;;  %v3776_v15 = vshll.u32 %v9057_v41, 16  ;;  %v3476_v0 = vsel %vm2943_vm9, %v3474_v27, %v3475_v58  ;;  %v6856_v39 = vld [vmem:[#allocation2 + $0x80] ss:$0 sps:$4 sm:$0x11]  }
 0x2de   : > { %4026 = vrot.lane.b32.xlu0 %v3985_v45, %s7550_s21  ;;  %v7169_v53 = vpop.eup %7168  ;;  %v3774_v6 = vor.u32 %v3773_v29, %v3769_v7  ;;  %v3257_v16 = vshrl.u32 %v9032_v46, 16  ;;  %v6213_v18 = vcombine.low %v2470_v21, %v9134_v59  ;;  %v3261_v8 = vrot.slane %v3259_v30, 1  ;;  %v2494_v35 = vld [vmem:[#allocation2 + $0x78] sm:$0xf]  ;;  %v2495_v52 = vld [vmem:[#allocation2 + $0x7c] sm:$0xf] }
 0x2df   : > { %v7171_v47 = vpop.eup %7170  ;;  %v1608_v36 = vadd.f32 1.0, %v7169_v53  ;;  %v3778_v19 = vrot.slane %v3776_v15, 1  ;;  %v9158_v41 = vpop.permute.xlu0 %4016  ;;  %v3264_v46 = vshll.u32 %v9126_v22, 16  ;;  %v2406_v33 = vld [vmem:[#allocation2 + $0x6c] sm:$0xe]  ;;  %v2766_v11 = vsel %vm2670_vm10, %v2761_v20, %v2765_v38 }
 0x2e0   : > { %v7173_v5 = vpop.eup %7172  ;;  %v1606_v48 = vadd.f32 1.0, %v7171_v47  ;;  %3898 = vrot.lane.b32.xlu1 %v3767_v13, %s7552_s27  ;;  %v3295_v59 = vshll.u32 %v9145_v51, 16  ;;  %v2368_v45 = vld [vmem:[#allocation2 + $0x70] sm:$0xf]  ;;  %v3262_v30 = vor.u32 %v3261_v8, %v3257_v16  ;;  %v2369_v13 = vld [vmem:[#allocation2 + $0x78] sm:$0xf]  ;;  %v4049_v21 = vsel %vm1190_vm2, %v8252_v50, %v9068_v37 }
 0x2e1   : > { %v7175_v26 = vpop.eup %7174  ;;  %7176 = vrcp.f32 %v1608_v36  ;;  %v1609_v40 = vadd.f32 1.0, %v7173_v5  ;;  %v9163_v24 = vld [vmem:[#allocation2 + $0x74] ss:$0 sps:$4 sm:$0x11]   ;;  %v3779_v27 = vsel %vm2670_vm10, %v3774_v6, %v3778_v19  ;;  %v3266_v22 = vrot.slane %v3264_v46, 1 }
 0x2e2   : > { %3516 = vrot.lane.b32.xlu0 %v3476_v0, %s7549_s18  ;;  %7178 = vrcp.f32 %v1606_v48  ;;  %v1607_v31 = vadd.f32 1.0, %v7175_v26  ;;  %v9167_v58 = vpop.permute.xlu1 %2994  ;;  %v9169_v53 = vld [vmem:[#allocation2 + $0x80] ss:$0 sps:$4 sm:$0x11]   ;;  %v9175_v7 = vld [vmem:[#allocation2 + $0x6c] sm:$0xe]  ;;  %v6260_v29 = vcombine.low %v2534_v34, %v2495_v52  ;;  %v6165_v47 = vcombine.low %v2406_v33, %v2368_v45 }
 0x2e3   : > { %7180 = vrcp.f32 %v1609_v40  ;;  %v9177_v36 = vld [vmem:[#allocation2 + $0x80] ss:$0 sps:$4 sm:$0x11]   ;;  %v9180_v20 = vcombine.low %v2492_v44, %v9156_v43  ;;  %v3483_v38 = vrot.slane %v6213_v18, 1  ;;  %v9182_v15 = vld [vmem:[#allocation2 + $0x7c] sm:$0xf]  ;;  %v9186_v0 = vcombine.low %v2494_v35, %v2495_v52 }
 0x2e4   : > { %7182 = vrcp.f32 %v1607_v31  ;;  %2877 = vrot.lane.b32.xlu1 %v2766_v11, %s10369_s20  ;;  %v3484_v5 = vrot.slane %v6856_v39, 1  ;;  %v2367_v50 = vld [vmem:[#allocation2 + $0x6c] sm:$0xf]  ;;  %v3293_v6 = vshrl.u32 %v9145_v51, 16  ;;  %v3297_v16 = vrot.slane %v3295_v59, 1 }
 0x2e5   : > { %v9184_v48 = vpop.permute.xlu0 %2996  ;;  %v2429_v37 = vld [vmem:[#allocation2 + $0x6c] sm:$0xf]  ;;  %v4081_v26 = vsel %vm661_vm0, %v4049_v21, %v9099_v23  ;;  %v3267_v40 = vsel %vm2670_vm10, %v3262_v30, %v3266_v22  ;;  %v2972_v18 = vrot.slane %v9163_v24, 1  ;;  %v9195_v19 = vld [vmem:[#allocation2 + $0x70] sm:$0xf]  ;;  %v3300_v44 = vshll.u32 %v6856_v39, 16 }
 0x2e6   : > { %3900 = vrot.lane.b32.xlu0 %v3779_v27, %s7552_s27  ;;  %v2971_v31 = vrot.slane %v6165_v47, 1  ;;  %v9200_v8 = vld [vmem:[#allocation2 + $0x6c] sm:$0xe]  ;;  %v3992_v46 = vrot.slane %v6260_v29, 1  ;;  %v9204_v35 = vcombine.low %v2369_v13, %v9182_v15  ;;  %v9208_v23 = vsel %vm4112_vm14, %v4081_v26, %v9136_v60 }
 0x2e7   : > { %v3783_v52 = vshll.u32 %v9180_v20, 16  ;;  %v2799_v33 = vshll.u32 %v9177_v36, 16  ;;  %v3485_v59 = vsel %vm2943_vm9, %v3483_v38, %v3484_v5  ;;  %v3298_v22 = vor.u32 %v3297_v16, %v3293_v6  ;;  %v2407_v5 = vld [vmem:[#allocation2 + $0x78] sm:$0xe] }
 0x2e8   : > { %3122 = vrot.lane.b32.xlu1 %v9145_v51, %s7548_s17  ;;  %v9198_v34 = vpop.permute.xlu1 %3378  ;;  %v3993_v51 = vrot.slane %v9169_v53, 1  ;;  %10478 = vst [vmem:[#allocation84_spill] sm:$0xff] %v9204_v35  ;;  %v3302_v13 = vrot.slane %v3300_v44, 1  ;;  %v9221_v29 = vcombine.low %v2367_v50, %v2368_v45  ;;  %v9224_v47 = vcombine.low %v2429_v37, %v9195_v19 }
 0x2e9   : > { %v9216_v30 = vpop.permute.xlu0 %3504  ;;  %v2794_v50 = vshll.u32 %v9204_v35, 16  ;;  %v9238_v27 = vrot.slane %v2799_v33, 1  ;;  %vm4346_vm7 = vcmask 588800  }
 0x2ea   : > { %3388 = vrot.lane.b32.xlu0 %v3267_v40, %s7551_s30  ;;  %v3994_v45 = vsel %vm2943_vm9, %v3992_v46, %v3993_v51  ;;  %v6166_v46 = vcombine.low %v2407_v5, %v9182_v15 }
 0x2eb   : > { %v7177_v11 = vpop.eup %7176 }
 0x2ec   : > { %v7179_v21 = vpop.eup %7178  ;;  %v1704_v60 = vmul.f32 %v7177_v11, %v9073_v56  ;;  %3630 = vrot.lane.b32.xlu1 %v9180_v20, %s7545_s0  ;;  %v2973_v56 = vsel %vm2943_vm9, %v2971_v31, %v2972_v18  ;;  %v9232_v6 = vpop.permute.xlu1 %2867  ;;  %v2792_v11 = vshrl.u32 %v9204_v35, 16  ;;  %v3303_v18 = vsel %vm2670_vm10, %v3298_v22, %v3302_v13  ;;  %v9251_v13 = vld [vmem:[#allocation2 + $0x74] ss:$0 sps:$4 sm:$0x11]  }
 0x2ed   : > { %v7181_v26 = vpop.eup %7180  ;;  %v1702_v40 = vmul.f32 %v7179_v21, %v9082_v12  ;;  %v9242_v31 = vpop.permute.xlu0 %3888  ;;  %v2796_v22 = vrot.slane %v2794_v50, 1  ;;  %v2974_v50 = vrot.slane %v6166_v46, 1  ;;  %v3990_v2 = vrot.slane %v9251_v13, 1 }
 0x2ee   : > { %3632 = vrot.lane.b32.xlu0 %v9186_v0, %s7545_s0  ;;  %v7183_v37 = vpop.eup %7182  ;;  %v6428_v16 = vpack.c.bf16 %v1704_v60, %v1704_v60  ;;  %v1705_v44 = vmul.f32 %v7181_v26, %v9093_v42  ;;  %v2975_v42 = vrot.slane %v9177_v36, 1 }
 0x2ef   : > { %v6426_v12 = vpack.c.bf16 %v1702_v40, %v1702_v40  ;;  %v1703_v21 = vmul.f32 %v7183_v37, %v9103_v55 }
 0x2f0   : > { %v2171_v51 = vshrl.u32 %v6428_v16, 16  ;;  %v2174_v38 = vshll.u32 %v6428_v16, 16  ;;  %v6429_v60 = vpack.c.bf16 %v1705_v44, %v1705_v44  ;;  %3522 = vrot.lane.b32.xlu1 %v3485_v59, %s7549_s18  ;;  %v9249_v55 = vpop.permute.xlu1 %3110  ;;  %v3781_v16 = vshrl.u32 %v9180_v20, 16  ;;  %v2342_v59 = vld [vmem:[#allocation2 + $0xc0] sm:$0xf] }
 0x2f1   : > { %v2154_v33 = vshrl.u32 %v6426_v12, 16  ;;  %v2157_v26 = vshll.u32 %v6426_v12, 16  ;;  %v6427_v40 = vpack.c.bf16 %v1703_v21, %v1703_v21  ;;  %v3785_v12 = vrot.slane %v3783_v52, 1 }
 0x2f2   : > { %3120 = vrot.lane.b32.xlu0 %v9224_v47, %s7548_s17  ;;  %v2173_v15 = vrot.slane %v2171_v51, 7  ;;  %v2179_v5 = vshrl.u32 %v6429_v60, 16  ;;  %v2182_v37 = vshll.u32 %v6429_v60, 16  ;;  %v9254_v63 = vpop.permute.xlu0 %2865  ;;  %v2797_v20 = vor.u32 %v2796_v22, %v2792_v11 }
 0x2f3   : > { %v2156_v44 = vrot.slane %v2154_v33, 7  ;;  %v2162_v39 = vshrl.u32 %v6427_v40, 16  ;;  %v2165_v36 = vshll.u32 %v6427_v40, 16  ;;  %v10479_v22 = vcombine.low %v9175_v7, %v9156_v43 }
 0x2f4   : > { %v2176_v21 = vor.u32 %v2174_v38, %v2173_v15  ;;  %v2177_v35 = vrot.slane %v2173_v15, 4  ;;  %v2181_v3 = vrot.slane %v2179_v5, 7  ;;  %3010 = vrot.lane.b32.xlu1 %v2973_v56, %s7546_s29  ;;  %v9258_v33 = vpop.permute.xlu1 %3618  ;;  %v2339_v15 = vld [vmem:[#allocation2 + $0xbc] sm:$0x1]  ;;  %v3788_v5 = vshll.u32 %v9251_v13, 16 }
 0x2f5   : > { %v2159_v49 = vor.u32 %v2157_v26, %v2156_v44  ;;  %v2160_v51 = vrot.slane %v2156_v44, 4  ;;  %v2164_v60 = vrot.slane %v2162_v39, 7  ;;  %v3786_v39 = vor.u32 %v3785_v12, %v3781_v16 }
 0x2f6   : > { %4032 = vrot.lane.b32.xlu0 %v3994_v45, %s7550_s21  ;;  %v2343_v40 = vsel %vm8396_vm12, %v2176_v21, %v2342_v59  ;;  %v2184_v52 = vor.u32 %v2182_v37, %v2181_v3  ;;  %v2186_v38 = vrot.slane %v2181_v3, 4  ;;  %v2976_v3 = vsel %vm2943_vm9, %v2974_v50, %v2975_v42  ;;  %v6871_v42 = vld [vmem:[#allocation2 + $0x74] ss:$0 sps:$4 sm:$0x11]  }
 0x2f7   : > { %2344 = vst [vmem:[#allocation2 + $0xc0] sm:$0xf] %v2343_v40  ;;  %v2336_v56 = vsel %vm8396_vm12, %v2159_v49, %v2335_v4  ;;  %v2167_v46 = vor.u32 %v2165_v36, %v2164_v60  ;;  %v2169_v26 = vrot.slane %v2164_v60, 4  ;;  %v3377_v44 = vpop.permute.xlu0 %3376  ;;  %v3989_v25 = vrot.slane %v10479_v22, 1 }
 0x2f8   : > { %2337 = vst [vmem:[#allocation2 + $0xb4] sm:$0xf] %v2336_v56  ;;  %v2185_v45 = vsel %vm8403_vm13, %v2177_v35, %v2184_v52  ;;  %v2347_v11 = vsel %vm8212_vm5, %v2186_v38, %v2346_v62  ;;  %3394 = vrot.lane.b32.xlu1 %v3303_v18, %s7551_s30  ;;  %v2802_v62 = vsel %vm2670_vm10, %v2797_v20, %v9238_v27  ;;  %v3790_v43 = vrot.slane %v3788_v5, 1  ;;  %v9287_v17 = vpop.permute.xlu1 %3510 }
 0x2f9   : > { %2345 = vst.msk [vmem:[#allocation2 + $0xc4] sm:$0xf] %vm1706_vm8, %v2185_v45  ;;  %2348 = vst [vmem:[#allocation2 + $0xc8] sm:$0x1] %v2347_v11  ;;  %v2168_v49 = vsel %vm8403_vm13, %v2160_v51, %v2167_v46  ;;  %v2340_v4 = vsel %vm8212_vm5, %v2169_v26, %v2339_v15  ;;  %v4147_v35 = vsel %vm4145_vm15, %v9208_v23, %v3377_v44  ;;  %v2780_v18 = vshrl.u32 %v9221_v29, 16 }
 0x2fa   : > { %3012 = vrot.lane.b32.xlu0 %v2976_v3, %s7546_s29  ;;  %2338 = vst.msk [vmem:[#allocation2 + $0xb8] sm:$0xf] %vm1706_vm8, %v2168_v49  ;;  %2341 = vst [vmem:[#allocation2 + $0xbc] sm:$0x1] %v2340_v4  ;;  %v4180_v7 = vsel %vm4178_vm3, %v4147_v35, %v9216_v30  ;;  %v2782_v37 = vshll.u32 %v9221_v29, 16  ;;  %v2787_v23 = vshll.u32 %v9163_v24, 16  ;;  %v3991_v30 = vsel %vm2943_vm9, %v3989_v25, %v3990_v2 }
 0x2fb   : > { %v4213_v27 = vsel %vm4211_vm4, %v4180_v7, %v9113_v10  ;;  %v9295_v16 = vpop.permute.xlu0 %3620  ;;  %vm4244_vm5 = vcmask 457728   ;;  %v10480_v24 = vcombine.low %v9200_v8, %v9195_v19  ;;  %v3283_v12 = vshll.u32 %v9224_v47, 16  ;;  %v2496_v3 = vld [vmem:[#allocation2 + $0x84] sm:$0xf]  ;;  %v9339_v4 = vld [vmem:[#allocation2 + $0x88] sm:$0xf] }
 0x2fc   : > { %2883 = vrot.lane.b32.xlu1 %v2802_v62, %s10369_s20  ;;  %v4246_v13 = vsel %vm4244_vm5, %v4213_v27, %v9242_v31  ;;  %v2784_v59 = vrot.slane %v2782_v37, 1  ;;  %v3791_v21 = vsel %vm2670_vm10, %v3786_v39, %v3790_v43  ;;  %v2789_v50 = vrot.slane %v2787_v23, 1  ;;  %v9320_v8 = vpop.permute.xlu1 %2998  ;;  %v2472_v39 = vld [vmem:[#allocation2 + $0x90] sm:$0xe]  ;;  %v2408_v43 = vld [vmem:[#allocation2 + $0x84] sm:$0xe] }
 0x2fd   : > { %v4279_v10 = vsel %vm4277_vm6, %v4246_v13, %v9158_v41  ;;  %v3480_v36 = vrot.slane %v10480_v24, 1  ;;  %v3481_v31 = vrot.slane %v6871_v42, 1  ;;  %v3793_v20 = vshrl.u32 %v9186_v0, 16  ;;  %v9341_v62 = vld [vmem:[#allocation2 + $0x98] ss:$0 sps:$4 sm:$0x11]  }
 0x2fe   : > { %4030 = vrot.lane.b32.xlu0 %v3991_v30, %s7550_s21  ;;  %6598 = vmatprep.mubr.msk.bf16.mxu0 %vm4346_vm7, %v4279_v10  ;;  %v2785_v51 = vor.u32 %v2784_v59, %v2780_v18  ;;  %v10481_v40 = vshll.u32 %v9186_v0, 16  ;;  %v3800_v52 = vshll.u32 %v9169_v53, 16  ;;  %v4051_v19 = vsel %vm1190_vm2, %v8573_v61, %v9254_v63  ;;  %v2435_v61 = vld [vmem:[#allocation2 + $0x90] sm:$0xf]  ;;  %v2436_v63 = vld [vmem:[#allocation2 + $0x94] sm:$0xf] }
 0x2ff   : > { %v9310_v60 = vpop.permute.xlu0 %3108  ;;  %v3482_v38 = vsel %vm2943_vm9, %v3480_v36, %v3481_v31  ;;  %v3281_v56 = vshrl.u32 %v9224_v47, 16  ;;  %v3285_v0 = vrot.slane %v3283_v12, 1  ;;  %v3288_v46 = vshll.u32 %v6871_v42, 16  ;;  %v2373_v7 = vld [vmem:[#allocation2 + $0x90] sm:$0xf] }
 0x300   : > { %v3797_v41 = vrot.slane %v10481_v40, 1  ;;  %3902 = vrot.lane.b32.xlu1 %v3791_v21, %s7552_s27  ;;  %v3802_v5 = vrot.slane %v3800_v52, 1  ;;  %v4083_v53 = vsel %vm661_vm0, %v4051_v19, %v9167_v58  ;;  %v2790_v26 = vsel %vm2670_vm10, %v2785_v51, %v2789_v50  ;;  %v9337_v49 = vpop.permute.xlu1 %3382  ;;  %v9345_v2 = vld [vmem:[#allocation2 + $0x94] sm:$0xf]  ;;  %v2498_v18 = vld [vmem:[#allocation2 + $0x90] sm:$0xf] }
 0x301   : > { %v3286_v45 = vor.u32 %v3285_v0, %v3281_v56  ;;  %v3290_v11 = vrot.slane %v3288_v46, 1  ;;  %v4116_v22 = vsel %vm4112_vm14, %v4083_v53, %v9124_v9  ;;  %v9335_v58 = vcombine.low %v2435_v61, %v2436_v63  ;;  %v2499_v42 = vld [vmem:[#allocation2 + $0x94] sm:$0xf]  ;;  %v2536_v23 = vld [vmem:[#allocation2 + $0x90] sm:$0xe] }
 0x302   : > { %3520 = vrot.lane.b32.xlu0 %v3482_v38, %s7549_s18  ;;  %v3798_v15 = vor.u32 %v3797_v41, %v3793_v20  ;;  %v6215_v25 = vcombine.low %v2472_v39, %v2436_v63  ;;  %v4380_v35 = vsel %vm1239_vm1, %v8951_v1, 0  ;;  %v4149_v27 = vsel %vm4145_vm15, %v4116_v22, %v9198_v34  ;;  %v2372_v30 = vld [vmem:[#allocation2 + $0x88] sm:$0xf]  ;;  %v9359_v10 = vld [vmem:[#allocation2 + $0x8c] ss:$0 sps:$4 sm:$0x11]  }
 0x303   : > { %v9331_v47 = vpop.permute.xlu0 %4020  ;;  %6597 = vmatpush3.bf16.msra.mxu0 %v4380_v35  ;;  %v3291_v9 = vsel %vm2670_vm10, %v3286_v45, %v3290_v11  ;;  %v9353_v37 = vcombine.low %v2496_v3, %v9339_v4  ;;  %v3490_v59 = vrot.slane %v9341_v62, 1  ;;  %v6167_v24 = vcombine.low %v2408_v43, %v2372_v30  ;;  %v2433_v21 = vld [vmem:[#allocation2 + $0x84] sm:$0xf]  ;;  %v9367_v50 = vld [vmem:[#allocation2 + $0x88] sm:$0xf] }
 0x304   : > { %2881 = vrot.lane.b32.xlu1 %v2790_v26, %s10369_s20  ;;  %v3803_v44 = vsel %vm2670_vm10, %v3798_v15, %v3802_v5  ;;  %v3489_v13 = vrot.slane %v6215_v25, 1  ;;  %v9362_v36 = vcombine.low %v2373_v7, %v9345_v2  ;;  %v3319_v34 = vshll.u32 %v9335_v58, 16  ;;  %v9373_v20 = vld [vmem:[#allocation2 + $0x98] ss:$0 sps:$4 sm:$0x11]  }
 0x305   : > { %v9365_v12 = vcombine.low %v2498_v18, %v2499_v42  ;;  %v6262_v51 = vcombine.low %v2536_v23, %v2499_v42  ;;  %v4182_v40 = vsel %vm4178_vm3, %v4149_v27, %v9147_v54  ;;  %v2409_v52 = vld [vmem:[#allocation2 + $0x90] sm:$0xe]  ;;  %v2977_v38 = vrot.slane %v6167_v24, 1  ;;  %v6889_v5 = vld [vmem:[#allocation2 + $0x98] ss:$0 sps:$4 sm:$0x11]  }
 0x306   : > { %3904 = vrot.lane.b32.xlu0 %v3803_v44, %s7552_s27  ;;  %v3491_v19 = vsel %vm2943_vm9, %v3489_v13, %v3490_v59  ;;  %v2978_v15 = vrot.slane %v9359_v10, 1  ;;  %v2818_v56 = vshll.u32 %v9362_v36, 16  ;;  %v9383_v0 = vcombine.low %v2433_v21, %v9367_v50  ;;  %v2371_v63 = vld [vmem:[#allocation2 + $0x84] sm:$0xf] }
 0x307   : > { %v9356_v1 = vpop.permute.xlu0 %3000  ;;  %v3317_v46 = vshrl.u32 %v9335_v58, 16  ;;  %v3321_v53 = vrot.slane %v3319_v34, 1  ;;  %v3324_v54 = vshll.u32 %v9341_v62, 16  ;;  %v4215_v26 = vsel %vm4211_vm4, %v4182_v40, %v9258_v33  ;;  %v2535_v3 = vld [vmem:[#allocation2 + $0x84] sm:$0xe] }
 0x308   : > { %3126 = vrot.lane.b32.xlu1 %v9335_v58, %s7548_s17  ;;  %v3998_v39 = vrot.slane %v6262_v51, 1  ;;  %v3999_v44 = vrot.slane %v9373_v20, 1  ;;  %v6168_v45 = vcombine.low %v2409_v52, %v9345_v2  ;;  %v4053_v11 = vsel %vm1190_vm2, %v8576_v14, %v9232_v6  ;;  %v6891_v25 = vld [vmem:[#allocation2 + $0x8c] ss:$0 sps:$4 sm:$0x11]  }
 0x309   : > { %v3807_v22 = vshll.u32 %v9353_v37, 16  ;;  %v2816_v35 = vshrl.u32 %v9362_v36, 16  ;;  %v2820_v43 = vrot.slane %v2818_v56, 1  ;;  %v2823_v7 = vshll.u32 %v6889_v5, 16  ;;  %v2471_v14 = vld [vmem:[#allocation2 + $0x84] sm:$0xe] }
 0x30a   : > { %3392 = vrot.lane.b32.xlu0 %v3291_v9, %s7551_s30  ;;  %v9371_v31 = vpop.permute.xlu1 %2871  ;;  %v2979_v2 = vsel %vm2943_vm9, %v2977_v38, %v2978_v15  ;;  %v9402_v9 = vcombine.low %v2371_v63, %v2372_v30  ;;  %v3322_v6 = vor.u32 %v3321_v53, %v3317_v46  ;;  %v3326_v18 = vrot.slane %v3324_v54, 1  ;;  %v6892_v52 = vld [vmem:[#allocation2 + $0x8c] ss:$0 sps:$4 sm:$0x11]  }
 0x30b   : > { %v4019_v41 = vpop.permute.xlu0 %4018  ;;  %v6261_v42 = vcombine.low %v2535_v3, %v9339_v4  ;;  %v4000_v23 = vsel %vm2943_vm9, %v3998_v39, %v3999_v44  ;;  %v2980_v13 = vrot.slane %v6168_v45, 1  ;;  %v2981_v59 = vrot.slane %v6889_v5, 1 }
 0x30c   : > { %3634 = vrot.lane.b32.xlu1 %v9353_v37, %s7545_s0  ;;  %v3805_v30 = vshrl.u32 %v9353_v37, 16  ;;  %v3809_v34 = vrot.slane %v3807_v22, 1  ;;  %v3812_v21 = vshll.u32 %v6891_v25, 16  ;;  %v6214_v51 = vcombine.low %v2471_v14, %v9367_v50 }
 0x30d   : > { %v2821_v40 = vor.u32 %v2820_v43, %v2816_v35  ;;  %v4085_v4 = vsel %vm661_vm0, %v4053_v11, %v9184_v48  ;;  %v3327_v38 = vsel %vm2670_vm10, %v3322_v6, %v3326_v18  ;;  %v2806_v15 = vshll.u32 %v9402_v9, 16 }
 0x30e   : > { %3636 = vrot.lane.b32.xlu0 %v9365_v12, %s7545_s0  ;;  %v3891_v61 = vpop.permute.xlu1 %3890  ;;  %v4118_v5 = vsel %vm4112_vm14, %v4085_v4, %v9310_v60  ;;  %v2982_v50 = vsel %vm2943_vm9, %v2980_v13, %v2981_v59  ;;  %v3995_v56 = vrot.slane %v6261_v42, 1  ;;  %v3996_v46 = vrot.slane %v6891_v25, 1 }
 0x30f   : > { %v4248_v58 = vsel %vm4244_vm5, %v4215_v26, %v3891_v61  ;;  %v3509_v33 = vpop.permute.xlu0 %3508  ;;  %v3810_v48 = vor.u32 %v3809_v34, %v3805_v30  ;;  %v3814_v53 = vrot.slane %v3812_v21, 1  ;;  %v2804_v26 = vshrl.u32 %v9402_v9, 16  ;;  %v2439_v30 = vld [vmem:[#allocation2 + $0xa8] sm:$0xf]  ;;  %v2440_v34 = vld [vmem:[#allocation2 + $0xac] sm:$0xf] }
 0x310   : > { %3526 = vrot.lane.b32.xlu1 %v3491_v19, %s7549_s18  ;;  %v4281_v62 = vsel %vm4277_vm6, %v4248_v58, %v4019_v41  ;;  %v2825_v41 = vrot.slane %v2823_v7, 1  ;;  %v3819_v19 = vshll.u32 %v9365_v12, 16  ;;  %v2811_v61 = vshll.u32 %v9359_v10, 16  ;;  %v2474_v21 = vld [vmem:[#allocation2 + $0xa8] sm:$0xe] }
 0x311   : > { %6599 = vmatmul.mubr.msk.bf16.vlgmr.msra.gmra.mrb[16].mxu0 %vm4346_vm7, %v4281_v62  ;;  %v3486_v39 = vrot.slane %v6214_v51, 1  ;;  %v3487_v44 = vrot.slane %v6892_v52, 1  ;;  %v2808_v11 = vrot.slane %v2806_v15, 1  ;;  %v3817_v3 = vshrl.u32 %v9365_v12, 16  ;;  %v9465_v15 = vld [vmem:[#allocation2 + $0xa0] sm:$0xf] }
 0x312   : > { %3124 = vrot.lane.b32.xlu0 %v9383_v0, %s7548_s17  ;;  %v2870_v27 = vpop.permute.xlu1 %2869  ;;  %v2826_v63 = vsel %vm2670_vm10, %v2821_v40, %v2825_v41  ;;  %v3821_v22 = vrot.slane %v3819_v19, 1  ;;  %v3307_v58 = vshll.u32 %v9383_v0, 16  ;;  %v3997_v62 = vsel %vm2943_vm9, %v3995_v56, %v3996_v46  ;;  %v2500_v19 = vld [vmem:[#allocation2 + $0x9c] sm:$0xf] }
 0x313   : > { %v3893_v24 = vpop.permute.xlu0 %3892  ;;  %v3824_v35 = vshll.u32 %v9373_v20, 16  ;;  %v3815_v43 = vsel %vm2670_vm10, %v3810_v48, %v3814_v53  ;;  %v2813_v14 = vrot.slane %v2811_v61, 1  ;;  %v3305_v42 = vshrl.u32 %v9383_v0, 16  ;;  %v2503_v48 = vld [vmem:[#allocation2 + $0xac] sm:$0xf] }
 0x314   : > { %3014 = vrot.lane.b32.xlu1 %v2979_v2, %s7546_s29  ;;  %v2809_v2 = vor.u32 %v2808_v11, %v2804_v26  ;;  %v3822_v6 = vor.u32 %v3821_v22, %v3817_v3  ;;  %v3312_v13 = vshll.u32 %v6892_v52, 16  ;;  %v2377_v53 = vld [vmem:[#allocation2 + $0xa8] sm:$0xf]  ;;  %v2376_v26 = vld [vmem:[#allocation2 + $0xa0] sm:$0xf] }
 0x315   : > { %v3826_v18 = vrot.slane %v3824_v35, 1  ;;  %v2538_v61 = vld [vmem:[#allocation2 + $0xa8] sm:$0xe]  ;;  %v9491_v35 = vld [vmem:[#allocation2 + $0xa0] sm:$0xf] }
 0x316   : > { %4036 = vrot.lane.b32.xlu0 %v4000_v23, %s7550_s21  ;;  %v9419_v37 = vpop.permute.xlu1 %3114  ;;  %v3309_v23 = vrot.slane %v3307_v58, 1  ;;  %v3314_v41 = vrot.slane %v3312_v13, 1  ;;  %v2437_v58 = vld [vmem:[#allocation2 + $0x9c] sm:$0xf] }
 0x317   : > { %v3381_v54 = vpop.permute.xlu0 %3380  ;;  %v3827_v0 = vsel %vm2670_vm10, %v3822_v6, %v3826_v18  ;;  %v2375_v6 = vld [vmem:[#allocation2 + $0x9c] sm:$0xf] }
 0x318   : > { %3398 = vrot.lane.b32.xlu1 %v3327_v38, %s7551_s30  ;;  %v4151_v60 = vsel %vm4145_vm15, %v4118_v5, %v3381_v54  ;;  %v3310_v40 = vor.u32 %v3309_v23, %v3305_v42  ;;  %v6897_v38 = vld [vmem:[#allocation2 + $0xb0] ss:$0 sps:$4 sm:$0x11]   ;;  %v2502_v5 = vld [vmem:[#allocation2 + $0xa8] sm:$0xf] }
 0x319   : > { %v4184_v45 = vsel %vm4178_vm3, %v4151_v60, %v3509_v33  ;;  %v2378_v54 = vld [vmem:[#allocation2 + $0xac] sm:$0xf]  ;;  %v3496_v11 = vrot.slane %v6897_v38, 1  ;;  %v9483_v22 = vcombine.low %v2502_v5, %v2503_v48 }
 0x31a   : > { %3016 = vrot.lane.b32.xlu0 %v2982_v50, %s7546_s29  ;;  %v9431_v25 = vpop.permute.xlu1 %3622  ;;  %v4217_v10 = vsel %vm4211_vm4, %v4184_v45, %v9295_v16  ;;  %v3488_v16 = vsel %vm2943_vm9, %v3486_v39, %v3487_v44  ;;  %v2410_v50 = vld [vmem:[#allocation2 + $0x9c] sm:$0xe]  ;;  %v9475_v39 = vcombine.low %v2500_v19, %v9465_v15  ;;  %v9477_v44 = vld [vmem:[#allocation2 + $0xa4] ss:$0 sps:$4 sm:$0x11]  }
 0x31b   : > { %v9438_v33 = vpop.permute.xlu0 %3624  ;;  %v4250_v12 = vsel %vm4244_vm5, %v4217_v10, %v3893_v24  ;;  %v2814_v24 = vsel %vm2670_vm10, %v2809_v2, %v2813_v14  ;;  %v9485_v10 = vcombine.low %v2377_v53, %v2378_v54  ;;  %v2411_v2 = vld [vmem:[#allocation2 + $0xa8] sm:$0xe]  ;;  %v2984_v42 = vrot.slane %v9477_v44, 1 }
 0x31c   : > { %2887 = vrot.lane.b32.xlu1 %v2826_v63, %s10369_s20  ;;  %v4283_v7 = vsel %vm4277_vm6, %v4250_v12, %v9331_v47  ;;  %v4055_v47 = vsel %vm1190_vm2, %v8696_v32, %v2870_v27  ;;  %v6185_v32 = vcombine.low %v2439_v30, %v2440_v34  ;;  %v6217_v27 = vcombine.low %v2474_v21, %v2440_v34  ;;  %v9493_v12 = vld [vmem:[#allocation2 + $0xb0] ss:$0 sps:$4 sm:$0x11]  }
 0x31d   : > { %6602 = vmatprep.mubr.msk.bf16.mxu0 %vm4346_vm7, %v4283_v7  ;;  %v4087_v52 = vsel %vm661_vm0, %v4055_v47, %v9320_v8  ;;  %v3315_v8 = vsel %vm2670_vm10, %v3310_v40, %v3314_v41  ;;  %v9502_v47 = vcombine.low %v2437_v58, %v9491_v35  ;;  %v6906_v30 = vld [vmem:[#allocation2 + $0xb0] ss:$0 sps:$4 sm:$0x11]   ;;  %v2842_v34 = vshll.u32 %v9485_v10, 16 }
 0x31e   : > { %4034 = vrot.lane.b32.xlu0 %v3997_v62, %s7550_s21  ;;  %v9447_v20 = vpop.permute.xlu1 %3514  ;;  %v4120_v56 = vsel %vm4112_vm14, %v4087_v52, %v9249_v55  ;;  %v3495_v63 = vrot.slane %v6217_v27, 1  ;;  %v3343_v60 = vshll.u32 %v6185_v32, 16  ;;  %v6169_v55 = vcombine.low %v2410_v50, %v2376_v26  ;;  %v6908_v50 = vld [vmem:[#allocation2 + $0xa4] ss:$0 sps:$4 sm:$0x11]  }
 0x31f   : > { %v9451_v59 = vpop.permute.xlu0 %3112  ;;  %v4153_v45 = vsel %vm4145_vm15, %v4120_v56, %v9337_v49  ;;  %v3341_v7 = vshrl.u32 %v6185_v32, 16  ;;  %v2537_v49 = vld [vmem:[#allocation2 + $0x9c] sm:$0xe]  ;;  %v4005_v40 = vrot.slane %v9493_v12, 1  ;;  %v6170_v41 = vcombine.low %v2411_v2, %v2378_v54 }
 0x320   : > { %3906 = vrot.lane.b32.xlu1 %v3815_v43, %s7552_s27  ;;  %v6264_v43 = vcombine.low %v2538_v61, %v2503_v48  ;;  %v4186_v14 = vsel %vm4178_vm3, %v4153_v45, %v9287_v17  ;;  %v2983_v18 = vrot.slane %v6169_v55, 1  ;;  %v3497_v23 = vsel %vm2943_vm9, %v3495_v63, %v3496_v11 }
 0x321   : > { %v4219_v21 = vsel %vm4211_vm4, %v4186_v14, %v9431_v25  ;;  %v6263_v52 = vcombine.low %v2537_v49, %v9465_v15  ;;  %v2840_v15 = vshrl.u32 %v9485_v10, 16  ;;  %v2844_v48 = vrot.slane %v2842_v34, 1 }
 0x322   : > { %3524 = vrot.lane.b32.xlu0 %v3488_v16, %s7549_s18  ;;  %v9457_v51 = vpop.permute.xlu1 %3002  ;;  %v3345_v16 = vrot.slane %v3343_v60, 1  ;;  %v2985_v19 = vsel %vm2943_vm9, %v2983_v18, %v2984_v42  ;;  %v2847_v53 = vshll.u32 %v6906_v30, 16  ;;  %v2987_v63 = vrot.slane %v6906_v30, 1  ;;  %v2473_v60 = vld [vmem:[#allocation2 + $0x9c] sm:$0xe] }
 0x323   : > { %v9463_v4 = vpop.permute.xlu0 %4024  ;;  %v4057_v55 = vsel %vm1190_vm2, %v8774_v57, %v9371_v31  ;;  %v3829_v45 = vshrl.u32 %v9475_v39, 16  ;;  %v4001_v58 = vrot.slane %v6263_v52, 1  ;;  %v2845_v14 = vor.u32 %v2844_v48, %v2840_v15  ;;  %v6909_v18 = vld [vmem:[#allocation2 + $0xa4] ss:$0 sps:$4 sm:$0x11]  }
 0x324   : > { %2885 = vrot.lane.b32.xlu1 %v2814_v24, %s10369_s20  ;;  %v3348_v24 = vshll.u32 %v6897_v38, 16  ;;  %v9515_v38 = vcombine.low %v2375_v6, %v2376_v26  ;;  %v3346_v5 = vor.u32 %v3345_v16, %v3341_v7  ;;  %v2986_v26 = vrot.slane %v6170_v41, 1 }
 0x325   : > { %v4002_v7 = vrot.slane %v6908_v50, 1  ;;  %v2849_v16 = vrot.slane %v2847_v53, 1  ;;  %v6216_v42 = vcombine.low %v2473_v60, %v9491_v35  ;;  %v4089_v57 = vsel %vm661_vm0, %v4057_v55, %v9356_v1 }
 0x326   : > { %3908 = vrot.lane.b32.xlu0 %v3827_v0, %s7552_s27  ;;  %v9470_v46 = vpop.permute.xlu1 %3386  ;;  %v4004_v0 = vrot.slane %v6264_v43, 1  ;;  %v3350_v56 = vrot.slane %v3348_v24, 1  ;;  %v3836_v43 = vshll.u32 %v6908_v50, 16  ;;  %v2830_v49 = vshll.u32 %v9515_v38, 16 }
 0x327   : > { %v2828_v30 = vshrl.u32 %v9515_v38, 16  ;;  %v4003_v34 = vsel %vm2943_vm9, %v4001_v58, %v4002_v7  ;;  %v3493_v41 = vrot.slane %v6909_v18, 1  ;;  %v3841_v52 = vshrl.u32 %v9483_v22, 16 }
 0x328   : > { %3130 = vrot.lane.b32.xlu1 %v6185_v32, %s7548_s17  ;;  %v3831_v32 = vshll.u32 %v9475_v39, 16  ;;  %v4006_v61 = vsel %vm2943_vm9, %v4004_v0, %v4005_v40  ;;  %v3351_v2 = vsel %vm2670_vm10, %v3346_v5, %v3350_v56  ;;  %v3838_v35 = vrot.slane %v3836_v43, 1 }
 0x329   : > { %v9481_v3 = vpop.permute.xlu0 %3004  ;;  %v2832_v1 = vrot.slane %v2830_v49, 1  ;;  %v3492_v40 = vrot.slane %v6216_v42, 1  ;;  %v2476_v49 = vld [vmem:[#allocation2 + $0xc0] sm:$0xe] }
 0x32a   : > { %3396 = vrot.lane.b32.xlu0 %v3315_v8, %s7551_s30  ;;  %v9489_v62 = vpop.permute.xlu1 %2875  ;;  %v3833_v11 = vrot.slane %v3831_v32, 1  ;;  %v6913_v42 = vld [vmem:[#allocation2 + $0xc8] ss:$0 sps:$4 sm:$0x11]  }
 0x32b   : > { %v2833_v50 = vor.u32 %v2832_v1, %v2828_v30  ;;  %v3494_v53 = vsel %vm2943_vm9, %v3492_v40, %v3493_v41 }
 0x32c   : > { %3638 = vrot.lane.b32.xlu1 %v9475_v39, %s7545_s0  ;;  %v2988_v39 = vsel %vm2943_vm9, %v2986_v26, %v2987_v63  ;;  %v3834_v24 = vor.u32 %v3833_v11, %v3829_v45  ;;  %v2443_v45 = vld [vmem:[#allocation2 + $0xc0] sm:$0xf]  ;;  %v2444_v11 = vld [vmem:[#allocation2 + $0xc4] sm:$0xf] }
 0x32e   : > { %3640 = vrot.lane.b32.xlu0 %v9483_v22, %s7545_s0  ;;  %v4023_v13 = vpop.permute.xlu0 %4022  ;;  %v3839_v5 = vsel %vm2670_vm10, %v3834_v24, %v3838_v35  ;;  %v2539_v24 = vld [vmem:[#allocation2 + $0xb4] sm:$0xe] }
 0x32f   : > { %v3895_v17 = vpop.permute.xlu1 %3894 }
 0x330   : > { %3530 = vrot.lane.b32.xlu1 %v3497_v23, %s7549_s18  ;;  %v4252_v27 = vsel %vm4244_vm5, %v4219_v21, %v3895_v17  ;;  %v3843_v23 = vshll.u32 %v9483_v22, 16  ;;  %v2835_v21 = vshll.u32 %v9477_v44, 16  ;;  %v2850_v17 = vsel %vm2670_vm10, %v2845_v14, %v2849_v16  ;;  %v2504_v14 = vld [vmem:[#allocation2 + $0xb4] sm:$0xf] }
 0x331   : > { %v4285_v25 = vsel %vm4277_vm6, %v4252_v27, %v4023_v13  ;;  %v4122_v13 = vsel %vm4112_vm14, %v4089_v57, %v9451_v59  ;;  %v2412_v16 = vld [vmem:[#allocation2 + $0xb4] sm:$0xe] }
 0x332   : > { %3128 = vrot.lane.b32.xlu0 %v9502_v47, %s7548_s17  ;;  %6603 = vmatmul.mubr.msk.bf16.gmra.mrb[20].mxu0 %vm4346_vm7, %v4285_v25  ;;  %v3513_v8 = vpop.permute.xlu0 %3512  ;;  %v3845_v27 = vrot.slane %v3843_v23, 1  ;;  %v3331_v25 = vshll.u32 %v9502_v47, 16  ;;  %v2837_v56 = vrot.slane %v2835_v21, 1  ;;  %v2506_v23 = vld [vmem:[#allocation2 + $0xc0] sm:$0xf] }
 0x333   : > { %v9521_v54 = vpop.permute.xlu1 %2873  ;;  %v9594_v21 = vld [vmem:[#allocation2 + $0xbc] ss:$0 sps:$4 sm:$0x11]  }
 0x334   : > { %3018 = vrot.lane.b32.xlu1 %v2985_v19, %s7546_s29  ;;  %v3848_v19 = vshll.u32 %v9493_v12, 16  ;;  %v3329_v12 = vshrl.u32 %v9502_v47, 16  ;;  %v3846_v63 = vor.u32 %v3845_v27, %v3841_v52  ;;  %v3333_v60 = vrot.slane %v3331_v25, 1  ;;  %v2441_v25 = vld [vmem:[#allocation2 + $0xb4] sm:$0xf] }
 0x335   : > { %v2838_v55 = vsel %vm2670_vm10, %v2833_v50, %v2837_v56  ;;  %v3502_v52 = vrot.slane %v6913_v42, 1  ;;  %v2475_v50 = vld [vmem:[#allocation2 + $0xb4] sm:$0xe]  ;;  %v3372_v56 = vshll.u32 %v6913_v42, 16 }
 0x336   : > { %4040 = vrot.lane.b32.xlu0 %v4006_v61, %s7550_s21  ;;  %v3897_v6 = vpop.permute.xlu0 %3896  ;;  %v3336_v61 = vshll.u32 %v6909_v18, 16  ;;  %v2505_v18 = vld [vmem:[#allocation2 + $0xb8] sm:$0xf] }
 0x337   : > { %v9535_v31 = vpop.permute.xlu1 %3118  ;;  %v6265_v40 = vcombine.low %v2539_v24, %v2505_v18 }
 0x338   : > { %3402 = vrot.lane.b32.xlu1 %v3351_v2, %s7551_s30  ;;  %v3338_v7 = vrot.slane %v3336_v61, 1  ;;  %v4059_v2 = vsel %vm1190_vm2, %v8848_v28, %v9521_v54  ;;  %v9589_v54 = vld [vmem:[#allocation2 + $0xc4] sm:$0xf] }
 0x339   : > { %v4091_v30 = vsel %vm661_vm0, %v4059_v2, %v9457_v51  ;;  %v9601_v27 = vcombine.low %v2506_v23, %v9589_v54 }
 0x33a   : > { %3020 = vrot.lane.b32.xlu0 %v2988_v39, %s7546_s29  ;;  %v3385_v0 = vpop.permute.xlu0 %3384  ;;  %v6219_v39 = vcombine.low %v2476_v49, %v2444_v11  ;;  %v4124_v51 = vsel %vm4112_vm14, %v4091_v30, %v9419_v37 }
 0x33b   : > { %v9548_v59 = vpop.permute.xlu1 %3626  ;;  %v4155_v32 = vsel %vm4145_vm15, %v4122_v13, %v3385_v0  ;;  %v2380_v13 = vld [vmem:[#allocation2 + $0xb8] sm:$0xf]  ;;  %v3867_v49 = vshll.u32 %v9601_v27, 16 }
 0x33c   : > { %2891 = vrot.lane.b32.xlu1 %v2850_v17, %s10369_s20  ;;  %v4188_v44 = vsel %vm4178_vm3, %v4155_v32, %v3513_v8  ;;  %v6171_v1 = vcombine.low %v2412_v16, %v2380_v13  ;;  %v6233_v17 = vcombine.low %v2504_v14, %v2505_v18  ;;  %v3501_v41 = vrot.slane %v6219_v39, 1 }
 0x33d   : > { %v4221_v22 = vsel %vm4211_vm4, %v4188_v44, %v9438_v33  ;;  %v3850_v33 = vrot.slane %v3848_v19, 1  ;;  %v2379_v19 = vld [vmem:[#allocation2 + $0xb4] sm:$0xf]  ;;  %v3374_v14 = vrot.slane %v3372_v56, 1  ;;  %v3860_v16 = vshll.u32 %v9594_v21, 16 }
 0x33e   : > { %4038 = vrot.lane.b32.xlu0 %v4003_v34, %s7550_s21  ;;  %v9558_v15 = vpop.permute.xlu0 %3628  ;;  %v4254_v48 = vsel %vm4244_vm5, %v4221_v22, %v3897_v6  ;;  %v6187_v6 = vcombine.low %v2443_v45, %v2444_v11  ;;  %v9591_v34 = vld [vmem:[#allocation2 + $0xbc] ss:$0 sps:$4 sm:$0x11]   ;;  %v2989_v44 = vrot.slane %v6171_v1, 1  ;;  %v2442_v22 = vld [vmem:[#allocation2 + $0xb8] sm:$0xf] }
 0x33f   : > { %v9564_v8 = vpop.permute.xlu1 %3518  ;;  %v4287_v26 = vsel %vm4277_vm6, %v4254_v48, %v9463_v4  ;;  %v3851_v43 = vsel %vm2670_vm10, %v3846_v63, %v3850_v33  ;;  %v3334_v4 = vor.u32 %v3333_v60, %v3329_v12  ;;  %v4008_v48 = vrot.slane %v9594_v21, 1 }
 0x340   : > { %3910 = vrot.lane.b32.xlu1 %v3839_v5, %s7552_s27  ;;  %6606 = vmatprep.mubr.msk.bf16.mxu0 %vm4346_vm7, %v4287_v26  ;;  %v3367_v0 = vshll.u32 %v6187_v6, 16  ;;  %v2990_v5 = vrot.slane %v9591_v34, 1  ;;  %v3365_v37 = vshrl.u32 %v6187_v6, 16  ;;  %v4157_v12 = vsel %vm4145_vm15, %v4124_v51, %v9470_v46 }
 0x341   : > { %v3339_v28 = vsel %vm2670_vm10, %v3334_v4, %v3338_v7  ;;  %v4007_v63 = vrot.slane %v6265_v40, 1  ;;  %v3855_v33 = vshll.u32 %v6233_v17, 16  ;;  %v3503_v60 = vsel %vm2943_vm9, %v3501_v41, %v3502_v52  ;;  %v9619_v4 = vld [vmem:[#allocation2 + $0xc8] ss:$0 sps:$4 sm:$0x11]   ;;  %v10482_v40 = vld [vmem:[#allocation79_spill] sm:$0xff] }
 0x342   : > { %3528 = vrot.lane.b32.xlu0 %v3494_v53, %s7549_s18  ;;  %v9571_v47 = vpop.permute.xlu0 %3116  ;;  %v9608_v53 = vld [vmem:[#allocation2 + $0xbc] ss:$0 sps:$4 sm:$0x11]   ;;  %v3369_v26 = vrot.slane %v3367_v0, 1  ;;  %v9617_v11 = vcombine.low %v2441_v25, %v2442_v22  ;;  %v2991_v7 = vsel %vm2943_vm9, %v2989_v44, %v2990_v5  ;;  %v3853_v46 = vshrl.u32 %v6233_v17, 16 }
 0x343   : > { %v9574_v58 = vpop.permute.xlu1 %3006  ;;  %v4190_v2 = vsel %vm4178_vm3, %v4157_v12, %v9447_v20  ;;  %v4009_v23 = vsel %vm2943_vm9, %v4007_v63, %v4008_v48  ;;  %v3872_v1 = vshll.u32 %v9619_v4, 16  ;;  %v3879_v51 = vshll.u32 %v10482_v40, 16  ;;  %v9643_v41 = vld [vmem:[#allocation2 + $0xd4] ss:$0 sps:$4 sm:$0x11]  }
 0x344   : > { %2889 = vrot.lane.b32.xlu1 %v2838_v55, %s10369_s20  ;;  %v9615_v55 = vcombine.low %v2379_v19, %v2380_v13  ;;  %v4223_v18 = vsel %vm4211_vm4, %v4190_v2, %v9548_v59  ;;  %v3370_v39 = vor.u32 %v3369_v26, %v3365_v37  ;;  %v3857_v13 = vrot.slane %v3855_v33, 1  ;;  %v2540_v33 = vld [vmem:[#allocation2 + $0xc0] sm:$0xe] }
 0x345   : > { %v3869_v59 = vrot.slane %v3867_v49, 1  ;;  %v3355_v0 = vshll.u32 %v9617_v11, 16  ;;  %v3862_v44 = vrot.slane %v3860_v16, 1  ;;  %v2859_v37 = vshll.u32 %v9591_v34, 16 }
 0x346   : > { %3912 = vrot.lane.b32.xlu0 %v3851_v43, %s7552_s27  ;;  %v6218_v43 = vcombine.low %v2475_v50, %v2442_v22  ;;  %v3375_v19 = vsel %vm2670_vm10, %v3370_v39, %v3374_v14  ;;  %v3858_v25 = vor.u32 %v3857_v13, %v3853_v46  ;;  %v2852_v5 = vshrl.u32 %v9615_v55, 16  ;;  %v2541_v46 = vld [vmem:[#allocation2 + $0xcc] sm:$0xe] }
 0x347   : > { %v9586_v35 = vpop.permute.xlu1 %3390  ;;  %v3874_v56 = vrot.slane %v3872_v1, 1  ;;  %v3353_v12 = vshrl.u32 %v9617_v11, 16  ;;  %v3357_v26 = vrot.slane %v3355_v0, 1  ;;  %v3360_v63 = vshll.u32 %v9608_v53, 16 }
 0x348   : > { %v9581_v57 = vpop.permute.xlu0 %4028  ;;  %3134 = vrot.lane.b32.xlu1 %v6187_v6, %s7548_s17  ;;  %v3499_v6 = vrot.slane %v9608_v53, 1  ;;  %v3498_v20 = vrot.slane %v6218_v43, 1  ;;  %v10483_v43 = vld [vmem:[#allocation80_spill] sm:$0xff]  ;;  %v3884_v34 = vshll.u32 %v9643_v41, 16  ;;  %v3863_v53 = vsel %vm2670_vm10, %v3858_v25, %v3862_v44 }
 0x349   : > { %v2861_v16 = vrot.slane %v2859_v37, 1  ;;  %v3358_v39 = vor.u32 %v3357_v26, %v3353_v12 }
 0x34a   : > { %3400 = vrot.lane.b32.xlu0 %v3339_v28, %s7551_s30  ;;  %v2854_v28 = vshll.u32 %v9615_v55, 16 }
 0x34c   : > { %v9598_v32 = vpop.permute.xlu0 %3008  ;;  %3642 = vrot.lane.b32.xlu1 %v6233_v17, %s7545_s0  ;;  %v3865_v17 = vshrl.u32 %v9601_v27, 16  ;;  %v2856_v50 = vrot.slane %v2854_v28, 1 }
 0x34e   : > { %3644 = vrot.lane.b32.xlu0 %v9601_v27, %s7545_s0  ;;  %v9612_v61 = vpop.permute.xlu1 %2879  ;;  %v3500_v27 = vsel %vm2943_vm9, %v3498_v20, %v3499_v6  ;;  %v3870_v48 = vor.u32 %v3869_v59, %v3865_v17  ;;  %v2857_v14 = vor.u32 %v2856_v50, %v2852_v5  ;;  %v3886_v20 = vrot.slane %v3884_v34, 1  ;;  %v10484_v5 = vld [vmem:[#allocation81_spill] sm:$0xff]  ;;  %v10485_v34 = vld [vmem:[#allocation83_spill] sm:$0xff] }
 0x350   : > { %v4027_v45 = vpop.permute.xlu0 %4026  ;;  %3534 = vrot.lane.b32.xlu1 %v3503_v60, %s7549_s18  ;;  %v3877_v60 = vshrl.u32 %v10482_v40, 16  ;;  %v2862_v1 = vsel %vm2670_vm10, %v2857_v14, %v2861_v16  ;;  %v4011_v40 = vrot.slane %v9619_v4, 1 }
 0x352   : > { %3132 = vrot.lane.b32.xlu0 %v9617_v11, %s7548_s17  ;;  %v3899_v42 = vpop.permute.xlu1 %3898 }
 0x353   : > { %v4256_v24 = vsel %vm4244_vm5, %v4223_v18, %v3899_v42  ;;  %v3875_v42 = vsel %vm2670_vm10, %v3870_v48, %v3874_v56 }
 0x354   : > { %v3517_v30 = vpop.permute.xlu0 %3516  ;;  %3022 = vrot.lane.b32.xlu1 %v2991_v7, %s7546_s29  ;;  %v4289_v21 = vsel %vm4277_vm6, %v4256_v24, %v4027_v45  ;;  %v3881_v45 = vrot.slane %v3879_v51, 1  ;;  %v4061_v7 = vsel %vm1190_vm2, %v10483_v43, %v9489_v62  ;;  %v6266_v62 = vcombine.low %v2540_v33, %v9589_v54 }
 0x355   : > { %6607 = vmatmul.mubr.msk.bf16.gmra.mrb[24].mxu0 %vm4346_vm7, %v4289_v21  ;;  %v4093_v49 = vsel %vm661_vm0, %v4061_v7, %v9481_v3  ;;  %v3362_v3 = vrot.slane %v3360_v63, 1 }
 0x356   : > { %4042 = vrot.lane.b32.xlu0 %v4009_v23, %s7550_s21  ;;  %v2878_v52 = vpop.permute.xlu1 %2877  ;;  %v4126_v2 = vsel %vm4112_vm14, %v4093_v49, %v9571_v47  ;;  %v7442_v23 = vld [vmem:[#allocation2 + $0xd0] sm:$0xf]  ;;  %v3882_v47 = vor.u32 %v3881_v45, %v3877_v60  ;;  %v4010_v0 = vrot.slane %v6266_v62, 1 }
 0x357   : > { %v6267_v13 = vcombine.low %v2541_v46, %v7442_v23 }
 0x358   : > { %v3901_v22 = vpop.permute.xlu0 %3900  ;;  %3406 = vrot.lane.b32.xlu1 %v3375_v19, %s7551_s30  ;;  %v3887_v19 = vsel %vm2670_vm10, %v3882_v47, %v3886_v20 }
 0x359   : > { %v4013_v51 = vrot.slane %v6267_v13, 1 }
 0x35a   : > { %3532 = vrot.lane.b32.xlu0 %v3500_v27, %s7549_s18  ;;  %v9660_v11 = vpop.permute.xlu1 %3122  ;;  %s10555_s18 = sld [smem:[#allocation88_spill]] }
 0x35c   : > { %v3389_v6 = vpop.permute.xlu0 %3388  ;;  %3914 = vrot.lane.b32.xlu1 %v3863_v53, %s7552_s27 }
 0x35d   : > { %v4159_v18 = vsel %vm4145_vm15, %v4126_v2, %v3389_v6 }
 0x35e   : > { %v4192_v24 = vsel %vm4178_vm3, %v4159_v18, %v3517_v30  ;;  %3916 = vrot.lane.b32.xlu0 %v3875_v42, %s7552_s27  ;;  %v3631_v28 = vpop.permute.xlu1 %3630  ;;  %v3363_v30 = vsel %vm2670_vm10, %v3358_v39, %v3362_v3 }
 0x35f   : > { %v4225_v54 = vsel %vm4211_vm4, %v4192_v24, %v9558_v15  ;;  %v4014_v15 = vrot.slane %v9643_v41, 1 }
 0x360   : > { %v3633_v21 = vpop.permute.xlu0 %3632  ;;  %v4258_v17 = vsel %vm4244_vm5, %v4225_v54, %v3901_v22  ;;  %2893 = vrot.lane.b32.xlu1 %v2862_v1, %s10369_s20  ;;  %v4063_v22 = vsel %vm1190_vm2, %v10484_v5, %v2878_v52 }
 0x361   : > { %v4291_v59 = vsel %vm4277_vm6, %v4258_v17, %v9581_v57  ;;  %v4012_v57 = vsel %vm2943_vm9, %v4010_v0, %v4011_v40  ;;  %v4015_v4 = vsel %vm2943_vm9, %v4013_v51, %v4014_v15  ;;  %v4095_v37 = vsel %vm661_vm0, %v4063_v22, %v9574_v58 }
 0x362   : > { %6610 = vmatprep.mubr.msk.bf16.mxu0 %vm4346_vm7, %v4291_v59  ;;  %3404 = vrot.lane.b32.xlu0 %v3363_v30, %s7551_s30  ;;  %v3523_v25 = vpop.permute.xlu1 %3522  ;;  %v4128_v56 = vsel %vm4112_vm14, %v4095_v37, %v9535_v31  ;;  %s10552_s30 = sld [smem:[#allocation87_spill]] }
 0x363   : > { %v4161_v12 = vsel %vm4145_vm15, %v4128_v56, %v9586_v35  ;;  %v4065_v35 = vsel %vm1190_vm2, %v10485_v34, %v9612_v61 }
 0x364   : > { %v3121_v44 = vpop.permute.xlu0 %3120  ;;  %3918 = vrot.lane.b32.xlu1 %v3887_v19, %s7552_s27  ;;  %v4194_v63 = vsel %vm4178_vm3, %v4161_v12, %v9564_v8  ;;  %v4097_v46 = vsel %vm661_vm0, %v4065_v35, %v9598_v32  ;;  %s5974_s27 = sshll.u32 %s7744_s28, 8 }
 0x365   : > { %v4227_v33 = vsel %vm4211_vm4, %v4194_v63, %v3631_v28  ;;  %v4130_v49 = vsel %vm4112_vm14, %v4097_v46, %v3121_v44  ;;  %s10098_s23 = scalar_lea.vmem [#allocation6], %s5974_s27 }
 0x366   : > { %4044 = vrot.lane.b32.xlu0 %v4012_v57, %s7550_s21  ;;  %v3011_v27 = vpop.permute.xlu1 %3010  ;;  %s5893_s0 = sshll.u32 %s10098_s23, 4  ;;  %s10223_s0 = int_to_ptr.vmem [resolvable:$true] %s5893_s0 }
 0x367   : > { %s7473_s27 = scalar_lea.vmem %s10223_s0, 4096 }
 0x368   : > { %v4033_v50 = vpop.permute.xlu0 %4032  ;;  %4046 = vrot.lane.b32.xlu1 %v4015_v4, %s7550_s21  ;;  %s10219_s21 = scalar_lea.hbm %s10555_s18, %s6430_s26  ;;  %p7474_p6 = scmp.ne.s32.totalorder %s10223_s0, %s7473_s27 }
 0x369   : > { %s7477_s26 = sshll.u32 %s7553_s25, 4  ;;  %s7478_s26 = int_to_ptr.vmem [resolvable:$false] %s7477_s26 }
 0x36a   : > { %v3395_v41 = vpop.permute.xlu1 %3394  ;;  %p7475_p12 = pnand %p7474_p6, %p10556_p11  ;;  %s7479_s29 = scalar_lea.vmem %s7478_s26, 8192 }
 0x36b   : > { %p7480_p8 = scmp.lt.s32.totalorder %s10223_s0, %s7478_s26  ;;  %p7481_p10 = scmp.lt.s32.totalorder %s7479_s29, %s7473_s27 }
 0x36c   : > { %v3013_v48 = vpop.permute.xlu0 %3012  ;;  %p7476_p13 = pneg %p7475_p12 }
 0x36d   : > { %p7482_p0 = por %p7481_p10, %p7480_p8 }
 0x36e   : > { %v2884_v52 = vpop.permute.xlu1 %2883 }
 0x36f   : > { %p7483_p2 = pnand %p7482_p0, %p7476_p13 }
 0x370   : > { %v4031_v26 = vpop.permute.xlu0 %4030 }
 0x372   : > { %v3903_v60 = vpop.permute.xlu1 %3902 }
 0x373   : > { %v4260_v58 = vsel %vm4244_vm5, %v4227_v33, %v3903_v60  ;;  %v4893_v60 = vld [vmem:[%s10282_s10] sm:$0xf] }
 0x374   : > { %v3521_v45 = vpop.permute.xlu0 %3520  ;;  %v4293_v43 = vsel %vm4277_vm6, %v4260_v58, %v4031_v26  ;;  %6702 = vmatprep.subr.msk.bf16.mxu1 %vm1239_vm1, %v4893_v60 }
 0x375   : > { %6611 = vmatmul.mubr.msk.bf16.gmra.mrb[28].mxu0 %vm4346_vm7, %v4293_v43  ;;  %v4943_v43 = vsel %vm1239_vm1, %v4893_v60, 0 }
 0x376   : > { %v2882_v31 = vpop.permute.xlu1 %2881  ;;  %6631 = vmatpush3.bf16.msra.mxu1 %v4943_v43  ;;  %v9800_v43 = vld [vmem:[%s10281_s9] ss:$0 sm:$0xff] }
 0x377   : > { %v4067_v39 = vsel %vm1190_vm2, %v9221_v29, %v2882_v31 }
 0x378   : > { %v3905_v7 = vpop.permute.xlu0 %3904  ;;  %v4099_v13 = vsel %vm661_vm0, %v4067_v39, %v3011_v27 }
 0x379   : > { %v4132_v47 = vsel %vm4112_vm14, %v4099_v13, %v9660_v11  ;;  %v10486_v11 = vld [vmem:[#allocation84_spill] sm:$0xff] }
 0x37a   : > { %v3127_v8 = vpop.permute.xlu1 %3126  ;;  %v4165_v28 = vsel %vm4145_vm15, %v4132_v47, %v3395_v41  ;;  %v4069_v19 = vsel %vm1190_vm2, %v10486_v11, %v2884_v52 }
 0x37b   : > { %v4101_v15 = vsel %vm661_vm0, %v4069_v19, %v3013_v48 }
 0x37c   : > { %v3393_v53 = vpop.permute.xlu0 %3392 }
 0x37d   : > { %v4163_v2 = vsel %vm4145_vm15, %v4130_v49, %v3393_v53 }
 0x37e   : > { %v4196_v14 = vsel %vm4178_vm3, %v4163_v2, %v3521_v45  ;;  %v3635_v16 = vpop.permute.xlu1 %3634 }
 0x37f   : > { %v4229_v6 = vsel %vm4211_vm4, %v4196_v14, %v3633_v21  ;;  %v4198_v21 = vsel %vm4178_vm3, %v4165_v28, %v3523_v25 }
 0x380   : > { %v3637_v62 = vpop.permute.xlu0 %3636  ;;  %v4262_v18 = vsel %vm4244_vm5, %v4229_v6, %v3905_v7  ;;  %v4231_v17 = vsel %vm4211_vm4, %v4198_v21, %v3635_v16 }
 0x381   : > { %v4295_v42 = vsel %vm4277_vm6, %v4262_v18, %v4033_v50 }
 0x382   : > { %6614 = vmatprep.mubr.msk.bf16.mxu0 %vm4346_vm7, %v4295_v42  ;;  %v3527_v61 = vpop.permute.xlu1 %3526 }
 0x384   : > { %v3125_v32 = vpop.permute.xlu0 %3124 }
 0x385   : > { %v4134_v25 = vsel %vm4112_vm14, %v4101_v15, %v3125_v32 }
 0x386   : > { %v3015_v3 = vpop.permute.xlu1 %3014 }
 0x388   : > { %v4037_v23 = vpop.permute.xlu0 %4036 }
 0x38a   : > { %v3399_v24 = vpop.permute.xlu1 %3398 }
 0x38c   : > { %v3017_v20 = vpop.permute.xlu0 %3016 }
 0x38e   : > { %v2888_v54 = vpop.permute.xlu1 %2887 }
 0x38f   : > { %v4073_v16 = vsel %vm1190_vm2, %v9362_v36, %v2888_v54 }
 0x390   : > { %v4035_v1 = vpop.permute.xlu0 %4034  ;;  %v4105_v6 = vsel %vm661_vm0, %v4073_v16, %v3017_v20 }
 0x392   : > { %v3907_v59 = vpop.permute.xlu1 %3906 }
 0x393   : > { %v4264_v29 = vsel %vm4244_vm5, %v4231_v17, %v3907_v59 }
 0x394   : > { %v3525_v30 = vpop.permute.xlu0 %3524  ;;  %v4297_v0 = vsel %vm4277_vm6, %v4264_v29, %v4035_v1 }
 0x395   : > { %6615 = vmatmul.mubr.msk.bf16.gmra.mrb[32].mxu0 %vm4346_vm7, %v4297_v0 }
 0x396   : > { %v2886_v40 = vpop.permute.xlu1 %2885 }
 0x397   : > { %v4071_v12 = vsel %vm1190_vm2, %v9402_v9, %v2886_v40 }
 0x398   : > { %v3909_v51 = vpop.permute.xlu0 %3908  ;;  %v4103_v63 = vsel %vm661_vm0, %v4071_v12, %v3015_v3 }
 0x399   : > { %v4136_v58 = vsel %vm4112_vm14, %v4103_v63, %v3127_v8 }
 0x39a   : > { %v3131_v44 = vpop.permute.xlu1 %3130  ;;  %v4169_v31 = vsel %vm4145_vm15, %v4136_v58, %v3399_v24  ;;  %v9795_v58 = vld [vmem:[%s10280_s8] ss:$0 sm:$0xff] }
 0x39b   : > { %v4202_v34 = vsel %vm4178_vm3, %v4169_v31, %v3527_v61 }
 0x39c   : > { %v3397_v57 = vpop.permute.xlu0 %3396 }
 0x39d   : > { %v4167_v5 = vsel %vm4145_vm15, %v4134_v25, %v3397_v57 }
 0x39e   : > { %v4200_v22 = vsel %vm4178_vm3, %v4167_v5, %v3525_v30  ;;  %v3639_v4 = vpop.permute.xlu1 %3638 }
 0x39f   : > { %v4233_v27 = vsel %vm4211_vm4, %v4200_v22, %v3637_v62  ;;  %v4235_v35 = vsel %vm4211_vm4, %v4202_v34, %v3639_v4 }
 0x3a0   : > { %v3641_v50 = vpop.permute.xlu0 %3640  ;;  %v4266_v37 = vsel %vm4244_vm5, %v4233_v27, %v3909_v51 }
 0x3a1   : > { %v4299_v41 = vsel %vm4277_vm6, %v4266_v37, %v4037_v23 }
 0x3a2   : > { %6618 = vmatprep.mubr.msk.bf16.mxu0 %vm4346_vm7, %v4299_v41  ;;  %v3531_v56 = vpop.permute.xlu1 %3530 }
 0x3a4   : > { %v3129_v48 = vpop.permute.xlu0 %3128 }
 0x3a5   : > { %v4138_v18 = vsel %vm4112_vm14, %v4105_v6, %v3129_v48 }
 0x3a6   : > { %v3019_v52 = vpop.permute.xlu1 %3018 }
 0x3a8   : > { %v4041_v26 = vpop.permute.xlu0 %4040 }
 0x3aa   : > { %v3403_v33 = vpop.permute.xlu1 %3402 }
 0x3ac   : > { %v3021_v45 = vpop.permute.xlu0 %3020 }
 0x3ae   : > { %v2892_v9 = vpop.permute.xlu1 %2891 }
 0x3af   : > { %v4077_v19 = vsel %vm1190_vm2, %v9485_v10, %v2892_v9 }
 0x3b0   : > { %v4039_v7 = vpop.permute.xlu0 %4038  ;;  %v4109_v15 = vsel %vm661_vm0, %v4077_v19, %v3021_v45 }
 0x3b2   : > { %v3911_v46 = vpop.permute.xlu1 %3910 }
 0x3b3   : > { %v4268_v49 = vsel %vm4244_vm5, %v4235_v35, %v3911_v46 }
 0x3b4   : > { %v3529_v53 = vpop.permute.xlu0 %3528  ;;  %v4301_v8 = vsel %vm4277_vm6, %v4268_v49, %v4039_v7 }
 0x3b5   : > { %6619 = vmatmul.mubr.msk.bf16.gmra.mrb[36].mxu0 %vm4346_vm7, %v4301_v8 }
 0x3b6   : > { %v2890_v2 = vpop.permute.xlu1 %2889 }
 0x3b7   : > { %v4075_v36 = vsel %vm1190_vm2, %v9515_v38, %v2890_v2 }
 0x3b8   : > { %v3913_v14 = vpop.permute.xlu0 %3912  ;;  %v4107_v28 = vsel %vm661_vm0, %v4075_v36, %v3019_v52 }
 0x3b9   : > { %v4140_v1 = vsel %vm4112_vm14, %v4107_v28, %v3131_v44 }
 0x3ba   : > { %v3135_v62 = vpop.permute.xlu1 %3134  ;;  %v4173_v17 = vsel %vm4145_vm15, %v4140_v1, %v3403_v33 }
 0x3bb   : > { %v4206_v30 = vsel %vm4178_vm3, %v4173_v17, %v3531_v56 }
 0x3bc   : > { %v3401_v42 = vpop.permute.xlu0 %3400 }
 0x3bd   : > { %v4171_v61 = vsel %vm4145_vm15, %v4138_v18, %v3401_v42 }
 0x3be   : > { %v4204_v32 = vsel %vm4178_vm3, %v4171_v61, %v3529_v53  ;;  %v3643_v39 = vpop.permute.xlu1 %3642 }
 0x3bf   : > { %v4237_v3 = vsel %vm4211_vm4, %v4204_v32, %v3641_v50  ;;  %v4239_v0 = vsel %vm4211_vm4, %v4206_v30, %v3643_v39 }
 0x3c0   : > { %v3645_v23 = vpop.permute.xlu0 %3644  ;;  %v4270_v13 = vsel %vm4244_vm5, %v4237_v3, %v3913_v14 }
 0x3c1   : > { %v4303_v24 = vsel %vm4277_vm6, %v4270_v13, %v4041_v26 }
 0x3c2   : > { %6622 = vmatprep.mubr.msk.bf16.mxu0 %vm4346_vm7, %v4303_v24  ;;  %v3535_v47 = vpop.permute.xlu1 %3534 }
 0x3c4   : > { %v3133_v20 = vpop.permute.xlu0 %3132 }
 0x3c5   : > { %v4142_v25 = vsel %vm4112_vm14, %v4109_v15, %v3133_v20 }
 0x3c6   : > { %v3023_v54 = vpop.permute.xlu1 %3022 }
 0x3c8   : > { %v4043_v21 = vpop.permute.xlu0 %4042 }
 0x3ca   : > { %v3407_v59 = vpop.permute.xlu1 %3406 }
 0x3cc   : > { %v3533_v29 = vpop.permute.xlu0 %3532 }
 0x3ce   : > { %v3915_v40 = vpop.permute.xlu1 %3914 }
 0x3cf   : > { %v4272_v38 = vsel %vm4244_vm5, %v4239_v0, %v3915_v40 }
 0x3d0   : > { %v3917_v51 = vpop.permute.xlu0 %3916  ;;  %v4305_v11 = vsel %vm4277_vm6, %v4272_v38, %v4043_v21  ;;  %v10488_v38 = vld [vmem:[#allocation50_spill] sm:$0xff] }
 0x3d1   : > { %6623 = vmatmul.mubr.msk.bf16.gmra.mrb[40].mxu0 %vm4346_vm7, %v4305_v11  ;;  %v10489_v11 = vld [vmem:[#allocation46_spill] sm:$0xff] }
 0x3d2   : > { %v2894_v44 = vpop.permute.xlu1 %2893 }
 0x3d3   : > { %v4079_v57 = vsel %vm1190_vm2, %v9615_v55, %v2894_v44  ;;  %v10487_v55 = vld [vmem:[#allocation82_spill] sm:$0xff] }
 0x3d4   : > { %v3405_v5 = vpop.permute.xlu0 %3404  ;;  %v4111_v22 = vsel %vm661_vm0, %v4079_v57, %v3023_v54  ;;  %v10490_v57 = vld [vmem:[#allocation48_spill] sm:$0xff] }
 0x3d5   : > { %v4175_v4 = vsel %vm4145_vm15, %v4142_v25, %v3405_v5  ;;  %v4144_v27 = vsel %vm4112_vm14, %v4111_v22, %v3135_v62  ;;  %v10491_v22 = vld [vmem:[#allocation49_spill] sm:$0xff] }
 0x3d6   : > { %v4208_v50 = vsel %vm4178_vm3, %v4175_v4, %v3533_v29  ;;  %v4177_v10 = vsel %vm4145_vm15, %v4144_v27, %v3407_v59  ;;  %v3919_v37 = vpop.permute.xlu1 %3918 }
 0x3d7   : > { %v4241_v41 = vsel %vm4211_vm4, %v4208_v50, %v3645_v23  ;;  %v4210_v56 = vsel %vm4178_vm3, %v4177_v10, %v3535_v47 }
 0x3d8   : > { %v4274_v48 = vsel %vm4244_vm5, %v4241_v41, %v3917_v51  ;;  %v4045_v12 = vpop.permute.xlu0 %4044  ;;  %v4243_v52 = vsel %vm4211_vm4, %v4210_v56, %v10487_v55 }
 0x3d9   : > { %v4307_v26 = vsel %vm4277_vm6, %v4274_v48, %v4045_v12  ;;  %v4276_v63 = vsel %vm4244_vm5, %v4243_v52, %v3919_v37 }
 0x3da   : > { %6626 = vmatprep.mubr.msk.bf16.mxu0 %vm4346_vm7, %v4307_v26  ;;  %v4047_v33 = vpop.permute.xlu1 %4046 }
 0x3db   : > { %v4309_v60 = vsel %vm4277_vm6, %v4276_v63, %v4047_v33 }
 0x3dc   : > { %6627 = vmatmul.mubr.msk.bf16.gmra.mrb[44].mxu0 %vm4346_vm7, %v4309_v60 }
 0x3e4   : > { %v6600_v45 = vpop.f32.mrb[16].mxu0 }
 0x3e5   : > { %v4552_v31 = vmul.f32 %v6600_v45, %v9795_v58  ;;  %v4416_v9 = vpop.f32.mrb[17].mxu0 }
 0x3e6   : > { %v4550_v7 = vmul.f32 %v9795_v58, %v4416_v9  ;;  %v6601_v34 = vpop.f32.mrb[18].mxu0 }
 0x3e7   : > { %v4591_v35 = vadd.f32 %v9800_v43, %v4552_v31  ;;  %v4553_v46 = vmul.f32 %v6601_v34, %v9795_v58  ;;  %v4419_v49 = vpop.f32.mrb[19].mxu0 }
 0x3e8   : > { %v4589_v53 = vadd.f32 %v9800_v43, %v4550_v7  ;;  %v4551_v8 = vmul.f32 %v9795_v58, %v4419_v49 }
 0x3e9   : > { %v6293_v2 = vmul.f32 -1.442695, %v4591_v35  ;;  %v4592_v14 = vadd.f32 %v9800_v43, %v4553_v46 }
 0x3ea   : > { %v6291_v16 = vmul.f32 -1.442695, %v4589_v53  ;;  %v4590_v6 = vadd.f32 %v9800_v43, %v4551_v8 }
 0x3eb   : > { %7184 = vpow2.f32 %v6293_v2  ;;  %v6294_v62 = vmul.f32 -1.442695, %v4592_v14 }
 0x3ec   : > { %7186 = vpow2.f32 %v6291_v16  ;;  %v6292_v18 = vmul.f32 -1.442695, %v4590_v6 }
 0x3ed   : > { %7188 = vpow2.f32 %v6294_v62 }
 0x3ee   : > { %7190 = vpow2.f32 %v6292_v18  ;;  %v10493_v18 = vld [vmem:[#allocation51_spill] sm:$0xff] }
 0x3f5   : > { %v7185_v42 = vpop.eup %7184 }
 0x3f6   : > { %v7187_v61 = vpop.eup %7186  ;;  %v4719_v32 = vadd.f32 1.0, %v7185_v42 }
 0x3f7   : > { %v7189_v39 = vpop.eup %7188  ;;  %v4717_v3 = vadd.f32 1.0, %v7187_v61 }
 0x3f8   : > { %v7191_v23 = vpop.eup %7190  ;;  %7192 = vrcp.f32 %v4719_v32  ;;  %v4720_v13 = vadd.f32 1.0, %v7189_v39  ;;  %v10494_v39 = vld [vmem:[#allocation52_spill] sm:$0xff] }
 0x3f9   : > { %7194 = vrcp.f32 %v4717_v3  ;;  %v4718_v24 = vadd.f32 1.0, %v7191_v23  ;;  %v10495_v23 = vld [vmem:[#allocation53_spill] sm:$0xff] }
 0x3fa   : > { %7196 = vrcp.f32 %v4720_v13 }
 0x3fb   : > { %7198 = vrcp.f32 %v4718_v24 }
 0x402   : > { %v7193_v36 = vpop.eup %7192 }
 0x403   : > { %v7195_v47 = vpop.eup %7194  ;;  %v4815_v20 = vmul.f32 %v7193_v36, %v4591_v35 }
 0x404   : > { %v7197_v28 = vpop.eup %7196  ;;  %v4813_v54 = vmul.f32 %v7195_v47, %v4589_v53 }
 0x405   : > { %v6604_v1 = vpop.f32.mrb[20].mxu0  ;;  %v7199_v21 = vpop.eup %7198  ;;  %v4816_v17 = vmul.f32 %v7197_v28, %v4592_v14  ;;  %v4847_v51 = vadd.f32 %v4815_v20, %v10488_v38 }
 0x406   : > { %v4556_v59 = vmul.f32 %v6604_v1, %v9795_v58  ;;  %v4432_v29 = vpop.f32.mrb[21].mxu0  ;;  %v4814_v30 = vmul.f32 %v7199_v21, %v4590_v6  ;;  %v4845_v5 = vadd.f32 %v4813_v54, %v10490_v57  ;;  %v10492_v6 = vld [vmem:[#allocation54_spill] sm:$0xff] }
 0x407   : > { %v4554_v0 = vmul.f32 %v9795_v58, %v4432_v29  ;;  %v6605_v40 = vpop.f32.mrb[22].mxu0  ;;  %v4848_v19 = vadd.f32 %v4816_v17, %v10489_v11 }
 0x408   : > { %v4595_v15 = vadd.f32 %v9800_v43, %v4556_v59  ;;  %v4557_v44 = vmul.f32 %v6605_v40, %v9795_v58  ;;  %v4435_v25 = vpop.f32.mrb[23].mxu0  ;;  %v4846_v4 = vadd.f32 %v4814_v30, %v10491_v22 }
 0x409   : > { %v4593_v27 = vadd.f32 %v9800_v43, %v4554_v0  ;;  %v4555_v50 = vmul.f32 %v9795_v58, %v4435_v25  ;;  %v4878_v10 = vpack.c.bf16 %v4848_v19, %v4847_v51 }
 0x40a   : > { %v6297_v37 = vmul.f32 -1.442695, %v4595_v15  ;;  %v4596_v41 = vadd.f32 %v9800_v43, %v4557_v44  ;;  %v4877_v12 = vpack.c.bf16 %v4846_v4, %v4845_v5 }
 0x40b   : > { %v6295_v56 = vmul.f32 -1.442695, %v4593_v27  ;;  %v4594_v48 = vadd.f32 %v9800_v43, %v4555_v50 }
 0x40c   : > { %7200 = vpow2.f32 %v6297_v37  ;;  %v6298_v55 = vmul.f32 -1.442695, %v4596_v41  ;;  %6632 = vmatprep.mubr.msk.bf16.mxu1 %vm1190_vm2, %v4877_v12 }
 0x40d   : > { %7202 = vpow2.f32 %v6295_v56  ;;  %v6296_v52 = vmul.f32 -1.442695, %v4594_v48  ;;  %6633 = vmatmul.mubr.msk.bf16.vlgmr.msra.gmra.mrb[48].mxu1 %vm1190_vm2, %v4878_v10 }
 0x40e   : > { %7204 = vpow2.f32 %v6298_v55 }
 0x40f   : > { %7206 = vpow2.f32 %v6296_v52 }
 0x416   : > { %v7201_v26 = vpop.eup %7200 }
 0x417   : > { %v7203_v63 = vpop.eup %7202  ;;  %v4723_v33 = vadd.f32 1.0, %v7201_v26 }
 0x418   : > { %v7205_v60 = vpop.eup %7204  ;;  %v4721_v45 = vadd.f32 1.0, %v7203_v63  ;;  %v10496_v63 = vld [vmem:[#allocation55_spill] sm:$0xff] }
 0x419   : > { %v7207_v31 = vpop.eup %7206  ;;  %7208 = vrcp.f32 %v4723_v33  ;;  %v4724_v9 = vadd.f32 1.0, %v7205_v60  ;;  %v10497_v60 = vld [vmem:[#allocation57_spill] sm:$0xff] }
 0x41a   : > { %7210 = vrcp.f32 %v4721_v45  ;;  %v4722_v7 = vadd.f32 1.0, %v7207_v31 }
 0x41b   : > { %7212 = vrcp.f32 %v4724_v9 }
 0x41c   : > { %7214 = vrcp.f32 %v4722_v7 }
 0x423   : > { %v7209_v34 = vpop.eup %7208 }
 0x424   : > { %v7211_v35 = vpop.eup %7210  ;;  %v4819_v46 = vmul.f32 %v7209_v34, %v4595_v15  ;;  %v10498_v34 = vld [vmem:[#allocation56_spill] sm:$0xff] }
 0x425   : > { %v7213_v49 = vpop.eup %7212  ;;  %v4817_v53 = vmul.f32 %v7211_v35, %v4593_v27 }
 0x426   : > { %v7215_v8 = vpop.eup %7214  ;;  %v4820_v2 = vmul.f32 %v7213_v49, %v4596_v41  ;;  %v4851_v62 = vadd.f32 %v4819_v46, %v10492_v6  ;;  %v10499_v46 = vld [vmem:[#allocation58_spill] sm:$0xff] }
 0x427   : > { %v4818_v14 = vmul.f32 %v7215_v8, %v4594_v48  ;;  %v4849_v3 = vadd.f32 %v4817_v53, %v10494_v39 }
 0x428   : > { %v6608_v16 = vpop.f32.mrb[24].mxu0  ;;  %v4852_v42 = vadd.f32 %v4820_v2, %v10493_v18 }
 0x429   : > { %v4560_v61 = vmul.f32 %v6608_v16, %v9795_v58  ;;  %v4448_v32 = vpop.f32.mrb[25].mxu0  ;;  %v4850_v13 = vadd.f32 %v4818_v14, %v10495_v23 }
 0x42a   : > { %v4558_v24 = vmul.f32 %v9795_v58, %v4448_v32  ;;  %v6609_v36 = vpop.f32.mrb[26].mxu0  ;;  %v4880_v54 = vpack.c.bf16 %v4852_v42, %v4851_v62 }
 0x42b   : > { %v4599_v47 = vadd.f32 %v9800_v43, %v4560_v61  ;;  %v4561_v20 = vmul.f32 %v6609_v36, %v9795_v58  ;;  %v4451_v28 = vpop.f32.mrb[27].mxu0  ;;  %v4879_v17 = vpack.c.bf16 %v4850_v13, %v4849_v3 }
 0x42c   : > { %v4597_v1 = vadd.f32 %v9800_v43, %v4558_v24  ;;  %v4559_v21 = vmul.f32 %v9795_v58, %v4451_v28 }
 0x42d   : > { %v6301_v59 = vmul.f32 -1.442695, %v4599_v47  ;;  %v4600_v29 = vadd.f32 %v9800_v43, %v4561_v20  ;;  %6636 = vmatprep.mubr.msk.bf16.mxu1 %vm1190_vm2, %v4879_v17 }
 0x42e   : > { %v6299_v30 = vmul.f32 -1.442695, %v4597_v1  ;;  %v4598_v0 = vadd.f32 %v9800_v43, %v4559_v21  ;;  %6637 = vmatmul.mubr.msk.bf16.gmra.mrb[52].mxu1 %vm1190_vm2, %v4880_v54 }
 0x42f   : > { %7216 = vpow2.f32 %v6301_v59  ;;  %v6302_v40 = vmul.f32 -1.442695, %v4600_v29 }
 0x430   : > { %7218 = vpow2.f32 %v6299_v30  ;;  %v6300_v38 = vmul.f32 -1.442695, %v4598_v0 }
 0x431   : > { %7220 = vpow2.f32 %v6302_v40 }
 0x432   : > { %7222 = vpow2.f32 %v6300_v38 }
 0x439   : > { %v7217_v51 = vpop.eup %7216 }
 0x43a   : > { %v7219_v11 = vpop.eup %7218  ;;  %v4727_v19 = vadd.f32 1.0, %v7217_v51 }
 0x43b   : > { %v7221_v15 = vpop.eup %7220  ;;  %v4725_v44 = vadd.f32 1.0, %v7219_v11  ;;  %v10500_v11 = vld [vmem:[#allocation59_spill] sm:$0xff] }
 0x43c   : > { %v7223_v25 = vpop.eup %7222  ;;  %7224 = vrcp.f32 %v4727_v19  ;;  %v4728_v57 = vadd.f32 1.0, %v7221_v15  ;;  %v10501_v15 = vld [vmem:[#allocation61_spill] sm:$0xff] }
 0x43d   : > { %7226 = vrcp.f32 %v4725_v44  ;;  %v4726_v5 = vadd.f32 1.0, %v7223_v25 }
 0x43e   : > { %7228 = vrcp.f32 %v4728_v57 }
 0x43f   : > { %7230 = vrcp.f32 %v4726_v5 }
 0x446   : > { %v7225_v22 = vpop.eup %7224 }
 0x447   : > { %v7227_v4 = vpop.eup %7226  ;;  %v4823_v27 = vmul.f32 %v7225_v22, %v4599_v47  ;;  %v10502_v22 = vld [vmem:[#allocation60_spill] sm:$0xff] }
 0x448   : > { %v7229_v50 = vpop.eup %7228  ;;  %v4821_v10 = vmul.f32 %v7227_v4, %v4597_v1  ;;  %v6612_v37 = vpop.f32.mrb[28].mxu0 }
 0x449   : > { %v7231_v41 = vpop.eup %7230  ;;  %v4824_v56 = vmul.f32 %v7229_v50, %v4600_v29  ;;  %v4564_v48 = vmul.f32 %v6612_v37, %v9795_v58  ;;  %v4464_v12 = vpop.f32.mrb[29].mxu0  ;;  %v4855_v33 = vadd.f32 %v4823_v27, %v10496_v63  ;;  %v10503_v27 = vld [vmem:[#allocation62_spill] sm:$0xff] }
 0x44a   : > { %v4822_v55 = vmul.f32 %v7231_v41, %v4598_v0  ;;  %v4562_v52 = vmul.f32 %v9795_v58, %v4464_v12  ;;  %v6613_v26 = vpop.f32.mrb[30].mxu0  ;;  %v4853_v35 = vadd.f32 %v4821_v10, %v10498_v34  ;;  %v6927_v12 = vld [vmem:[%s10285_s13] sm:$0xff]  }
 0x44b   : > { %v4856_v45 = vadd.f32 %v4824_v56, %v10497_v60  ;;  %v4603_v31 = vadd.f32 %v9800_v43, %v4564_v48  ;;  %v4565_v9 = vmul.f32 %v6613_v26, %v9795_v58  ;;  %v4467_v7 = vpop.f32.mrb[31].mxu0  ;;  %6664 = vmatprep.subr.bf16.mxu0 %v6927_v12 }
 0x44c   : > { %v4854_v49 = vadd.f32 %v4822_v55, %v10499_v46  ;;  %v4601_v53 = vadd.f32 %v9800_v43, %v4562_v52  ;;  %v4563_v8 = vmul.f32 %v9795_v58, %v4467_v7  ;;  %6665 = vmatpush3.bf16.msra.mxu0 %v6927_v12 }
 0x44d   : > { %v6305_v2 = vmul.f32 -1.442695, %v4603_v31  ;;  %v4604_v14 = vadd.f32 %v9800_v43, %v4565_v9  ;;  %v4882_v16 = vpack.c.bf16 %v4856_v45, %v4855_v33 }
 0x44e   : > { %v6303_v6 = vmul.f32 -1.442695, %v4601_v53  ;;  %v4602_v62 = vadd.f32 %v9800_v43, %v4563_v8  ;;  %v4881_v18 = vpack.c.bf16 %v4854_v49, %v4853_v35 }
 0x44f   : > { %7232 = vpow2.f32 %v6305_v2  ;;  %v6306_v42 = vmul.f32 -1.442695, %v4604_v14 }
 0x450   : > { %7234 = vpow2.f32 %v6303_v6  ;;  %v6304_v61 = vmul.f32 -1.442695, %v4602_v62  ;;  %6640 = vmatprep.mubr.msk.bf16.mxu1 %vm1190_vm2, %v4881_v18 }
 0x451   : > { %7236 = vpow2.f32 %v6306_v42  ;;  %6641 = vmatmul.mubr.msk.bf16.gmra.mrb[56].mxu1 %vm1190_vm2, %v4882_v16 }
 0x452   : > { %7238 = vpow2.f32 %v6304_v61 }
 0x459   : > { %v7233_v32 = vpop.eup %7232 }
 0x45a   : > { %v7235_v39 = vpop.eup %7234  ;;  %v4731_v3 = vadd.f32 1.0, %v7233_v32 }
 0x45b   : > { %v7237_v23 = vpop.eup %7236  ;;  %v4729_v13 = vadd.f32 1.0, %v7235_v39 }
 0x45c   : > { %v7239_v24 = vpop.eup %7238  ;;  %7240 = vrcp.f32 %v4731_v3  ;;  %v4732_v36 = vadd.f32 1.0, %v7237_v23  ;;  %v10504_v3 = vld [vmem:[#allocation63_spill] sm:$0xff] }
 0x45d   : > { %7242 = vrcp.f32 %v4729_v13  ;;  %v4730_v47 = vadd.f32 1.0, %v7239_v24  ;;  %v10505_v13 = vld [vmem:[#allocation64_spill] sm:$0xff] }
 0x45e   : > { %7244 = vrcp.f32 %v4732_v36 }
 0x45f   : > { %7246 = vrcp.f32 %v4730_v47 }
 0x466   : > { %v7241_v20 = vpop.eup %7240 }
 0x467   : > { %v7243_v28 = vpop.eup %7242  ;;  %v4827_v54 = vmul.f32 %v7241_v20, %v4603_v31 }
 0x468   : > { %v7245_v1 = vpop.eup %7244  ;;  %v4825_v21 = vmul.f32 %v7243_v28, %v4601_v53  ;;  %v6616_v17 = vpop.f32.mrb[32].mxu0  ;;  %v10506_v28 = vld [vmem:[#allocation65_spill] sm:$0xff] }
 0x469   : > { %v7247_v59 = vpop.eup %7246  ;;  %v4828_v29 = vmul.f32 %v7245_v1, %v4604_v14  ;;  %v4568_v30 = vmul.f32 %v6616_v17, %v9795_v58  ;;  %v4480_v0 = vpop.f32.mrb[33].mxu0  ;;  %v4859_v19 = vadd.f32 %v4827_v54, %v10500_v11  ;;  %v10507_v1 = vld [vmem:[#allocation66_spill] sm:$0xff] }
 0x46a   : > { %v4826_v40 = vmul.f32 %v7247_v59, %v4602_v62  ;;  %v4566_v38 = vmul.f32 %v9795_v58, %v4480_v0  ;;  %v6617_v51 = vpop.f32.mrb[34].mxu0  ;;  %v4857_v4 = vadd.f32 %v4825_v21, %v10502_v22 }
 0x46b   : > { %v4860_v44 = vadd.f32 %v4828_v29, %v10501_v15  ;;  %v4607_v25 = vadd.f32 %v9800_v43, %v4568_v30  ;;  %v4569_v57 = vmul.f32 %v6617_v51, %v9795_v58  ;;  %v4483_v5 = vpop.f32.mrb[35].mxu0 }
 0x46c   : > { %v4858_v50 = vadd.f32 %v4826_v40, %v10503_v27  ;;  %v4605_v10 = vadd.f32 %v9800_v43, %v4566_v38  ;;  %v4567_v37 = vmul.f32 %v9795_v58, %v4483_v5 }
 0x46d   : > { %v6309_v41 = vmul.f32 -1.442695, %v4607_v25  ;;  %v4608_v56 = vadd.f32 %v9800_v43, %v4569_v57  ;;  %v4884_v48 = vpack.c.bf16 %v4860_v44, %v4859_v19 }
 0x46e   : > { %v6307_v55 = vmul.f32 -1.442695, %v4605_v10  ;;  %v4606_v52 = vadd.f32 %v9800_v43, %v4567_v37  ;;  %v4883_v26 = vpack.c.bf16 %v4858_v50, %v4857_v4 }
 0x46f   : > { %7248 = vpow2.f32 %v6309_v41  ;;  %v6310_v63 = vmul.f32 -1.442695, %v4608_v56 }
 0x470   : > { %7250 = vpow2.f32 %v6307_v55  ;;  %v6308_v33 = vmul.f32 -1.442695, %v4606_v52  ;;  %6644 = vmatprep.mubr.msk.bf16.mxu1 %vm1190_vm2, %v4883_v26 }
 0x471   : > { %7252 = vpow2.f32 %v6310_v63  ;;  %6645 = vmatmul.mubr.msk.bf16.gmra.mrb[60].mxu1 %vm1190_vm2, %v4884_v48 }
 0x472   : > { %7254 = vpow2.f32 %v6308_v33 }
 0x479   : > { %v7249_v60 = vpop.eup %7248 }
 0x47a   : > { %v7251_v45 = vpop.eup %7250  ;;  %v4735_v31 = vadd.f32 1.0, %v7249_v60 }
 0x47b   : > { %v7253_v9 = vpop.eup %7252  ;;  %v4733_v7 = vadd.f32 1.0, %v7251_v45 }
 0x47c   : > { %v7255_v34 = vpop.eup %7254  ;;  %7256 = vrcp.f32 %v4735_v31  ;;  %v4736_v35 = vadd.f32 1.0, %v7253_v9 }
 0x47d   : > { %7258 = vrcp.f32 %v4733_v7  ;;  %v4734_v46 = vadd.f32 1.0, %v7255_v34 }
 0x47e   : > { %7260 = vrcp.f32 %v4736_v35 }
 0x47f   : > { %7262 = vrcp.f32 %v4734_v46 }
 0x486   : > { %v7257_v49 = vpop.eup %7256 }
 0x487   : > { %v7259_v53 = vpop.eup %7258  ;;  %v4831_v8 = vmul.f32 %v7257_v49, %v4607_v25 }
 0x488   : > { %v7261_v2 = vpop.eup %7260  ;;  %v4829_v14 = vmul.f32 %v7259_v53, %v4605_v10  ;;  %v6620_v16 = vpop.f32.mrb[36].mxu0 }
 0x489   : > { %v7263_v6 = vpop.eup %7262  ;;  %v4832_v62 = vmul.f32 %v7261_v2, %v4608_v56  ;;  %v4572_v18 = vmul.f32 %v6620_v16, %v9795_v58  ;;  %v4496_v42 = vpop.f32.mrb[37].mxu0  ;;  %v4863_v23 = vadd.f32 %v4831_v8, %v10504_v3  ;;  %v10508_v8 = vld [vmem:[#allocation67_spill] sm:$0xff] }
 0x48a   : > { %v4830_v61 = vmul.f32 %v7263_v6, %v4606_v52  ;;  %v4570_v32 = vmul.f32 %v9795_v58, %v4496_v42  ;;  %v6621_v39 = vpop.f32.mrb[38].mxu0  ;;  %v4861_v54 = vadd.f32 %v4829_v14, %v10506_v28  ;;  %v10509_v14 = vld [vmem:[#allocation69_spill] sm:$0xff]  ;;  %v10511_v42 = vld [vmem:[#allocation70_spill] sm:$0xff] }
 0x48b   : > { %v4864_v24 = vadd.f32 %v4832_v62, %v10505_v13  ;;  %v4611_v36 = vadd.f32 %v9800_v43, %v4572_v18  ;;  %v4573_v47 = vmul.f32 %v6621_v39, %v9795_v58  ;;  %v4499_v20 = vpop.f32.mrb[39].mxu0  ;;  %v10510_v62 = vld [vmem:[#allocation68_spill] sm:$0xff] }
 0x48c   : > { %v4862_v21 = vadd.f32 %v4830_v61, %v10507_v1  ;;  %v4609_v17 = vadd.f32 %v9800_v43, %v4570_v32  ;;  %v4571_v59 = vmul.f32 %v9795_v58, %v4499_v20 }
 0x48d   : > { %v6313_v29 = vmul.f32 -1.442695, %v4611_v36  ;;  %v4612_v30 = vadd.f32 %v9800_v43, %v4573_v47  ;;  %v4886_v0 = vpack.c.bf16 %v4864_v24, %v4863_v23 }
 0x48e   : > { %v6311_v40 = vmul.f32 -1.442695, %v4609_v17  ;;  %v4610_v38 = vadd.f32 %v9800_v43, %v4571_v59  ;;  %v4885_v51 = vpack.c.bf16 %v4862_v21, %v4861_v54 }
 0x48f   : > { %7264 = vpow2.f32 %v6313_v29  ;;  %v6314_v11 = vmul.f32 -1.442695, %v4612_v30 }
 0x490   : > { %7266 = vpow2.f32 %v6311_v40  ;;  %v6312_v19 = vmul.f32 -1.442695, %v4610_v38  ;;  %6648 = vmatprep.mubr.msk.bf16.mxu1 %vm1190_vm2, %v4885_v51 }
 0x491   : > { %7268 = vpow2.f32 %v6314_v11  ;;  %6649 = vmatmul.mubr.msk.bf16.gmra.mrb[64].mxu1 %vm1190_vm2, %v4886_v0 }
 0x492   : > { %7270 = vpow2.f32 %v6312_v19 }
 0x499   : > { %v7265_v15 = vpop.eup %7264 }
 0x49a   : > { %v7267_v44 = vpop.eup %7266  ;;  %v4739_v25 = vadd.f32 1.0, %v7265_v15 }
 0x49b   : > { %v7269_v57 = vpop.eup %7268  ;;  %v4737_v5 = vadd.f32 1.0, %v7267_v44 }
 0x49c   : > { %v7271_v22 = vpop.eup %7270  ;;  %7272 = vrcp.f32 %v4739_v25  ;;  %v4740_v4 = vadd.f32 1.0, %v7269_v57 }
 0x49d   : > { %7274 = vrcp.f32 %v4737_v5  ;;  %v4738_v27 = vadd.f32 1.0, %v7271_v22 }
 0x49e   : > { %7276 = vrcp.f32 %v4740_v4 }
 0x49f   : > { %7278 = vrcp.f32 %v4738_v27 }
 0x4a4   : > { %v6624_v50 = vpop.f32.mrb[40].mxu0 }
 0x4a5   : > { %v4576_v10 = vmul.f32 %v6624_v50, %v9795_v58  ;;  %v4512_v37 = vpop.f32.mrb[41].mxu0 }
 0x4a6   : > { %v7273_v41 = vpop.eup %7272  ;;  %v4574_v56 = vmul.f32 %v9795_v58, %v4512_v37  ;;  %v6625_v48 = vpop.f32.mrb[42].mxu0 }
 0x4a7   : > { %v7275_v12 = vpop.eup %7274  ;;  %v4835_v55 = vmul.f32 %v7273_v41, %v4611_v36  ;;  %v9886_v52 = vadd.f32 %v9800_v43, %v4576_v10  ;;  %v4577_v26 = vmul.f32 %v6625_v48, %v9795_v58  ;;  %v4515_v63 = vpop.f32.mrb[43].mxu0 }
 0x4a8   : > { %v7277_v33 = vpop.eup %7276  ;;  %v4833_v60 = vmul.f32 %v7275_v12, %v4609_v17  ;;  %v9890_v45 = vadd.f32 %v9800_v43, %v4574_v56  ;;  %v4575_v31 = vmul.f32 %v9795_v58, %v4515_v63 }
 0x4a9   : > { %v7279_v9 = vpop.eup %7278  ;;  %v4836_v7 = vmul.f32 %v7277_v33, %v4612_v30  ;;  %v6317_v34 = vmul.f32 -1.442695, %v9886_v52  ;;  %v4616_v35 = vadd.f32 %v9800_v43, %v4577_v26  ;;  %v4867_v2 = vadd.f32 %v4835_v55, %v10508_v8  ;;  %v10512_v26 = vld [vmem:[#allocation73_spill] sm:$0xff]  ;;  %v10513_v33 = vld [vmem:[#allocation74_spill] sm:$0xff] }
 0x4aa   : > { %v4834_v46 = vmul.f32 %v7279_v9, %v4610_v38  ;;  %v6315_v49 = vmul.f32 -1.442695, %v9890_v45  ;;  %v4614_v53 = vadd.f32 %v9800_v43, %v4575_v31  ;;  %v4865_v18 = vadd.f32 %v4833_v60, %v10510_v62  ;;  %v10514_v9 = vld [vmem:[#allocation71_spill] sm:$0xff] }
 0x4ab   : > { %v4868_v16 = vadd.f32 %v4836_v7, %v10509_v14  ;;  %7280 = vpow2.f32 %v6317_v34  ;;  %v6318_v6 = vmul.f32 -1.442695, %v4616_v35  ;;  %v10515_v34 = vld [vmem:[#allocation72_spill] sm:$0xff] }
 0x4ac   : > { %v4866_v61 = vadd.f32 %v4834_v46, %v10511_v42  ;;  %7282 = vpow2.f32 %v6315_v49  ;;  %v6316_v32 = vmul.f32 -1.442695, %v4614_v53 }
 0x4ad   : > { %7284 = vpow2.f32 %v6318_v6  ;;  %v4888_v39 = vpack.c.bf16 %v4868_v16, %v4867_v2 }
 0x4ae   : > { %7286 = vpow2.f32 %v6316_v32  ;;  %v4887_v3 = vpack.c.bf16 %v4866_v61, %v4865_v18  ;;  %v10516_v18 = vld [vmem:[#allocation77_spill] sm:$0xff]  ;;  %v10517_v61 = vld [vmem:[#allocation78_spill] sm:$0xff] }
 0x4af   : > { %v6628_v23 = vpop.f32.mrb[44].mxu0 }
 0x4b0   : > { %6652 = vmatprep.mubr.msk.bf16.mxu1 %vm1190_vm2, %v4887_v3  ;;  %v4580_v13 = vmul.f32 %v6628_v23, %v9795_v58  ;;  %v4528_v24 = vpop.f32.mrb[45].mxu0  ;;  %v10519_v23 = vld [vmem:[#allocation76_spill] sm:$0xff] }
 0x4b1   : > { %6653 = vmatmul.mubr.msk.bf16.gmra.mrb[68].mxu1 %vm1190_vm2, %v4888_v39  ;;  %v4578_v36 = vmul.f32 %v9795_v58, %v4528_v24  ;;  %v6629_v47 = vpop.f32.mrb[46].mxu0  ;;  %v10518_v39 = vld [vmem:[#allocation75_spill] sm:$0xff] }
 0x4b2   : > { %v4619_v20 = vadd.f32 %v9800_v43, %v4580_v13  ;;  %v4581_v28 = vmul.f32 %v6629_v47, %v9795_v58  ;;  %v4531_v54 = vpop.f32.mrb[47].mxu0  ;;  %v9928_v47 = vld [vmem:[%s10283_s11] ss:$0 sm:$0xff] }
 0x4b3   : > { %v4617_v1 = vadd.f32 %v9800_v43, %v4578_v36  ;;  %v4579_v21 = vmul.f32 %v9795_v58, %v4531_v54 }
 0x4b4   : > { %v6321_v17 = vmul.f32 -1.442695, %v4619_v20  ;;  %v4620_v59 = vadd.f32 %v9800_v43, %v4581_v28  ;;  %v10520_v28 = vld [vmem:[#allocation15_spill] sm:$0xff] }
 0x4b5   : > { %v7281_v29 = vpop.eup %7280  ;;  %v6319_v30 = vmul.f32 -1.442695, %v4617_v1  ;;  %v4618_v0 = vadd.f32 %v9800_v43, %v4579_v21 }
 0x4b6   : > { %v7283_v40 = vpop.eup %7282  ;;  %v4743_v38 = vadd.f32 1.0, %v7281_v29  ;;  %7288 = vpow2.f32 %v6321_v17  ;;  %v6322_v44 = vmul.f32 -1.442695, %v4620_v59 }
 0x4b7   : > { %v7285_v51 = vpop.eup %7284  ;;  %v4741_v11 = vadd.f32 1.0, %v7283_v40  ;;  %7290 = vpow2.f32 %v6319_v30  ;;  %v6320_v58 = vmul.f32 -1.442695, %v4618_v0  ;;  %v10522_v40 = vld [vmem:[#allocation17_spill] sm:$0xff] }
 0x4b8   : > { %v7287_v19 = vpop.eup %7286  ;;  %7292 = vrcp.f32 %v4743_v38  ;;  %v4744_v15 = vadd.f32 1.0, %v7285_v51 }
 0x4b9   : > { %7294 = vrcp.f32 %v4741_v11  ;;  %v4742_v25 = vadd.f32 1.0, %v7287_v19 }
 0x4ba   : > { %7296 = vrcp.f32 %v4744_v15  ;;  %v10523_v15 = vld [vmem:[#allocation18_spill] sm:$0xff] }
 0x4bb   : > { %7298 = vrcp.f32 %v4742_v25 }
 0x4bc   : > { %7300 = vpow2.f32 %v6322_v44 }
 0x4bd   : > { %7302 = vpow2.f32 %v6320_v58 }
 0x4c0   : > { %v7289_v57 = vpop.eup %7288 }
 0x4c1   : > { %v7291_v5 = vpop.eup %7290  ;;  %v4747_v43 = vadd.f32 1.0, %v7289_v57 }
 0x4c2   : > { %v7293_v22 = vpop.eup %7292  ;;  %v4745_v4 = vadd.f32 1.0, %v7291_v5 }
 0x4c3   : > { %v7295_v27 = vpop.eup %7294  ;;  %v4839_v50 = vmul.f32 %v7293_v22, %v9886_v52  ;;  %7304 = vrcp.f32 %v4747_v43 }
 0x4c4   : > { %v7297_v10 = vpop.eup %7296  ;;  %v4837_v37 = vmul.f32 %v7295_v27, %v9890_v45  ;;  %7306 = vrcp.f32 %v4745_v4 }
 0x4c5   : > { %v7299_v41 = vpop.eup %7298  ;;  %v4840_v56 = vmul.f32 %v7297_v10, %v4616_v35  ;;  %v4871_v63 = vadd.f32 %v4839_v50, %v10512_v26 }
 0x4c6   : > { %v7301_v48 = vpop.eup %7300  ;;  %v4838_v12 = vmul.f32 %v7299_v41, %v4614_v53  ;;  %v4869_v7 = vadd.f32 %v4837_v37, %v10514_v9 }
 0x4c7   : > { %v7303_v55 = vpop.eup %7302  ;;  %v4872_v60 = vadd.f32 %v4840_v56, %v10513_v33  ;;  %v4748_v31 = vadd.f32 1.0, %v7301_v48 }
 0x4c8   : > { %v4870_v46 = vadd.f32 %v4838_v12, %v10515_v34  ;;  %v4746_v52 = vadd.f32 1.0, %v7303_v55  ;;  %v10524_v55 = vld [vmem:[#allocation21_spill] sm:$0xff] }
 0x4c9   : > { %7308 = vrcp.f32 %v4748_v31  ;;  %v4890_v49 = vpack.c.bf16 %v4872_v60, %v4871_v63  ;;  %v10525_v60 = vld [vmem:[#allocation23_spill] sm:$0xff]  ;;  %v10526_v34 = vld [vmem:[#allocation25_spill] sm:$0xff] }
 0x4ca   : > { %7310 = vrcp.f32 %v4746_v52  ;;  %v4889_v45 = vpack.c.bf16 %v4870_v46, %v4869_v7 }
 0x4cc   : > { %6656 = vmatprep.mubr.msk.bf16.mxu1 %vm1190_vm2, %v4889_v45 }
 0x4cd   : > { %6657 = vmatmul.mubr.msk.bf16.gmra.mrb[72].mxu1 %vm1190_vm2, %v4890_v49  ;;  %v7305_v35 = vpop.eup %7304 }
 0x4ce   : > { %v7307_v53 = vpop.eup %7306  ;;  %v4843_v8 = vmul.f32 %v7305_v35, %v4619_v20  ;;  %v10527_v35 = vld [vmem:[#allocation26_spill] sm:$0xff] }
 0x4cf   : > { %v4841_v14 = vmul.f32 %v7307_v53, %v4617_v1  ;;  %v9935_v1 = vld [vmem:[%s10284_s12] ss:$0 sm:$0xff] }
 0x4d0   : > { %v4875_v42 = vadd.f32 %v4843_v8, %v10516_v18 }
 0x4d1   : > { %v4873_v3 = vadd.f32 %v4841_v14, %v10518_v39 }
 0x4d3   : > { %v7309_v2 = vpop.eup %7308 }
 0x4d4   : > { %v7311_v16 = vpop.eup %7310  ;;  %v4844_v6 = vmul.f32 %v7309_v2, %v4620_v59  ;;  %v10521_v59 = vld [vmem:[#allocation16_spill] sm:$0xff] }
 0x4d5   : > { %v4842_v62 = vmul.f32 %v7311_v16, %v4618_v0 }
 0x4d6   : > { %v4876_v32 = vadd.f32 %v4844_v6, %v10517_v61 }
 0x4d7   : > { %v4874_v13 = vadd.f32 %v4842_v62, %v10519_v23 }
 0x4d8   : > { %v4892_v24 = vpack.c.bf16 %v4876_v32, %v4875_v42 }
 0x4d9   : > { %v4891_v36 = vpack.c.bf16 %v4874_v13, %v4873_v3 }
 0x4db   : > { %6660 = vmatprep.mubr.msk.bf16.mxu1 %vm1190_vm2, %v4891_v36  ;;  %v10528_v36 = vld [vmem:[#allocation29_spill] sm:$0xff] }
 0x4dc   : > { %6661 = vmatmul.mubr.msk.bf16.gmra.mrb[76].mxu1 %vm1190_vm2, %v4892_v24 }
 0x4e0   : > { %v6634_v20 = vpop.f32.mrb[48].mxu1 }
 0x4e1   : > { %v5108_v54 = vsel %vm1190_vm2, %v6634_v20, %v10520_v28  ;;  %v4979_v21 = vpop.f32.mrb[49].mxu1 }
 0x4e2   : > { %v5147_v17 = vmul.f32 %v9928_v47, %v5108_v54  ;;  %v5106_v29 = vsel %vm1190_vm2, %v4979_v21, %v10521_v59  ;;  %v6635_v30 = vpop.f32.mrb[50].mxu1  ;;  %v10529_v21 = vld [vmem:[#allocation31_spill] sm:$0xff] }
 0x4e3   : > { %v5145_v0 = vmul.f32 %v9928_v47, %v5106_v29  ;;  %v5109_v38 = vsel %vm1190_vm2, %v6635_v30, %v10522_v40  ;;  %v4982_v51 = vpop.f32.mrb[51].mxu1  ;;  %v10530_v30 = vld [vmem:[#allocation33_spill] sm:$0xff] }
 0x4e4   : > { %v5186_v11 = vadd.f32 %v9935_v1, %v5147_v17  ;;  %v5148_v19 = vmul.f32 %v9928_v47, %v5109_v38  ;;  %v5107_v44 = vsel %vm1190_vm2, %v4982_v51, %v10523_v15 }
 0x4e5   : > { %v5184_v25 = vadd.f32 %v9935_v1, %v5145_v0  ;;  %v5146_v58 = vmul.f32 %v9928_v47, %v5107_v44 }
 0x4e6   : > { %v5250_v57 = vmul.f32 0.1, %v5186_v11  ;;  %v5187_v5 = vadd.f32 %v9935_v1, %v5148_v19  ;;  %vm5218_vm1 = vcmp.gt.f32.partialorder %v5186_v11, 0.0 }
 0x4e7   : > { %v5248_v43 = vmul.f32 0.1, %v5184_v25  ;;  %v5185_v22 = vadd.f32 %v9935_v1, %v5146_v58  ;;  %vm5216_vm8 = vcmp.gt.f32.partialorder %v5184_v25, 0.0 }
 0x4e8   : > { %vm5219_vm9 = vcmp.gt.f32.partialorder %v5187_v5, 0.0  ;;  %v5251_v4 = vmul.f32 0.1, %v5187_v5  ;;  %v5282_v50 = vsel %vm5218_vm1, %v5186_v11, %v5250_v57  ;;  %v10531_v11 = vld [vmem:[#allocation34_spill] sm:$0xff] }
 0x4e9   : > { %vm5217_vm10 = vcmp.gt.f32.partialorder %v5185_v22, 0.0  ;;  %v5249_v27 = vmul.f32 0.1, %v5185_v22  ;;  %v5280_v41 = vsel %vm5216_vm8, %v5184_v25, %v5248_v43 }
 0x4ea   : > { %v5283_v10 = vsel %vm5219_vm9, %v5187_v5, %v5251_v4 }
 0x4eb   : > { %v5313_v37 = vpack.c.bf16 %v5283_v10, %v5282_v50  ;;  %v5281_v56 = vsel %vm5217_vm10, %v5185_v22, %v5249_v27 }
 0x4ec   : > { %v5312_v48 = vpack.c.bf16 %v5281_v56, %v5280_v41 }
 0x4ee   : > { %6666 = vmatprep.mubr.msk.bf16.mxu0 %vm661_vm0, %v5312_v48  ;;  %v10532_v48 = vld [vmem:[#allocation37_spill] sm:$0xff] }
 0x4ef   : > { %6667 = vmatmul.mubr.msk.bf16.vlgmr.msra.gmra.mrb[48].mxu0 %vm661_vm0, %v5313_v37 }
 0x501   : > { %v6638_v12 = vpop.f32.mrb[52].mxu1 }
 0x502   : > { %v5112_v26 = vsel %vm1190_vm2, %v6638_v12, %v10524_v55  ;;  %v4995_v63 = vpop.f32.mrb[53].mxu1 }
 0x503   : > { %v5151_v33 = vmul.f32 %v9928_v47, %v5112_v26  ;;  %v5110_v31 = vsel %vm1190_vm2, %v4995_v63, %v10525_v60  ;;  %v6639_v9 = vpop.f32.mrb[54].mxu1  ;;  %v10533_v63 = vld [vmem:[#allocation39_spill] sm:$0xff] }
 0x504   : > { %v5149_v7 = vmul.f32 %v9928_v47, %v5110_v31  ;;  %v5113_v46 = vsel %vm1190_vm2, %v6639_v9, %v10526_v34  ;;  %v4998_v52 = vpop.f32.mrb[55].mxu1  ;;  %v10534_v9 = vld [vmem:[#allocation41_spill] sm:$0xff] }
 0x505   : > { %v5190_v49 = vadd.f32 %v9935_v1, %v5151_v33  ;;  %v5152_v45 = vmul.f32 %v9928_v47, %v5113_v46  ;;  %v5111_v53 = vsel %vm1190_vm2, %v4998_v52, %v10527_v35 }
 0x506   : > { %v5188_v8 = vadd.f32 %v9935_v1, %v5149_v7  ;;  %v5150_v2 = vmul.f32 %v9928_v47, %v5111_v53 }
 0x507   : > { %v5254_v14 = vmul.f32 0.1, %v5190_v49  ;;  %v5191_v16 = vadd.f32 %v9935_v1, %v5152_v45  ;;  %vm5222_vm11 = vcmp.gt.f32.partialorder %v5190_v49, 0.0 }
 0x508   : > { %v5252_v6 = vmul.f32 0.1, %v5188_v8  ;;  %v5189_v62 = vadd.f32 %v9935_v1, %v5150_v2  ;;  %vm5220_vm12 = vcmp.gt.f32.partialorder %v5188_v8, 0.0 }
 0x509   : > { %vm5223_vm13 = vcmp.gt.f32.partialorder %v5191_v16, 0.0  ;;  %v5255_v18 = vmul.f32 0.1, %v5191_v16  ;;  %v5286_v61 = vsel %vm5222_vm11, %v5190_v49, %v5254_v14  ;;  %v10535_v49 = vld [vmem:[#allocation42_spill] sm:$0xff] }
 0x50a   : > { %vm5221_vm14 = vcmp.gt.f32.partialorder %v5189_v62, 0.0  ;;  %v5253_v42 = vmul.f32 0.1, %v5189_v62  ;;  %v5284_v39 = vsel %vm5220_vm12, %v5188_v8, %v5252_v6 }
 0x50b   : > { %v5287_v32 = vsel %vm5223_vm13, %v5191_v16, %v5255_v18 }
 0x50c   : > { %v5285_v3 = vsel %vm5221_vm14, %v5189_v62, %v5253_v42  ;;  %v5315_v23 = vpack.c.bf16 %v5287_v32, %v5286_v61 }
 0x50d   : > { %v5314_v13 = vpack.c.bf16 %v5285_v3, %v5284_v39 }
 0x50f   : > { %6670 = vmatprep.mubr.msk.bf16.mxu0 %vm661_vm0, %v5314_v13  ;;  %v10536_v13 = vld [vmem:[#allocation19_spill] sm:$0xff] }
 0x510   : > { %6671 = vmatmul.mubr.msk.bf16.gmra.mrb[52].mxu0 %vm661_vm0, %v5315_v23 }
 0x524   : > { %v6642_v24 = vpop.f32.mrb[56].mxu1 }
 0x525   : > { %v5116_v20 = vsel %vm1190_vm2, %v6642_v24, %v10528_v36  ;;  %v5011_v28 = vpop.f32.mrb[57].mxu1 }
 0x526   : > { %v5155_v54 = vmul.f32 %v9928_v47, %v5116_v20  ;;  %v5114_v17 = vsel %vm1190_vm2, %v5011_v28, %v10529_v21  ;;  %v6643_v59 = vpop.f32.mrb[58].mxu1  ;;  %v10537_v28 = vld [vmem:[#allocation20_spill] sm:$0xff] }
 0x527   : > { %v5153_v29 = vmul.f32 %v9928_v47, %v5114_v17  ;;  %v5117_v0 = vsel %vm1190_vm2, %v6643_v59, %v10530_v30  ;;  %v5014_v40 = vpop.f32.mrb[59].mxu1  ;;  %v10538_v59 = vld [vmem:[#allocation22_spill] sm:$0xff] }
 0x528   : > { %v5194_v38 = vadd.f32 %v9935_v1, %v5155_v54  ;;  %v5156_v51 = vmul.f32 %v9928_v47, %v5117_v0  ;;  %v5115_v19 = vsel %vm1190_vm2, %v5014_v40, %v10531_v11 }
 0x529   : > { %v5192_v15 = vadd.f32 %v9935_v1, %v5153_v29  ;;  %v5154_v44 = vmul.f32 %v9928_v47, %v5115_v19 }
 0x52a   : > { %v5258_v25 = vmul.f32 0.1, %v5194_v38  ;;  %v5195_v58 = vadd.f32 %v9935_v1, %v5156_v51  ;;  %vm5226_vm15 = vcmp.gt.f32.partialorder %v5194_v38, 0.0 }
 0x52b   : > { %v5256_v57 = vmul.f32 0.1, %v5192_v15  ;;  %v5193_v5 = vadd.f32 %v9935_v1, %v5154_v44  ;;  %vm5224_vm3 = vcmp.gt.f32.partialorder %v5192_v15, 0.0 }
 0x52c   : > { %vm5227_vm4 = vcmp.gt.f32.partialorder %v5195_v58, 0.0  ;;  %v5259_v43 = vmul.f32 0.1, %v5195_v58  ;;  %v5290_v4 = vsel %vm5226_vm15, %v5194_v38, %v5258_v25  ;;  %v10539_v38 = vld [vmem:[#allocation24_spill] sm:$0xff] }
 0x52d   : > { %vm5225_vm5 = vcmp.gt.f32.partialorder %v5193_v5, 0.0  ;;  %v5257_v22 = vmul.f32 0.1, %v5193_v5  ;;  %v5288_v50 = vsel %vm5224_vm3, %v5192_v15, %v5256_v57 }
 0x52e   : > { %v5291_v27 = vsel %vm5227_vm4, %v5195_v58, %v5259_v43 }
 0x52f   : > { %v5289_v10 = vsel %vm5225_vm5, %v5193_v5, %v5257_v22  ;;  %v5317_v37 = vpack.c.bf16 %v5291_v27, %v5290_v4 }
 0x530   : > { %v5316_v41 = vpack.c.bf16 %v5289_v10, %v5288_v50 }
 0x532   : > { %6674 = vmatprep.mubr.msk.bf16.mxu0 %vm661_vm0, %v5316_v41  ;;  %v10540_v41 = vld [vmem:[#allocation27_spill] sm:$0xff] }
 0x533   : > { %6675 = vmatmul.mubr.msk.bf16.gmra.mrb[56].mxu0 %vm661_vm0, %v5317_v37 }
 0x544   : > { %v6646_v56 = vpop.f32.mrb[60].mxu1 }
 0x545   : > { %v5120_v12 = vsel %vm1190_vm2, %v6646_v56, %v10532_v48  ;;  %v5027_v55 = vpop.f32.mrb[61].mxu1 }
 0x546   : > { %v5159_v26 = vmul.f32 %v9928_v47, %v5120_v12  ;;  %v5118_v33 = vsel %vm1190_vm2, %v5027_v55, %v10533_v63  ;;  %v6647_v60 = vpop.f32.mrb[62].mxu1  ;;  %v10541_v55 = vld [vmem:[#allocation28_spill] sm:$0xff] }
 0x547   : > { %v5157_v31 = vmul.f32 %v9928_v47, %v5118_v33  ;;  %v5121_v7 = vsel %vm1190_vm2, %v6647_v60, %v10534_v9  ;;  %v5030_v34 = vpop.f32.mrb[63].mxu1  ;;  %v10542_v60 = vld [vmem:[#allocation30_spill] sm:$0xff] }
 0x548   : > { %v5198_v46 = vadd.f32 %v9935_v1, %v5159_v26  ;;  %v5160_v52 = vmul.f32 %v9928_v47, %v5121_v7  ;;  %v5119_v45 = vsel %vm1190_vm2, %v5030_v34, %v10535_v49 }
 0x549   : > { %v5196_v35 = vadd.f32 %v9935_v1, %v5157_v31  ;;  %v5158_v53 = vmul.f32 %v9928_v47, %v5119_v45 }
 0x54a   : > { %v5262_v8 = vmul.f32 0.1, %v5198_v46  ;;  %v5199_v2 = vadd.f32 %v9935_v1, %v5160_v52  ;;  %vm5230_vm6 = vcmp.gt.f32.partialorder %v5198_v46, 0.0 }
 0x54b   : > { %v5260_v14 = vmul.f32 0.1, %v5196_v35  ;;  %v5197_v16 = vadd.f32 %v9935_v1, %v5158_v53  ;;  %vm5228_vm7 = vcmp.gt.f32.partialorder %v5196_v35, 0.0 }
 0x54c   : > { %vm5231_vm1 = vcmp.gt.f32.partialorder %v5199_v2, 0.0  ;;  %v5263_v6 = vmul.f32 0.1, %v5199_v2  ;;  %v5294_v18 = vsel %vm5230_vm6, %v5198_v46, %v5262_v8  ;;  %v10543_v46 = vld [vmem:[#allocation32_spill] sm:$0xff] }
 0x54d   : > { %vm5229_vm8 = vcmp.gt.f32.partialorder %v5197_v16, 0.0  ;;  %v5261_v62 = vmul.f32 0.1, %v5197_v16  ;;  %v5292_v61 = vsel %vm5228_vm7, %v5196_v35, %v5260_v14 }
 0x54e   : > { %v5295_v42 = vsel %vm5231_vm1, %v5199_v2, %v5263_v6 }
 0x54f   : > { %v5293_v32 = vsel %vm5229_vm8, %v5197_v16, %v5261_v62  ;;  %v5319_v39 = vpack.c.bf16 %v5295_v42, %v5294_v18 }
 0x550   : > { %v5318_v3 = vpack.c.bf16 %v5293_v32, %v5292_v61 }
 0x552   : > { %6678 = vmatprep.mubr.msk.bf16.mxu0 %vm661_vm0, %v5318_v3  ;;  %v10544_v3 = vld [vmem:[#allocation35_spill] sm:$0xff] }
 0x553   : > { %6679 = vmatmul.mubr.msk.bf16.gmra.mrb[60].mxu0 %vm661_vm0, %v5319_v39 }
 0x564   : > { %v6650_v23 = vpop.f32.mrb[64].mxu1 }
 0x565   : > { %v5124_v24 = vsel %vm1190_vm2, %v6650_v23, %v10536_v13  ;;  %v5043_v36 = vpop.f32.mrb[65].mxu1 }
 0x566   : > { %v5163_v20 = vmul.f32 %v9928_v47, %v5124_v24  ;;  %v5122_v54 = vsel %vm1190_vm2, %v5043_v36, %v10537_v28  ;;  %v6651_v21 = vpop.f32.mrb[66].mxu1  ;;  %v10545_v36 = vld [vmem:[#allocation36_spill] sm:$0xff] }
 0x567   : > { %v5161_v17 = vmul.f32 %v9928_v47, %v5122_v54  ;;  %v5125_v29 = vsel %vm1190_vm2, %v6651_v21, %v10538_v59  ;;  %v5046_v30 = vpop.f32.mrb[67].mxu1  ;;  %v10546_v21 = vld [vmem:[#allocation38_spill] sm:$0xff] }
 0x568   : > { %v5202_v0 = vadd.f32 %v9935_v1, %v5163_v20  ;;  %v5164_v40 = vmul.f32 %v9928_v47, %v5125_v29  ;;  %v5123_v51 = vsel %vm1190_vm2, %v5046_v30, %v10539_v38 }
 0x569   : > { %v5200_v11 = vadd.f32 %v9935_v1, %v5161_v17  ;;  %v5162_v19 = vmul.f32 %v9928_v47, %v5123_v51 }
 0x56a   : > { %v5266_v15 = vmul.f32 0.1, %v5202_v0  ;;  %v5203_v44 = vadd.f32 %v9935_v1, %v5164_v40  ;;  %vm5234_vm9 = vcmp.gt.f32.partialorder %v5202_v0, 0.0 }
 0x56b   : > { %v5264_v25 = vmul.f32 0.1, %v5200_v11  ;;  %v5201_v58 = vadd.f32 %v9935_v1, %v5162_v19  ;;  %vm5232_vm10 = vcmp.gt.f32.partialorder %v5200_v11, 0.0 }
 0x56c   : > { %vm5235_vm11 = vcmp.gt.f32.partialorder %v5203_v44, 0.0  ;;  %v5267_v57 = vmul.f32 0.1, %v5203_v44  ;;  %v5298_v43 = vsel %vm5234_vm9, %v5202_v0, %v5266_v15  ;;  %v10547_v0 = vld [vmem:[#allocation40_spill] sm:$0xff] }
 0x56d   : > { %vm5233_vm12 = vcmp.gt.f32.partialorder %v5201_v58, 0.0  ;;  %v5265_v5 = vmul.f32 0.1, %v5201_v58  ;;  %v5296_v4 = vsel %vm5232_vm10, %v5200_v11, %v5264_v25 }
 0x56e   : > { %v5299_v22 = vsel %vm5235_vm11, %v5203_v44, %v5267_v57 }
 0x56f   : > { %v5297_v27 = vsel %vm5233_vm12, %v5201_v58, %v5265_v5  ;;  %v5321_v50 = vpack.c.bf16 %v5299_v22, %v5298_v43 }
 0x570   : > { %v5320_v10 = vpack.c.bf16 %v5297_v27, %v5296_v4 }
 0x572   : > { %6682 = vmatprep.mubr.msk.bf16.mxu0 %vm661_vm0, %v5320_v10  ;;  %v10548_v10 = vld [vmem:[#allocation43_spill] sm:$0xff] }
 0x573   : > { %6683 = vmatmul.mubr.msk.bf16.gmra.mrb[64].mxu0 %vm661_vm0, %v5321_v50 }
 0x584   : > { %v6654_v37 = vpop.f32.mrb[68].mxu1 }
 0x585   : > { %v5128_v56 = vsel %vm1190_vm2, %v6654_v37, %v10540_v41  ;;  %v5059_v48 = vpop.f32.mrb[69].mxu1 }
 0x586   : > { %v5167_v12 = vmul.f32 %v9928_v47, %v5128_v56  ;;  %v5126_v26 = vsel %vm1190_vm2, %v5059_v48, %v10541_v55  ;;  %v6655_v63 = vpop.f32.mrb[70].mxu1  ;;  %v10549_v48 = vld [vmem:[#allocation44_spill] sm:$0xff] }
 0x587   : > { %v5165_v33 = vmul.f32 %v9928_v47, %v5126_v26  ;;  %v5129_v31 = vsel %vm1190_vm2, %v6655_v63, %v10542_v60  ;;  %v5062_v9 = vpop.f32.mrb[71].mxu1  ;;  %v10550_v63 = vld [vmem:[#allocation45_spill] sm:$0xff] }
 0x588   : > { %v5206_v7 = vadd.f32 %v9935_v1, %v5167_v12  ;;  %v5168_v34 = vmul.f32 %v9928_v47, %v5129_v31  ;;  %v5127_v52 = vsel %vm1190_vm2, %v5062_v9, %v10543_v46 }
 0x589   : > { %v5204_v49 = vadd.f32 %v9935_v1, %v5165_v33  ;;  %v5166_v45 = vmul.f32 %v9928_v47, %v5127_v52 }
 0x58a   : > { %v5270_v35 = vmul.f32 0.1, %v5206_v7  ;;  %v5207_v53 = vadd.f32 %v9935_v1, %v5168_v34  ;;  %vm5238_vm13 = vcmp.gt.f32.partialorder %v5206_v7, 0.0 }
 0x58b   : > { %v5268_v8 = vmul.f32 0.1, %v5204_v49  ;;  %v5205_v2 = vadd.f32 %v9935_v1, %v5166_v45  ;;  %vm5236_vm14 = vcmp.gt.f32.partialorder %v5204_v49, 0.0 }
 0x58c   : > { %vm5239_vm15 = vcmp.gt.f32.partialorder %v5207_v53, 0.0  ;;  %v5271_v14 = vmul.f32 0.1, %v5207_v53  ;;  %v5302_v6 = vsel %vm5238_vm13, %v5206_v7, %v5270_v35  ;;  %v10551_v7 = vld [vmem:[#allocation47_spill] sm:$0xff] }
 0x58d   : > { %vm5237_vm3 = vcmp.gt.f32.partialorder %v5205_v2, 0.0  ;;  %v5269_v16 = vmul.f32 0.1, %v5205_v2  ;;  %v5300_v18 = vsel %vm5236_vm14, %v5204_v49, %v5268_v8 }
 0x58e   : > { %v5303_v62 = vsel %vm5239_vm15, %v5207_v53, %v5271_v14 }
 0x58f   : > { %v5301_v42 = vsel %vm5237_vm3, %v5205_v2, %v5269_v16  ;;  %v5323_v61 = vpack.c.bf16 %v5303_v62, %v5302_v6 }
 0x590   : > { %v5322_v32 = vpack.c.bf16 %v5301_v42, %v5300_v18 }
 0x592   : > { %6686 = vmatprep.mubr.msk.bf16.mxu0 %vm661_vm0, %v5322_v32 }
 0x593   : > { %6687 = vmatmul.mubr.msk.bf16.gmra.mrb[68].mxu0 %vm661_vm0, %v5323_v61  ;;  %v10087_v61 = vld [vmem:[%s10552_s30] ss:$0 sm:$0xff] }
 0x5a0   : > { %v6658_v39 = vpop.f32.mrb[72].mxu1 }
 0x5a1   : > { %v5132_v23 = vsel %vm1190_vm2, %v6658_v39, %v10544_v3  ;;  %v5075_v13 = vpop.f32.mrb[73].mxu1 }
 0x5a2   : > { %v5171_v24 = vmul.f32 %v9928_v47, %v5132_v23  ;;  %v5130_v20 = vsel %vm1190_vm2, %v5075_v13, %v10545_v36  ;;  %v6659_v28 = vpop.f32.mrb[74].mxu1 }
 0x5a3   : > { %v5169_v54 = vmul.f32 %v9928_v47, %v5130_v20  ;;  %v5133_v17 = vsel %vm1190_vm2, %v6659_v28, %v10546_v21  ;;  %v5078_v59 = vpop.f32.mrb[75].mxu1 }
 0x5a4   : > { %v5210_v29 = vadd.f32 %v9935_v1, %v5171_v24  ;;  %v5172_v30 = vmul.f32 %v9928_v47, %v5133_v17  ;;  %v5131_v40 = vsel %vm1190_vm2, %v5078_v59, %v10547_v0 }
 0x5a5   : > { %v5208_v38 = vadd.f32 %v9935_v1, %v5169_v54  ;;  %v5170_v51 = vmul.f32 %v9928_v47, %v5131_v40 }
 0x5a6   : > { %v5274_v11 = vmul.f32 0.1, %v5210_v29  ;;  %v5211_v19 = vadd.f32 %v9935_v1, %v5172_v30  ;;  %vm5242_vm4 = vcmp.gt.f32.partialorder %v5210_v29, 0.0 }
 0x5a7   : > { %v5272_v15 = vmul.f32 0.1, %v5208_v38  ;;  %v5209_v44 = vadd.f32 %v9935_v1, %v5170_v51  ;;  %vm5240_vm5 = vcmp.gt.f32.partialorder %v5208_v38, 0.0 }
 0x5a8   : > { %vm5243_vm6 = vcmp.gt.f32.partialorder %v5211_v19, 0.0  ;;  %v5275_v25 = vmul.f32 0.1, %v5211_v19  ;;  %v5306_v57 = vsel %vm5242_vm4, %v5210_v29, %v5274_v11 }
 0x5a9   : > { %vm5241_vm7 = vcmp.gt.f32.partialorder %v5209_v44, 0.0  ;;  %v5273_v58 = vmul.f32 0.1, %v5209_v44  ;;  %v5304_v43 = vsel %vm5240_vm5, %v5208_v38, %v5272_v15 }
 0x5aa   : > { %v5307_v5 = vsel %vm5243_vm6, %v5211_v19, %v5275_v25 }
 0x5ab   : > { %v5305_v22 = vsel %vm5241_vm7, %v5209_v44, %v5273_v58  ;;  %v5325_v4 = vpack.c.bf16 %v5307_v5, %v5306_v57 }
 0x5ac   : > { %v5324_v27 = vpack.c.bf16 %v5305_v22, %v5304_v43 }
 0x5ae   : > { %6690 = vmatprep.mubr.msk.bf16.mxu0 %vm661_vm0, %v5324_v27 }
 0x5af   : > { %6691 = vmatmul.mubr.msk.bf16.gmra.mrb[72].mxu0 %vm661_vm0, %v5325_v4  ;;  %v6662_v50 = vpop.f32.mrb[76].mxu1 }
 0x5b0   : > { %v5136_v37 = vsel %vm1190_vm2, %v6662_v50, %v10548_v10  ;;  %v5091_v41 = vpop.f32.mrb[77].mxu1 }
 0x5b1   : > { %v5175_v56 = vmul.f32 %v9928_v47, %v5136_v37  ;;  %v5134_v12 = vsel %vm1190_vm2, %v5091_v41, %v10549_v48  ;;  %v6663_v55 = vpop.f32.mrb[78].mxu1 }
 0x5b2   : > { %v5173_v26 = vmul.f32 %v9928_v47, %v5134_v12  ;;  %v5137_v33 = vsel %vm1190_vm2, %v6663_v55, %v10550_v63  ;;  %v5094_v60 = vpop.f32.mrb[79].mxu1 }
 0x5b3   : > { %v5214_v31 = vadd.f32 %v9935_v1, %v5175_v56  ;;  %v5176_v9 = vmul.f32 %v9928_v47, %v5137_v33  ;;  %v5135_v34 = vsel %vm1190_vm2, %v5094_v60, %v10551_v7 }
 0x5b4   : > { %v5212_v46 = vadd.f32 %v9935_v1, %v5173_v26  ;;  %v5174_v52 = vmul.f32 %v9928_v47, %v5135_v34  ;;  %v10082_v47 = vld [vmem:[%s10286_s14] ss:$0 sm:$0xff] }
 0x5b5   : > { %v5278_v49 = vmul.f32 0.1, %v5214_v31  ;;  %v5215_v45 = vadd.f32 %v9935_v1, %v5176_v9  ;;  %vm5246_vm1 = vcmp.gt.f32.partialorder %v5214_v31, 0.0 }
 0x5b6   : > { %v5276_v35 = vmul.f32 0.1, %v5212_v46  ;;  %v5213_v53 = vadd.f32 %v9935_v1, %v5174_v52  ;;  %vm5244_vm8 = vcmp.gt.f32.partialorder %v5212_v46, 0.0 }
 0x5b7   : > { %vm5247_vm9 = vcmp.gt.f32.partialorder %v5215_v45, 0.0  ;;  %v5279_v8 = vmul.f32 0.1, %v5215_v45  ;;  %v5310_v14 = vsel %vm5246_vm1, %v5214_v31, %v5278_v49 }
 0x5b8   : > { %vm5245_vm10 = vcmp.gt.f32.partialorder %v5213_v53, 0.0  ;;  %v5277_v2 = vmul.f32 0.1, %v5213_v53  ;;  %v5308_v6 = vsel %vm5244_vm8, %v5212_v46, %v5276_v35 }
 0x5b9   : > { %v5311_v16 = vsel %vm5247_vm9, %v5215_v45, %v5279_v8 }
 0x5ba   : > { %v5309_v62 = vsel %vm5245_vm10, %v5213_v53, %v5277_v2  ;;  %v5327_v18 = vpack.c.bf16 %v5311_v16, %v5310_v14 }
 0x5bb   : > { %v5326_v42 = vpack.c.bf16 %v5309_v62, %v5308_v6 }
 0x5bd   : > { %6694 = vmatprep.mubr.msk.bf16.mxu0 %vm661_vm0, %v5326_v42 }
 0x5be   : > { %6695 = vmatmul.mubr.msk.bf16.gmra.mrb[76].mxu0 %vm661_vm0, %v5327_v18 }
 0x5c2   : > { %v6668_v1 = vpop.f32.mrb[48].mxu0 }
 0x5c3   : > { %v5554_v32 = vmul.f32 %v6668_v1, %v10082_v47  ;;  %v5418_v39 = vpop.f32.mrb[49].mxu0 }
 0x5c4   : > { %v5552_v3 = vmul.f32 %v10082_v47, %v5418_v39  ;;  %v6669_v23 = vpop.f32.mrb[50].mxu0 }
 0x5c5   : > { %v5593_v13 = vadd.f32 %v10087_v61, %v5554_v32  ;;  %v5555_v24 = vmul.f32 %v6669_v23, %v10082_v47  ;;  %v5421_v36 = vpop.f32.mrb[51].mxu0 }
 0x5c6   : > { %v5591_v20 = vadd.f32 %v10087_v61, %v5552_v3  ;;  %v5553_v28 = vmul.f32 %v10082_v47, %v5421_v36 }
 0x5c7   : > { %v6362_v54 = vmul.f32 -1.442695, %v5593_v13  ;;  %v5594_v21 = vadd.f32 %v10087_v61, %v5555_v24 }
 0x5c8   : > { %v6360_v17 = vmul.f32 -1.442695, %v5591_v20  ;;  %v5592_v59 = vadd.f32 %v10087_v61, %v5553_v28 }
 0x5c9   : > { %7312 = vpow2.f32 %v6362_v54  ;;  %v6363_v29 = vmul.f32 -1.442695, %v5594_v21 }
 0x5ca   : > { %7314 = vpow2.f32 %v6360_v17  ;;  %v6361_v30 = vmul.f32 -1.442695, %v5592_v59 }
 0x5cb   : > { %7316 = vpow2.f32 %v6363_v29 }
 0x5cc   : > { %7318 = vpow2.f32 %v6361_v30 }
 0x5d3   : > { %v7313_v0 = vpop.eup %7312 }
 0x5d4   : > { %v7315_v40 = vpop.eup %7314  ;;  %v5721_v38 = vadd.f32 1.0, %v7313_v0 }
 0x5d5   : > { %v7317_v51 = vpop.eup %7316  ;;  %v5719_v11 = vadd.f32 1.0, %v7315_v40 }
 0x5d6   : > { %v7319_v19 = vpop.eup %7318  ;;  %7320 = vrcp.f32 %v5721_v38  ;;  %v5722_v15 = vadd.f32 1.0, %v7317_v51 }
 0x5d7   : > { %7322 = vrcp.f32 %v5719_v11  ;;  %v5720_v44 = vadd.f32 1.0, %v7319_v19 }
 0x5d8   : > { %7324 = vrcp.f32 %v5722_v15 }
 0x5d9   : > { %7326 = vrcp.f32 %v5720_v44 }
 0x5e0   : > { %v7321_v25 = vpop.eup %7320 }
 0x5e1   : > { %v7323_v58 = vpop.eup %7322  ;;  %v5817_v57 = vmul.f32 %v7321_v25, %v5593_v13 }
 0x5e2   : > { %v7325_v5 = vpop.eup %7324  ;;  %v5815_v43 = vmul.f32 %v7323_v58, %v5591_v20 }
 0x5e3   : > { %v6672_v22 = vpop.f32.mrb[52].mxu0  ;;  %v7327_v4 = vpop.eup %7326  ;;  %5849 = vst.msk [vmem:[%s10098_s23 + $0x10] sm:$0xff] %vm661_vm0, %v5817_v57  ;;  %v5818_v27 = vmul.f32 %v7325_v5, %v5594_v21 }
 0x5e4   : > { %v5558_v50 = vmul.f32 %v6672_v22, %v10082_v47  ;;  %v5434_v10 = vpop.f32.mrb[53].mxu0  ;;  %5847 = vst.msk [vmem:[%s10098_s23] sm:$0xff] %vm661_vm0, %v5815_v43  ;;  %v5816_v37 = vmul.f32 %v7327_v4, %v5592_v59 }
 0x5e5   : > { %v5556_v41 = vmul.f32 %v10082_v47, %v5434_v10  ;;  %v6673_v56 = vpop.f32.mrb[54].mxu0  ;;  %5850 = vst.msk [vmem:[%s10098_s23 + $0x18] sm:$0xff] %vm661_vm0, %v5818_v27 }
 0x5e6   : > { %v5597_v48 = vadd.f32 %v10087_v61, %v5558_v50  ;;  %v5559_v12 = vmul.f32 %v6673_v56, %v10082_v47  ;;  %v5437_v55 = vpop.f32.mrb[55].mxu0  ;;  %5848 = vst.msk [vmem:[%s10098_s23 + $0x8] sm:$0xff] %vm661_vm0, %v5816_v37 }
 0x5e7   : > { %v5595_v26 = vadd.f32 %v10087_v61, %v5556_v41  ;;  %v5557_v63 = vmul.f32 %v10082_v47, %v5437_v55 }
 0x5e8   : > { %v6366_v33 = vmul.f32 -1.442695, %v5597_v48  ;;  %v5598_v60 = vadd.f32 %v10087_v61, %v5559_v12 }
 0x5e9   : > { %v6364_v31 = vmul.f32 -1.442695, %v5595_v26  ;;  %v5596_v9 = vadd.f32 %v10087_v61, %v5557_v63 }
 0x5ea   : > { %7328 = vpow2.f32 %v6366_v33  ;;  %v6367_v7 = vmul.f32 -1.442695, %v5598_v60 }
 0x5eb   : > { %7330 = vpow2.f32 %v6364_v31  ;;  %v6365_v34 = vmul.f32 -1.442695, %v5596_v9 }
 0x5ec   : > { %7332 = vpow2.f32 %v6367_v7 }
 0x5ed   : > { %7334 = vpow2.f32 %v6365_v34 }
 0x5f4   : > { %v7329_v46 = vpop.eup %7328 }
 0x5f5   : > { %v7331_v52 = vpop.eup %7330  ;;  %v5725_v49 = vadd.f32 1.0, %v7329_v46 }
 0x5f6   : > { %v7333_v45 = vpop.eup %7332  ;;  %v5723_v35 = vadd.f32 1.0, %v7331_v52 }
 0x5f7   : > { %v7335_v53 = vpop.eup %7334  ;;  %7336 = vrcp.f32 %v5725_v49  ;;  %v5726_v8 = vadd.f32 1.0, %v7333_v45 }
 0x5f8   : > { %7338 = vrcp.f32 %v5723_v35  ;;  %v5724_v2 = vadd.f32 1.0, %v7335_v53 }
 0x5f9   : > { %7340 = vrcp.f32 %v5726_v8 }
 0x5fa   : > { %7342 = vrcp.f32 %v5724_v2 }
 0x601   : > { %v7337_v14 = vpop.eup %7336 }
 0x602   : > { %v7339_v16 = vpop.eup %7338  ;;  %v5821_v6 = vmul.f32 %v7337_v14, %v5597_v48 }
 0x603   : > { %v7341_v62 = vpop.eup %7340  ;;  %v5819_v18 = vmul.f32 %v7339_v16, %v5595_v26 }
 0x604   : > { %v7343_v42 = vpop.eup %7342  ;;  %5853 = vst.msk [vmem:[%s10098_s23 + $0x30] sm:$0xff] %vm661_vm0, %v5821_v6  ;;  %v5822_v1 = vmul.f32 %v7341_v62, %v5598_v60 }
 0x605   : > { %5851 = vst.msk [vmem:[%s10098_s23 + $0x20] sm:$0xff] %vm661_vm0, %v5819_v18  ;;  %v5820_v32 = vmul.f32 %v7343_v42, %v5596_v9 }
 0x606   : > { %v6676_v39 = vpop.f32.mrb[56].mxu0  ;;  %5854 = vst.msk [vmem:[%s10098_s23 + $0x38] sm:$0xff] %vm661_vm0, %v5822_v1 }
 0x607   : > { %v5562_v3 = vmul.f32 %v6676_v39, %v10082_v47  ;;  %v5450_v23 = vpop.f32.mrb[57].mxu0  ;;  %5852 = vst.msk [vmem:[%s10098_s23 + $0x28] sm:$0xff] %vm661_vm0, %v5820_v32 }
 0x608   : > { %v5560_v13 = vmul.f32 %v10082_v47, %v5450_v23  ;;  %v6677_v24 = vpop.f32.mrb[58].mxu0 }
 0x609   : > { %v5601_v36 = vadd.f32 %v10087_v61, %v5562_v3  ;;  %v5563_v20 = vmul.f32 %v6677_v24, %v10082_v47  ;;  %v5453_v28 = vpop.f32.mrb[59].mxu0 }
 0x60a   : > { %v5599_v54 = vadd.f32 %v10087_v61, %v5560_v13  ;;  %v5561_v21 = vmul.f32 %v10082_v47, %v5453_v28 }
 0x60b   : > { %v6370_v17 = vmul.f32 -1.442695, %v5601_v36  ;;  %v5602_v59 = vadd.f32 %v10087_v61, %v5563_v20 }
 0x60c   : > { %v6368_v29 = vmul.f32 -1.442695, %v5599_v54  ;;  %v5600_v30 = vadd.f32 %v10087_v61, %v5561_v21 }
 0x60d   : > { %7344 = vpow2.f32 %v6370_v17  ;;  %v6371_v0 = vmul.f32 -1.442695, %v5602_v59 }
 0x60e   : > { %7346 = vpow2.f32 %v6368_v29  ;;  %v6369_v40 = vmul.f32 -1.442695, %v5600_v30 }
 0x60f   : > { %7348 = vpow2.f32 %v6371_v0 }
 0x610   : > { %7350 = vpow2.f32 %v6369_v40 }
 0x617   : > { %v7345_v38 = vpop.eup %7344 }
 0x618   : > { %v7347_v51 = vpop.eup %7346  ;;  %v5729_v11 = vadd.f32 1.0, %v7345_v38 }
 0x619   : > { %v7349_v19 = vpop.eup %7348  ;;  %v5727_v15 = vadd.f32 1.0, %v7347_v51 }
 0x61a   : > { %v7351_v44 = vpop.eup %7350  ;;  %7352 = vrcp.f32 %v5729_v11  ;;  %v5730_v25 = vadd.f32 1.0, %v7349_v19 }
 0x61b   : > { %7354 = vrcp.f32 %v5727_v15  ;;  %v5728_v58 = vadd.f32 1.0, %v7351_v44 }
 0x61c   : > { %7356 = vrcp.f32 %v5730_v25 }
 0x61d   : > { %7358 = vrcp.f32 %v5728_v58 }
 0x624   : > { %v7353_v57 = vpop.eup %7352 }
 0x625   : > { %v7355_v5 = vpop.eup %7354  ;;  %v5825_v43 = vmul.f32 %v7353_v57, %v5601_v36 }
 0x626   : > { %v7357_v22 = vpop.eup %7356  ;;  %v5823_v4 = vmul.f32 %v7355_v5, %v5599_v54  ;;  %v6680_v27 = vpop.f32.mrb[60].mxu0 }
 0x627   : > { %v7359_v50 = vpop.eup %7358  ;;  %5857 = vst.msk [vmem:[%s10098_s23 + $0x50] sm:$0xff] %vm661_vm0, %v5825_v43  ;;  %v5826_v10 = vmul.f32 %v7357_v22, %v5602_v59  ;;  %v5566_v37 = vmul.f32 %v6680_v27, %v10082_v47  ;;  %v5466_v41 = vpop.f32.mrb[61].mxu0 }
 0x628   : > { %5855 = vst.msk [vmem:[%s10098_s23 + $0x40] sm:$0xff] %vm661_vm0, %v5823_v4  ;;  %v5824_v56 = vmul.f32 %v7359_v50, %v5600_v30  ;;  %v5564_v48 = vmul.f32 %v10082_v47, %v5466_v41  ;;  %v6681_v12 = vpop.f32.mrb[62].mxu0 }
 0x629   : > { %5858 = vst.msk [vmem:[%s10098_s23 + $0x58] sm:$0xff] %vm661_vm0, %v5826_v10  ;;  %v5605_v55 = vadd.f32 %v10087_v61, %v5566_v37  ;;  %v5567_v26 = vmul.f32 %v6681_v12, %v10082_v47  ;;  %v5469_v63 = vpop.f32.mrb[63].mxu0 }
 0x62a   : > { %5856 = vst.msk [vmem:[%s10098_s23 + $0x48] sm:$0xff] %vm661_vm0, %v5824_v56  ;;  %v5603_v33 = vadd.f32 %v10087_v61, %v5564_v48  ;;  %v5565_v60 = vmul.f32 %v10082_v47, %v5469_v63 }
 0x62b   : > { %v6374_v31 = vmul.f32 -1.442695, %v5605_v55  ;;  %v5606_v9 = vadd.f32 %v10087_v61, %v5567_v26 }
 0x62c   : > { %v6372_v7 = vmul.f32 -1.442695, %v5603_v33  ;;  %v5604_v34 = vadd.f32 %v10087_v61, %v5565_v60 }
 0x62d   : > { %7360 = vpow2.f32 %v6374_v31  ;;  %v6375_v46 = vmul.f32 -1.442695, %v5606_v9 }
 0x62e   : > { %7362 = vpow2.f32 %v6372_v7  ;;  %v6373_v52 = vmul.f32 -1.442695, %v5604_v34 }
 0x62f   : > { %7364 = vpow2.f32 %v6375_v46 }
 0x630   : > { %7366 = vpow2.f32 %v6373_v52 }
 0x637   : > { %v7361_v49 = vpop.eup %7360 }
 0x638   : > { %v7363_v45 = vpop.eup %7362  ;;  %v5733_v35 = vadd.f32 1.0, %v7361_v49 }
 0x639   : > { %v7365_v53 = vpop.eup %7364  ;;  %v5731_v8 = vadd.f32 1.0, %v7363_v45 }
 0x63a   : > { %v7367_v2 = vpop.eup %7366  ;;  %7368 = vrcp.f32 %v5733_v35  ;;  %v5734_v14 = vadd.f32 1.0, %v7365_v53 }
 0x63b   : > { %7370 = vrcp.f32 %v5731_v8  ;;  %v5732_v16 = vadd.f32 1.0, %v7367_v2 }
 0x63c   : > { %7372 = vrcp.f32 %v5734_v14 }
 0x63d   : > { %7374 = vrcp.f32 %v5732_v16 }
 0x644   : > { %v7369_v6 = vpop.eup %7368 }
 0x645   : > { %v7371_v62 = vpop.eup %7370  ;;  %v5829_v18 = vmul.f32 %v7369_v6, %v5605_v55 }
 0x646   : > { %v7373_v42 = vpop.eup %7372  ;;  %v5827_v1 = vmul.f32 %v7371_v62, %v5603_v33  ;;  %v6684_v32 = vpop.f32.mrb[64].mxu0 }
 0x647   : > { %v7375_v39 = vpop.eup %7374  ;;  %5861 = vst.msk [vmem:[%s10098_s23 + $0x70] sm:$0xff] %vm661_vm0, %v5829_v18  ;;  %v5830_v3 = vmul.f32 %v7373_v42, %v5606_v9  ;;  %v5570_v23 = vmul.f32 %v6684_v32, %v10082_v47  ;;  %v5482_v13 = vpop.f32.mrb[65].mxu0 }
 0x648   : > { %5859 = vst.msk [vmem:[%s10098_s23 + $0x60] sm:$0xff] %vm661_vm0, %v5827_v1  ;;  %v5828_v24 = vmul.f32 %v7375_v39, %v5604_v34  ;;  %v5568_v36 = vmul.f32 %v10082_v47, %v5482_v13  ;;  %v6685_v20 = vpop.f32.mrb[66].mxu0 }
 0x649   : > { %5862 = vst.msk [vmem:[%s10098_s23 + $0x78] sm:$0xff] %vm661_vm0, %v5830_v3  ;;  %v5609_v28 = vadd.f32 %v10087_v61, %v5570_v23  ;;  %v5571_v54 = vmul.f32 %v6685_v20, %v10082_v47  ;;  %v5485_v21 = vpop.f32.mrb[67].mxu0 }
 0x64a   : > { %5860 = vst.msk [vmem:[%s10098_s23 + $0x68] sm:$0xff] %vm661_vm0, %v5828_v24  ;;  %v5607_v17 = vadd.f32 %v10087_v61, %v5568_v36  ;;  %v5569_v59 = vmul.f32 %v10082_v47, %v5485_v21 }
 0x64b   : > { %v6378_v29 = vmul.f32 -1.442695, %v5609_v28  ;;  %v5610_v30 = vadd.f32 %v10087_v61, %v5571_v54 }
 0x64c   : > { %v6376_v0 = vmul.f32 -1.442695, %v5607_v17  ;;  %v5608_v40 = vadd.f32 %v10087_v61, %v5569_v59 }
 0x64d   : > { %7376 = vpow2.f32 %v6378_v29  ;;  %v6379_v38 = vmul.f32 -1.442695, %v5610_v30 }
 0x64e   : > { %7378 = vpow2.f32 %v6376_v0  ;;  %v6377_v51 = vmul.f32 -1.442695, %v5608_v40 }
 0x64f   : > { %7380 = vpow2.f32 %v6379_v38 }
 0x650   : > { %7382 = vpow2.f32 %v6377_v51 }
 0x657   : > { %v7377_v11 = vpop.eup %7376 }
 0x658   : > { %v7379_v19 = vpop.eup %7378  ;;  %v5737_v15 = vadd.f32 1.0, %v7377_v11 }
 0x659   : > { %v7381_v44 = vpop.eup %7380  ;;  %v5735_v25 = vadd.f32 1.0, %v7379_v19 }
 0x65a   : > { %v7383_v58 = vpop.eup %7382  ;;  %7384 = vrcp.f32 %v5737_v15  ;;  %v5738_v57 = vadd.f32 1.0, %v7381_v44 }
 0x65b   : > { %7386 = vrcp.f32 %v5735_v25  ;;  %v5736_v5 = vadd.f32 1.0, %v7383_v58 }
 0x65c   : > { %7388 = vrcp.f32 %v5738_v57 }
 0x65d   : > { %7390 = vrcp.f32 %v5736_v5 }
 0x664   : > { %v7385_v43 = vpop.eup %7384 }
 0x665   : > { %v7387_v22 = vpop.eup %7386  ;;  %v5833_v4 = vmul.f32 %v7385_v43, %v5609_v28 }
 0x666   : > { %v7389_v27 = vpop.eup %7388  ;;  %v5831_v50 = vmul.f32 %v7387_v22, %v5607_v17  ;;  %v6688_v10 = vpop.f32.mrb[68].mxu0 }
 0x667   : > { %v7391_v37 = vpop.eup %7390  ;;  %5865 = vst.msk [vmem:[%s10098_s23 + $0x90] sm:$0xff] %vm661_vm0, %v5833_v4  ;;  %v5834_v41 = vmul.f32 %v7389_v27, %v5610_v30  ;;  %v5574_v56 = vmul.f32 %v6688_v10, %v10082_v47  ;;  %v5498_v48 = vpop.f32.mrb[69].mxu0 }
 0x668   : > { %5863 = vst.msk [vmem:[%s10098_s23 + $0x80] sm:$0xff] %vm661_vm0, %v5831_v50  ;;  %v5832_v12 = vmul.f32 %v7391_v37, %v5608_v40  ;;  %v5572_v55 = vmul.f32 %v10082_v47, %v5498_v48  ;;  %v6689_v26 = vpop.f32.mrb[70].mxu0 }
 0x669   : > { %5866 = vst.msk [vmem:[%s10098_s23 + $0x98] sm:$0xff] %vm661_vm0, %v5834_v41  ;;  %v5613_v63 = vadd.f32 %v10087_v61, %v5574_v56  ;;  %v5575_v33 = vmul.f32 %v6689_v26, %v10082_v47  ;;  %v5501_v60 = vpop.f32.mrb[71].mxu0 }
 0x66a   : > { %5864 = vst.msk [vmem:[%s10098_s23 + $0x88] sm:$0xff] %vm661_vm0, %v5832_v12  ;;  %v5611_v31 = vadd.f32 %v10087_v61, %v5572_v55  ;;  %v5573_v9 = vmul.f32 %v10082_v47, %v5501_v60 }
 0x66b   : > { %v6382_v7 = vmul.f32 -1.442695, %v5613_v63  ;;  %v5614_v34 = vadd.f32 %v10087_v61, %v5575_v33 }
 0x66c   : > { %v6380_v46 = vmul.f32 -1.442695, %v5611_v31  ;;  %v5612_v52 = vadd.f32 %v10087_v61, %v5573_v9 }
 0x66d   : > { %7392 = vpow2.f32 %v6382_v7  ;;  %v6383_v49 = vmul.f32 -1.442695, %v5614_v34 }
 0x66e   : > { %7394 = vpow2.f32 %v6380_v46  ;;  %v6381_v45 = vmul.f32 -1.442695, %v5612_v52 }
 0x66f   : > { %7396 = vpow2.f32 %v6383_v49 }
 0x670   : > { %7398 = vpow2.f32 %v6381_v45 }
 0x677   : > { %v7393_v35 = vpop.eup %7392 }
 0x678   : > { %v7395_v53 = vpop.eup %7394  ;;  %v5741_v8 = vadd.f32 1.0, %v7393_v35 }
 0x679   : > { %v7397_v2 = vpop.eup %7396  ;;  %v5739_v14 = vadd.f32 1.0, %v7395_v53 }
 0x67a   : > { %v7399_v16 = vpop.eup %7398  ;;  %7400 = vrcp.f32 %v5741_v8  ;;  %v5742_v6 = vadd.f32 1.0, %v7397_v2 }
 0x67b   : > { %7402 = vrcp.f32 %v5739_v14  ;;  %v5740_v62 = vadd.f32 1.0, %v7399_v16 }
 0x67c   : > { %7404 = vrcp.f32 %v5742_v6 }
 0x67d   : > { %7406 = vrcp.f32 %v5740_v62 }
 0x682   : > { %v6692_v18 = vpop.f32.mrb[72].mxu0 }
 0x683   : > { %v5578_v42 = vmul.f32 %v6692_v18, %v10082_v47  ;;  %v5514_v1 = vpop.f32.mrb[73].mxu0 }
 0x684   : > { %v7401_v32 = vpop.eup %7400  ;;  %v5576_v39 = vmul.f32 %v10082_v47, %v5514_v1  ;;  %v6693_v3 = vpop.f32.mrb[74].mxu0 }
 0x685   : > { %v7403_v23 = vpop.eup %7402  ;;  %v5837_v13 = vmul.f32 %v7401_v32, %v5613_v63  ;;  %v5617_v24 = vadd.f32 %v10087_v61, %v5578_v42  ;;  %v5579_v36 = vmul.f32 %v6693_v3, %v10082_v47  ;;  %v5517_v20 = vpop.f32.mrb[75].mxu0 }
 0x686   : > { %v7405_v28 = vpop.eup %7404  ;;  %v5835_v54 = vmul.f32 %v7403_v23, %v5611_v31  ;;  %v5615_v21 = vadd.f32 %v10087_v61, %v5576_v39  ;;  %v5577_v17 = vmul.f32 %v10082_v47, %v5517_v20 }
 0x687   : > { %v7407_v59 = vpop.eup %7406  ;;  %5869 = vst.msk [vmem:[%s10098_s23 + $0xb0] sm:$0xff] %vm661_vm0, %v5837_v13  ;;  %v5838_v29 = vmul.f32 %v7405_v28, %v5614_v34  ;;  %v6386_v30 = vmul.f32 -1.442695, %v5617_v24  ;;  %v5618_v0 = vadd.f32 %v10087_v61, %v5579_v36 }
 0x688   : > { %5867 = vst.msk [vmem:[%s10098_s23 + $0xa0] sm:$0xff] %vm661_vm0, %v5835_v54  ;;  %v5836_v40 = vmul.f32 %v7407_v59, %v5612_v52  ;;  %v6384_v38 = vmul.f32 -1.442695, %v5615_v21  ;;  %v5616_v51 = vadd.f32 %v10087_v61, %v5577_v17 }
 0x689   : > { %5870 = vst.msk [vmem:[%s10098_s23 + $0xb8] sm:$0xff] %vm661_vm0, %v5838_v29  ;;  %7408 = vpow2.f32 %v6386_v30  ;;  %v6387_v11 = vmul.f32 -1.442695, %v5618_v0 }
 0x68a   : > { %5868 = vst.msk [vmem:[%s10098_s23 + $0xa8] sm:$0xff] %vm661_vm0, %v5836_v40  ;;  %7410 = vpow2.f32 %v6384_v38  ;;  %v6385_v19 = vmul.f32 -1.442695, %v5616_v51 }
 0x68b   : > { %7412 = vpow2.f32 %v6387_v11 }
 0x68c   : > { %7414 = vpow2.f32 %v6385_v19 }
 0x691   : > { %v6696_v15 = vpop.f32.mrb[76].mxu0 }
 0x692   : > { %v5582_v44 = vmul.f32 %v6696_v15, %v10082_v47  ;;  %v5530_v25 = vpop.f32.mrb[77].mxu0 }
 0x693   : > { %v7409_v58 = vpop.eup %7408  ;;  %v5580_v57 = vmul.f32 %v10082_v47, %v5530_v25  ;;  %v6697_v5 = vpop.f32.mrb[78].mxu0 }
 0x694   : > { %v7411_v43 = vpop.eup %7410  ;;  %v5745_v22 = vadd.f32 1.0, %v7409_v58  ;;  %v5621_v4 = vadd.f32 %v10087_v61, %v5582_v44  ;;  %v5583_v27 = vmul.f32 %v6697_v5, %v10082_v47  ;;  %v5533_v50 = vpop.f32.mrb[79].mxu0 }
 0x695   : > { %v7413_v10 = vpop.eup %7412  ;;  %v5743_v37 = vadd.f32 1.0, %v7411_v43  ;;  %v5619_v41 = vadd.f32 %v10087_v61, %v5580_v57  ;;  %v5581_v56 = vmul.f32 %v10082_v47, %v5533_v50 }
 0x696   : > { %v7415_v48 = vpop.eup %7414  ;;  %7416 = vrcp.f32 %v5745_v22  ;;  %v5746_v12 = vadd.f32 1.0, %v7413_v10  ;;  %v6390_v55 = vmul.f32 -1.442695, %v5621_v4  ;;  %v5622_v26 = vadd.f32 %v10087_v61, %v5583_v27 }
 0x697   : > { %7418 = vrcp.f32 %v5743_v37  ;;  %v5744_v63 = vadd.f32 1.0, %v7415_v48  ;;  %v6388_v33 = vmul.f32 -1.442695, %v5619_v41  ;;  %v5620_v60 = vadd.f32 %v10087_v61, %v5581_v56 }
 0x698   : > { %7420 = vrcp.f32 %v5746_v12  ;;  %v6391_v31 = vmul.f32 -1.442695, %v5622_v26 }
 0x699   : > { %7422 = vrcp.f32 %v5744_v63  ;;  %v6389_v9 = vmul.f32 -1.442695, %v5620_v60 }
 0x69a   : > { %7424 = vpow2.f32 %v6390_v55 }
 0x69b   : > { %7426 = vpow2.f32 %v6388_v33 }
 0x69c   : > { %7428 = vpow2.f32 %v6391_v31 }
 0x69d   : > { %7430 = vpow2.f32 %v6389_v9 }
 0x6a0   : > { %v7417_v47 = vpop.eup %7416 }
 0x6a1   : > { %v7419_v7 = vpop.eup %7418  ;;  %v5841_v34 = vmul.f32 %v7417_v47, %v5617_v24 }
 0x6a2   : > { %v7421_v46 = vpop.eup %7420  ;;  %v5839_v52 = vmul.f32 %v7419_v7, %v5615_v21 }
 0x6a3   : > { %v7423_v49 = vpop.eup %7422  ;;  %5873 = vst.msk [vmem:[%s10098_s23 + $0xd0] sm:$0xff] %vm661_vm0, %v5841_v34  ;;  %v5842_v61 = vmul.f32 %v7421_v46, %v5618_v0 }
 0x6a4   : > { %v7425_v45 = vpop.eup %7424  ;;  %5871 = vst.msk [vmem:[%s10098_s23 + $0xc0] sm:$0xff] %vm661_vm0, %v5839_v52  ;;  %v5840_v35 = vmul.f32 %v7423_v49, %v5616_v51 }
 0x6a5   : > { %v7427_v53 = vpop.eup %7426  ;;  %5874 = vst.msk [vmem:[%s10098_s23 + $0xd8] sm:$0xff] %vm661_vm0, %v5842_v61  ;;  %v5749_v8 = vadd.f32 1.0, %v7425_v45 }
 0x6a6   : > { %v7429_v2 = vpop.eup %7428  ;;  %5872 = vst.msk [vmem:[%s10098_s23 + $0xc8] sm:$0xff] %vm661_vm0, %v5840_v35  ;;  %v5747_v14 = vadd.f32 1.0, %v7427_v53 }
 0x6a7   : > { %v7431_v16 = vpop.eup %7430  ;;  %7432 = vrcp.f32 %v5749_v8  ;;  %v5750_v6 = vadd.f32 1.0, %v7429_v2 }
 0x6a8   : > { %7434 = vrcp.f32 %v5747_v14  ;;  %v5748_v62 = vadd.f32 1.0, %v7431_v16 }
 0x6a9   : > { %7436 = vrcp.f32 %v5750_v6 }
 0x6aa   : > { %7438 = vrcp.f32 %v5748_v62 }
 0x6b1   : > { %v7433_v18 = vpop.eup %7432 }
 0x6b2   : > { %v7435_v42 = vpop.eup %7434  ;;  %v5845_v1 = vmul.f32 %v7433_v18, %v5621_v4 }
 0x6b3   : > { %v7437_v32 = vpop.eup %7436  ;;  %v5843_v39 = vmul.f32 %v7435_v42, %v5619_v41 }
 0x6b4   : > { %v7439_v3 = vpop.eup %7438  ;;  %5877 = vst.msk [vmem:[%s10098_s23 + $0xf0] sm:$0xff] %vm661_vm0, %v5845_v1  ;;  %v5846_v23 = vmul.f32 %v7437_v32, %v5622_v26 }
 0x6b5   : > { %5875 = vst.msk [vmem:[%s10098_s23 + $0xe0] sm:$0xff] %vm661_vm0, %v5843_v39  ;;  %v5844_v13 = vmul.f32 %v7439_v3, %v5620_v60 }
 0x6b6   : > { %5878 = vst.msk [vmem:[%s10098_s23 + $0xf8] sm:$0xff] %vm661_vm0, %v5846_v23 }
 0x6b7   : > { %5876 = vst.msk [vmem:[%s10098_s23 + $0xe8] sm:$0xff] %vm661_vm0, %v5844_v13 }
 0x6b8   : > { %7486 = shalt.err (!%p7483_p2)
}
 0x6b9   : > { %s7487_s23 = scalar_lea.hbm %s10219_s21, 4096  ;;  %s7491_s25 = scalar_lea.hbm %s10555_s18, 8192 }
 0x6ba   : > { %p7488_p4 = scmp.ne.s32.totalorder %s10219_s21, %s7487_s23  ;;  %p7492_p9 = scmp.lt.u32.totalorder %s10219_s21, %s10555_s18 }
 0x6bb   : > { %p7493_p1 = scmp.lt.u32.totalorder %s7491_s25, %s7487_s23  ;;  %p7495_p6 = scmp.lt.u32.totalorder %s7487_s23, %s10219_s21 }
 0x6bc   : > { %p7489_p5 = pnand %p7488_p4, %p10556_p11 }
 0x6bd   : > { %p7494_p3 = por %p7493_p1, %p7492_p9 }
 0x6be   : > { %p7490_p7 = pneg %p7489_p5 }
 0x6bf   : > { %p7496_p12 = por %p7495_p6, %p7494_p3 }
 0x6c1   : > { %p7497_p13 = pnand %p7496_p12, %p7490_p7 }
 0x6c3   : > { %7500 = shalt.err (!%p7497_p13)
}
 0x6c4   : > { %s7554_s27 = smov 128   ;;  %s10557_s29 = smov 8  }
 0x6c5   : > { %s10558_s1 = scalar_lea.sflag [#allocation5], %s7744_s28 }
 0x6c6   : > { %6705 = dma.vmem_to_hbm [thread:$0]  (%p10556_p11), %s10223_s0, 4096, %s10219_s21, %s10558_s1, %s7554_s27, %s7554_s27, %s10557_s29  }
 0x6c7 PF: > { %s10559_s30 = sld [smem:[#allocation9_spill]]  ;;  %p10560_p8 = scmp.ne.s32.totalorder %s10383_s19, 0 }
 0x6c8   : > { %p10561_p10 = scmp.ge.s32.totalorder %s7539_s24, 2 }
 0x6ca   : > { %p6712_p0 = pnand %p10561_p10, %p10560_p8 }
 0x6cd   : > { %s5908_s20 = sand.u32 1, %s10559_s30  }
 0x6ce   : > { %s5909_s23 = scalar_lea.sflag [#allocation5], %s5908_s20 }
 0x6cf   : > { %7522 = dma.done.wait (!%p6712_p0), %s5909_s23, 4096  }
 0x6d0   : > { %7524 = vsyncadd (!%p6712_p0), %s5909_s23, 4294963200  ;;  %s10562_s24 = sld [smem:[#allocation12_spill]]  ;;  %s10563_s15 = sld [smem:[#allocation10_spill]] }
 0x6d1   : > { %s10564_s23 = sld [smem:[#allocation13_spill]]  ;;  %s10565_s21 = smov %s7531_s22 }
 0x6d6   : > { %p29_p2 = scmp.ge.s32.totalorder %s10562_s24, 4   ;;  %s10566_s22 = smov %s10563_s15 }
 0x6d8   :  { %31 = sbr.rel (!%p29_p2) target bundleno = 10 (0xa), region = 132 }
 0x6df   :  { %5914 = vsyncpa [#allocation4], 1 }
 0x6e0   :  { %5916 = vsyncpa [#allocation4 + $0x1], 1 }
 0x6e1   :  { %5917 = vsyncpa [#allocation5], 1 }
 0x6e2   :  { %5919 = vsyncpa [#allocation5 + $0x1], 1 }

</bundles_post_ra>
